<compile_context>
chip_gen: v6e
topology: v6e:2x2x1
jax: 0.10.0
libtpu: 0.0.40
codegen_flags: <defaults>
</compile_context>

<pallas_src>
import functools

import jax
import jax.numpy as jnp
from jax.experimental import pallas as pl
from jax.experimental.pallas import tpu as pltpu


def _conv3d_relu_kernel(x_ref, w_ref, o_ref, *, KS, HpWp, Wp, Q, PADF, Cin_p, Cout):
    """Single-step kernel (batch folded into the flat voxel/lane axis).

    x_ref : (Cin_p, Q + 2*PADF)  flat channel-major zero-padded input (VMEM)
    w_ref : (Cout, KS^3*Cin_p)   weights; columns k-major / cin-minor (VMEM)
    o_ref : (Cout, Q)            flat channel-major output on the padded grid
    """
    pad = (KS - 1) // 2
    acc = None
    k = 0
    for kd in range(KS):
        for kh in range(KS):
            for kw in range(KS):
                # 3D tap offset == a single static shift on the padded-grid
                # flattening; all interior outputs read same-sample data only.
                s = (kd - pad) * HpWp + (kh - pad) * Wp + (kw - pad)
                patch = x_ref[:, PADF + s: PADF + s + Q]          # (Cin_p, Q)
                wk = w_ref[:, k * Cin_p:(k + 1) * Cin_p]          # (Cout, Cin_p)
                term = jnp.dot(wk, patch, preferred_element_type=jnp.float32)
                acc = term if acc is None else acc + term
                k += 1
    # Fused ReLU + full-lane dense store.
    o_ref[...] = jnp.maximum(acc, 0.0).astype(o_ref.dtype)


def basic_convolution_block(x_ncdhw, weight, *, ks=3, stride=1, dilation=1,
                            compute_dtype=None):
    """Dense-grid equivalent of BasicConvolutionBlock.forward.

    x_ncdhw: (N, Cin, D, H, W) float32 dense voxel grid (torch NCDHW layout)
    weight : (ks**3, Cin, Cout) float32 (torchsparse Conv3d layout, offset-major)
    compute_dtype: optional (e.g. jnp.bfloat16) to halve HBM/VMEM traffic on
                   v6e/v7x; accumulation and output stay float32.
    returns: (N, Cout, D, H, W), same dtype as x.
    """
    assert stride == 1 and dilation == 1, "default module config (ks=3, s=1, d=1)"
    assert ks % 2 == 1, "odd kernel size required for 'same' padding"
    N, Cin, D, H, W = x_ncdhw.shape
    Kvol, Cin_w, Cout = weight.shape
    assert Kvol == ks ** 3 and Cin_w == Cin

    pad = (ks - 1) // 2
    Dp, Hp, Wp = D + 2 * pad, H + 2 * pad, W + 2 * pad
    Q = N * Dp * Hp * Wp                   # padded-grid voxels (batch folded)
    PADF = pad * (Hp * Wp + Wp + 1)        # flat guard so every tap slice is in-bounds
    L = Q + 2 * PADF
    Cin_p = ((Cin + 7) // 8) * 8           # pad Cin to the f32 sublane tile

    out_dtype = x_ncdhw.dtype
    cdt = jnp.dtype(compute_dtype) if compute_dtype is not None else jnp.dtype(out_dtype)

    # --- one wrapper prep pass: channel-major + halo pad + flatten + guard pad ---
    xc = jnp.transpose(x_ncdhw, (1, 0, 2, 3, 4)).astype(cdt)        # (Cin, N, D, H, W)
    xc = jnp.pad(xc, ((0, Cin_p - Cin), (0, 0),
                      (pad, pad), (pad, pad), (pad, pad)))           # (Cin_p, N, Dp, Hp, Wp)
    xf = jnp.pad(xc.reshape(Cin_p, Q), ((0, 0), (PADF, PADF)))       # (Cin_p, L)

    # Weights: (ks^3, Cin, Cout) -> (Cout, ks^3*Cin_p); columns k-major, cin-minor.
    wp = jnp.pad(weight.astype(cdt), ((0, 0), (0, Cin_p - Cin), (0, 0)))
    w2 = jnp.transpose(wp, (2, 0, 1)).reshape(Cout, Kvol * Cin_p)

    kernel = functools.partial(
        _conv3d_relu_kernel,
        KS=ks, HpWp=Hp * Wp, Wp=Wp, Q=Q, PADF=PADF, Cin_p=Cin_p, Cout=Cout)

    in_bytes = Cin_p * L * cdt.itemsize
    w_bytes = Cout * Kvol * Cin_p * cdt.itemsize
    out_bytes = Cout * Q * jnp.dtype(out_dtype).itemsize
    # Derived VMEM budget: double-buffered full-array blocks + headroom for
    # accumulator spills / relayout temporaries (capped well under v7x's 64 MiB).
    vmem_limit = int(min(48 << 20, 2 * (in_bytes + w_bytes + out_bytes) + (8 << 20)))

    cost = pl.CostEstimate(
        flops=2 * N * D * H * W * Kvol * Cin * Cout,
        transcendentals=0,
        bytes_accessed=in_bytes + w_bytes + out_bytes,
    )

    out_flat = pl.pallas_call(
        kernel,
        out_shape=jax.ShapeDtypeStruct((Cout, Q), out_dtype),
        grid=(1,),
        in_specs=[
            pl.BlockSpec((Cin_p, L), lambda i: (0, 0)),              # flat input slab
            pl.BlockSpec((Cout, Kvol * Cin_p), lambda i: (0, 0)),    # resident weights
        ],
        out_specs=pl.BlockSpec((Cout, Q), lambda i: (0, 0)),         # lane-dense output
        compiler_params=pltpu.CompilerParams(
            dimension_semantics=("arbitrary",),
            vmem_limit_bytes=vmem_limit,
        ),
        cost_estimate=cost,
    )(xf, w2)

    # Padded grid -> interior -> NCDHW (cheap wrapper-side layout plumbing).
    outp = out_flat.reshape(Cout, N, Dp, Hp, Wp)
    out = outp[:, :, pad:pad + D, pad:pad + H, pad:pad + W]
    return jnp.transpose(out, (1, 0, 2, 3, 4))


if __name__ == "__main__":
    key = jax.random.PRNGKey(0)
    kx, kw = jax.random.split(key)

    # Small shapes consistent with the module: batch=2, inc=4, outc=8, 8^3 voxels.
    N, Cin, Cout = 2, 4, 8
    D = H = W = 8
    KS = 3

    x = jax.random.normal(kx, (N, Cin, D, H, W), dtype=jnp.float32)
    # Deterministic kaiming-ish weights; (ks^3, Cin, Cout) as in torchsparse Conv3d.
    w = jax.random.normal(kw, (KS ** 3, Cin, Cout), dtype=jnp.float32) * (
        1.0 / (KS ** 3 * Cin) ** 0.5
    )

    out = jax.block_until_ready(basic_convolution_block(x, w))

    # Pure-JAX reference (dense conv3d, same padding, no bias, ReLU).
    x_ndhwc = jnp.transpose(x, (0, 2, 3, 4, 1))
    ref = jax.lax.conv_general_dilated(
        x_ndhwc,
        w.reshape(KS, KS, KS, Cin, Cout),
        window_strides=(1, 1, 1),
        padding="SAME",
        dimension_numbers=("NDHWC", "DHWIO", "NDHWC"),
    )
    ref = jnp.maximum(ref, 0.0)
    ref = jnp.transpose(ref, (0, 4, 1, 2, 3))

    assert out.shape == (N, Cout, D, H, W)
    assert jnp.allclose(out, ref, atol=1e-4, rtol=1e-4), "mismatch vs reference"
    print("KERNEL_OK")
</pallas_src>

<mosaic_0001>
module attributes {stable_mosaic.version = 11 : i64} {
  func.func @_conv3d_relu_kernel(%arg0: i32, %arg1: memref<8x2222xf32, #tpu.memory_space<vmem>>, %arg2: memref<8x216xf32, #tpu.memory_space<vmem>>, %arg3: memref<8x2000xf32, #tpu.memory_space<vmem>>) attributes {dimension_semantics = [#tpu.dimension_semantics<arbitrary>], iteration_bounds = array<i64: 1>, scalar_prefetch = 0 : i64, scratch_operands = 0 : i64, tpu.core_type = #tpu.core_type<tc>, window_params = [{pipeline_mode = #tpu.pipeline_mode<synchronous>, transform_indices = @transform_0, window_bounds = array<i64: 8, 2222>}, {pipeline_mode = #tpu.pipeline_mode<synchronous>, transform_indices = @transform_1, window_bounds = array<i64: 8, 216>}, {pipeline_mode = #tpu.pipeline_mode<synchronous>, transform_indices = @transform_2, window_bounds = array<i64: 8, 2000>}]} {
    %c0 = arith.constant 0 : index
    %c0_0 = arith.constant 0 : index
    %0 = vector.load %arg1[%c0, %c0_0] : memref<8x2222xf32, #tpu.memory_space<vmem>>, vector<8x2000xf32>
    %c0_1 = arith.constant 0 : index
    %c0_2 = arith.constant 0 : index
    %1 = vector.load %arg2[%c0_1, %c0_2] : memref<8x216xf32, #tpu.memory_space<vmem>>, vector<8x8xf32>
    %cst = arith.constant dense<0.000000e+00> : vector<8x2000xf32>
    %2 = tpu.matmul %1, %0, %cst {dimension_numbers = #tpu.dot_dimension_numbers<[1], [0], [0], [1], [0, 0, 1, 1], [], []>} : vector<8x8xf32>, vector<8x2000xf32>, vector<8x2000xf32> -> vector<8x2000xf32>
    %c0_3 = arith.constant 0 : index
    %c1 = arith.constant 1 : index
    %3 = vector.load %arg1[%c0_3, %c1] : memref<8x2222xf32, #tpu.memory_space<vmem>>, vector<8x2000xf32>
    %c0_4 = arith.constant 0 : index
    %c8 = arith.constant 8 : index
    %4 = vector.load %arg2[%c0_4, %c8] : memref<8x216xf32, #tpu.memory_space<vmem>>, vector<8x8xf32>
    %cst_5 = arith.constant dense<0.000000e+00> : vector<8x2000xf32>
    %5 = tpu.matmul %4, %3, %cst_5 {dimension_numbers = #tpu.dot_dimension_numbers<[1], [0], [0], [1], [0, 0, 1, 1], [], []>} : vector<8x8xf32>, vector<8x2000xf32>, vector<8x2000xf32> -> vector<8x2000xf32>
    %6 = arith.addf %2, %5 : vector<8x2000xf32>
    %c0_6 = arith.constant 0 : index
    %c2 = arith.constant 2 : index
    %7 = vector.load %arg1[%c0_6, %c2] : memref<8x2222xf32, #tpu.memory_space<vmem>>, vector<8x2000xf32>
    %c0_7 = arith.constant 0 : index
    %c16 = arith.constant 16 : index
    %8 = vector.load %arg2[%c0_7, %c16] : memref<8x216xf32, #tpu.memory_space<vmem>>, vector<8x8xf32>
    %cst_8 = arith.constant dense<0.000000e+00> : vector<8x2000xf32>
    %9 = tpu.matmul %8, %7, %cst_8 {dimension_numbers = #tpu.dot_dimension_numbers<[1], [0], [0], [1], [0, 0, 1, 1], [], []>} : vector<8x8xf32>, vector<8x2000xf32>, vector<8x2000xf32> -> vector<8x2000xf32>
    %10 = arith.addf %6, %9 : vector<8x2000xf32>
    %c0_9 = arith.constant 0 : index
    %c10 = arith.constant 10 : index
    %11 = vector.load %arg1[%c0_9, %c10] : memref<8x2222xf32, #tpu.memory_space<vmem>>, vector<8x2000xf32>
    %c0_10 = arith.constant 0 : index
    %c24 = arith.constant 24 : index
    %12 = vector.load %arg2[%c0_10, %c24] : memref<8x216xf32, #tpu.memory_space<vmem>>, vector<8x8xf32>
    %cst_11 = arith.constant dense<0.000000e+00> : vector<8x2000xf32>
    %13 = tpu.matmul %12, %11, %cst_11 {dimension_numbers = #tpu.dot_dimension_numbers<[1], [0], [0], [1], [0, 0, 1, 1], [], []>} : vector<8x8xf32>, vector<8x2000xf32>, vector<8x2000xf32> -> vector<8x2000xf32>
    %14 = arith.addf %10, %13 : vector<8x2000xf32>
    %c0_12 = arith.constant 0 : index
    %c11 = arith.constant 11 : index
    %15 = vector.load %arg1[%c0_12, %c11] : memref<8x2222xf32, #tpu.memory_space<vmem>>, vector<8x2000xf32>
    %c0_13 = arith.constant 0 : index
    %c32 = arith.constant 32 : index
    %16 = vector.load %arg2[%c0_13, %c32] : memref<8x216xf32, #tpu.memory_space<vmem>>, vector<8x8xf32>
    %cst_14 = arith.constant dense<0.000000e+00> : vector<8x2000xf32>
    %17 = tpu.matmul %16, %15, %cst_14 {dimension_numbers = #tpu.dot_dimension_numbers<[1], [0], [0], [1], [0, 0, 1, 1], [], []>} : vector<8x8xf32>, vector<8x2000xf32>, vector<8x2000xf32> -> vector<8x2000xf32>
    %18 = arith.addf %14, %17 : vector<8x2000xf32>
    %c0_15 = arith.constant 0 : index
    %c12 = arith.constant 12 : index
    %19 = vector.load %arg1[%c0_15, %c12] : memref<8x2222xf32, #tpu.memory_space<vmem>>, vector<8x2000xf32>
    %c0_16 = arith.constant 0 : index
    %c40 = arith.constant 40 : index
    %20 = vector.load %arg2[%c0_16, %c40] : memref<8x216xf32, #tpu.memory_space<vmem>>, vector<8x8xf32>
    %cst_17 = arith.constant dense<0.000000e+00> : vector<8x2000xf32>
    %21 = tpu.matmul %20, %19, %cst_17 {dimension_numbers = #tpu.dot_dimension_numbers<[1], [0], [0], [1], [0, 0, 1, 1], [], []>} : vector<8x8xf32>, vector<8x2000xf32>, vector<8x2000xf32> -> vector<8x2000xf32>
    %22 = arith.addf %18, %21 : vector<8x2000xf32>
    %c0_18 = arith.constant 0 : index
    %c20 = arith.constant 20 : index
    %23 = vector.load %arg1[%c0_18, %c20] : memref<8x2222xf32, #tpu.memory_space<vmem>>, vector<8x2000xf32>
    %c0_19 = arith.constant 0 : index
    %c48 = arith.constant 48 : index
    %24 = vector.load %arg2[%c0_19, %c48] : memref<8x216xf32, #tpu.memory_space<vmem>>, vector<8x8xf32>
    %cst_20 = arith.constant dense<0.000000e+00> : vector<8x2000xf32>
    %25 = tpu.matmul %24, %23, %cst_20 {dimension_numbers = #tpu.dot_dimension_numbers<[1], [0], [0], [1], [0, 0, 1, 1], [], []>} : vector<8x8xf32>, vector<8x2000xf32>, vector<8x2000xf32> -> vector<8x2000xf32>
    %26 = arith.addf %22, %25 : vector<8x2000xf32>
    %c0_21 = arith.constant 0 : index
    %c21 = arith.constant 21 : index
    %27 = vector.load %arg1[%c0_21, %c21] : memref<8x2222xf32, #tpu.memory_space<vmem>>, vector<8x2000xf32>
    %c0_22 = arith.constant 0 : index
    %c56 = arith.constant 56 : index
    %28 = vector.load %arg2[%c0_22, %c56] : memref<8x216xf32, #tpu.memory_space<vmem>>, vector<8x8xf32>
    %cst_23 = arith.constant dense<0.000000e+00> : vector<8x2000xf32>
    %29 = tpu.matmul %28, %27, %cst_23 {dimension_numbers = #tpu.dot_dimension_numbers<[1], [0], [0], [1], [0, 0, 1, 1], [], []>} : vector<8x8xf32>, vector<8x2000xf32>, vector<8x2000xf32> -> vector<8x2000xf32>
    %30 = arith.addf %26, %29 : vector<8x2000xf32>
    %c0_24 = arith.constant 0 : index
    %c22 = arith.constant 22 : index
    %31 = vector.load %arg1[%c0_24, %c22] : memref<8x2222xf32, #tpu.memory_space<vmem>>, vector<8x2000xf32>
    %c0_25 = arith.constant 0 : index
    %c64 = arith.constant 64 : index
    %32 = vector.load %arg2[%c0_25, %c64] : memref<8x216xf32, #tpu.memory_space<vmem>>, vector<8x8xf32>
    %cst_26 = arith.constant dense<0.000000e+00> : vector<8x2000xf32>
    %33 = tpu.matmul %32, %31, %cst_26 {dimension_numbers = #tpu.dot_dimension_numbers<[1], [0], [0], [1], [0, 0, 1, 1], [], []>} : vector<8x8xf32>, vector<8x2000xf32>, vector<8x2000xf32> -> vector<8x2000xf32>
    %34 = arith.addf %30, %33 : vector<8x2000xf32>
    %c0_27 = arith.constant 0 : index
    %c100 = arith.constant 100 : index
    %35 = vector.load %arg1[%c0_27, %c100] : memref<8x2222xf32, #tpu.memory_space<vmem>>, vector<8x2000xf32>
    %c0_28 = arith.constant 0 : index
    %c72 = arith.constant 72 : index
    %36 = vector.load %arg2[%c0_28, %c72] : memref<8x216xf32, #tpu.memory_space<vmem>>, vector<8x8xf32>
    %cst_29 = arith.constant dense<0.000000e+00> : vector<8x2000xf32>
    %37 = tpu.matmul %36, %35, %cst_29 {dimension_numbers = #tpu.dot_dimension_numbers<[1], [0], [0], [1], [0, 0, 1, 1], [], []>} : vector<8x8xf32>, vector<8x2000xf32>, vector<8x2000xf32> -> vector<8x2000xf32>
    %38 = arith.addf %34, %37 : vector<8x2000xf32>
    %c0_30 = arith.constant 0 : index
    %c101 = arith.constant 101 : index
    %39 = vector.load %arg1[%c0_30, %c101] : memref<8x2222xf32, #tpu.memory_space<vmem>>, vector<8x2000xf32>
    %c0_31 = arith.constant 0 : index
    %c80 = arith.constant 80 : index
    %40 = vector.load %arg2[%c0_31, %c80] : memref<8x216xf32, #tpu.memory_space<vmem>>, vector<8x8xf32>
    %cst_32 = arith.constant dense<0.000000e+00> : vector<8x2000xf32>
    %41 = tpu.matmul %40, %39, %cst_32 {dimension_numbers = #tpu.dot_dimension_numbers<[1], [0], [0], [1], [0, 0, 1, 1], [], []>} : vector<8x8xf32>, vector<8x2000xf32>, vector<8x2000xf32> -> vector<8x2000xf32>
    %42 = arith.addf %38, %41 : vector<8x2000xf32>
    %c0_33 = arith.constant 0 : index
    %c102 = arith.constant 102 : index
    %43 = vector.load %arg1[%c0_33, %c102] : memref<8x2222xf32, #tpu.memory_space<vmem>>, vector<8x2000xf32>
    %c0_34 = arith.constant 0 : index
    %c88 = arith.constant 88 : index
    %44 = vector.load %arg2[%c0_34, %c88] : memref<8x216xf32, #tpu.memory_space<vmem>>, vector<8x8xf32>
    %cst_35 = arith.constant dense<0.000000e+00> : vector<8x2000xf32>
    %45 = tpu.matmul %44, %43, %cst_35 {dimension_numbers = #tpu.dot_dimension_numbers<[1], [0], [0], [1], [0, 0, 1, 1], [], []>} : vector<8x8xf32>, vector<8x2000xf32>, vector<8x2000xf32> -> vector<8x2000xf32>
    %46 = arith.addf %42, %45 : vector<8x2000xf32>
    %c0_36 = arith.constant 0 : index
    %c110 = arith.constant 110 : index
    %47 = vector.load %arg1[%c0_36, %c110] : memref<8x2222xf32, #tpu.memory_space<vmem>>, vector<8x2000xf32>
    %c0_37 = arith.constant 0 : index
    %c96 = arith.constant 96 : index
    %48 = vector.load %arg2[%c0_37, %c96] : memref<8x216xf32, #tpu.memory_space<vmem>>, vector<8x8xf32>
    %cst_38 = arith.constant dense<0.000000e+00> : vector<8x2000xf32>
    %49 = tpu.matmul %48, %47, %cst_38 {dimension_numbers = #tpu.dot_dimension_numbers<[1], [0], [0], [1], [0, 0, 1, 1], [], []>} : vector<8x8xf32>, vector<8x2000xf32>, vector<8x2000xf32> -> vector<8x2000xf32>
    %50 = arith.addf %46, %49 : vector<8x2000xf32>
    %c0_39 = arith.constant 0 : index
    %c111 = arith.constant 111 : index
    %51 = vector.load %arg1[%c0_39, %c111] : memref<8x2222xf32, #tpu.memory_space<vmem>>, vector<8x2000xf32>
    %c0_40 = arith.constant 0 : index
    %c104 = arith.constant 104 : index
    %52 = vector.load %arg2[%c0_40, %c104] : memref<8x216xf32, #tpu.memory_space<vmem>>, vector<8x8xf32>
    %cst_41 = arith.constant dense<0.000000e+00> : vector<8x2000xf32>
    %53 = tpu.matmul %52, %51, %cst_41 {dimension_numbers = #tpu.dot_dimension_numbers<[1], [0], [0], [1], [0, 0, 1, 1], [], []>} : vector<8x8xf32>, vector<8x2000xf32>, vector<8x2000xf32> -> vector<8x2000xf32>
    %54 = arith.addf %50, %53 : vector<8x2000xf32>
    %c0_42 = arith.constant 0 : index
    %c112 = arith.constant 112 : index
    %55 = vector.load %arg1[%c0_42, %c112] : memref<8x2222xf32, #tpu.memory_space<vmem>>, vector<8x2000xf32>
    %c0_43 = arith.constant 0 : index
    %c112_44 = arith.constant 112 : index
    %56 = vector.load %arg2[%c0_43, %c112_44] : memref<8x216xf32, #tpu.memory_space<vmem>>, vector<8x8xf32>
    %cst_45 = arith.constant dense<0.000000e+00> : vector<8x2000xf32>
    %57 = tpu.matmul %56, %55, %cst_45 {dimension_numbers = #tpu.dot_dimension_numbers<[1], [0], [0], [1], [0, 0, 1, 1], [], []>} : vector<8x8xf32>, vector<8x2000xf32>, vector<8x2000xf32> -> vector<8x2000xf32>
    %58 = arith.addf %54, %57 : vector<8x2000xf32>
    %c0_46 = arith.constant 0 : index
    %c120 = arith.constant 120 : index
    %59 = vector.load %arg1[%c0_46, %c120] : memref<8x2222xf32, #tpu.memory_space<vmem>>, vector<8x2000xf32>
    %c0_47 = arith.constant 0 : index
    %c120_48 = arith.constant 120 : index
    %60 = vector.load %arg2[%c0_47, %c120_48] : memref<8x216xf32, #tpu.memory_space<vmem>>, vector<8x8xf32>
    %cst_49 = arith.constant dense<0.000000e+00> : vector<8x2000xf32>
    %61 = tpu.matmul %60, %59, %cst_49 {dimension_numbers = #tpu.dot_dimension_numbers<[1], [0], [0], [1], [0, 0, 1, 1], [], []>} : vector<8x8xf32>, vector<8x2000xf32>, vector<8x2000xf32> -> vector<8x2000xf32>
    %62 = arith.addf %58, %61 : vector<8x2000xf32>
    %c0_50 = arith.constant 0 : index
    %c121 = arith.constant 121 : index
    %63 = vector.load %arg1[%c0_50, %c121] : memref<8x2222xf32, #tpu.memory_space<vmem>>, vector<8x2000xf32>
    %c0_51 = arith.constant 0 : index
    %c128 = arith.constant 128 : index
    %64 = vector.load %arg2[%c0_51, %c128] : memref<8x216xf32, #tpu.memory_space<vmem>>, vector<8x8xf32>
    %cst_52 = arith.constant dense<0.000000e+00> : vector<8x2000xf32>
    %65 = tpu.matmul %64, %63, %cst_52 {dimension_numbers = #tpu.dot_dimension_numbers<[1], [0], [0], [1], [0, 0, 1, 1], [], []>} : vector<8x8xf32>, vector<8x2000xf32>, vector<8x2000xf32> -> vector<8x2000xf32>
    %66 = arith.addf %62, %65 : vector<8x2000xf32>
    %c0_53 = arith.constant 0 : index
    %c122 = arith.constant 122 : index
    %67 = vector.load %arg1[%c0_53, %c122] : memref<8x2222xf32, #tpu.memory_space<vmem>>, vector<8x2000xf32>
    %c0_54 = arith.constant 0 : index
    %c136 = arith.constant 136 : index
    %68 = vector.load %arg2[%c0_54, %c136] : memref<8x216xf32, #tpu.memory_space<vmem>>, vector<8x8xf32>
    %cst_55 = arith.constant dense<0.000000e+00> : vector<8x2000xf32>
    %69 = tpu.matmul %68, %67, %cst_55 {dimension_numbers = #tpu.dot_dimension_numbers<[1], [0], [0], [1], [0, 0, 1, 1], [], []>} : vector<8x8xf32>, vector<8x2000xf32>, vector<8x2000xf32> -> vector<8x2000xf32>
    %70 = arith.addf %66, %69 : vector<8x2000xf32>
    %c0_56 = arith.constant 0 : index
    %c200 = arith.constant 200 : index
    %71 = vector.load %arg1[%c0_56, %c200] : memref<8x2222xf32, #tpu.memory_space<vmem>>, vector<8x2000xf32>
    %c0_57 = arith.constant 0 : index
    %c144 = arith.constant 144 : index
    %72 = vector.load %arg2[%c0_57, %c144] : memref<8x216xf32, #tpu.memory_space<vmem>>, vector<8x8xf32>
    %cst_58 = arith.constant dense<0.000000e+00> : vector<8x2000xf32>
    %73 = tpu.matmul %72, %71, %cst_58 {dimension_numbers = #tpu.dot_dimension_numbers<[1], [0], [0], [1], [0, 0, 1, 1], [], []>} : vector<8x8xf32>, vector<8x2000xf32>, vector<8x2000xf32> -> vector<8x2000xf32>
    %74 = arith.addf %70, %73 : vector<8x2000xf32>
    %c0_59 = arith.constant 0 : index
    %c201 = arith.constant 201 : index
    %75 = vector.load %arg1[%c0_59, %c201] : memref<8x2222xf32, #tpu.memory_space<vmem>>, vector<8x2000xf32>
    %c0_60 = arith.constant 0 : index
    %c152 = arith.constant 152 : index
    %76 = vector.load %arg2[%c0_60, %c152] : memref<8x216xf32, #tpu.memory_space<vmem>>, vector<8x8xf32>
    %cst_61 = arith.constant dense<0.000000e+00> : vector<8x2000xf32>
    %77 = tpu.matmul %76, %75, %cst_61 {dimension_numbers = #tpu.dot_dimension_numbers<[1], [0], [0], [1], [0, 0, 1, 1], [], []>} : vector<8x8xf32>, vector<8x2000xf32>, vector<8x2000xf32> -> vector<8x2000xf32>
    %78 = arith.addf %74, %77 : vector<8x2000xf32>
    %c0_62 = arith.constant 0 : index
    %c202 = arith.constant 202 : index
    %79 = vector.load %arg1[%c0_62, %c202] : memref<8x2222xf32, #tpu.memory_space<vmem>>, vector<8x2000xf32>
    %c0_63 = arith.constant 0 : index
    %c160 = arith.constant 160 : index
    %80 = vector.load %arg2[%c0_63, %c160] : memref<8x216xf32, #tpu.memory_space<vmem>>, vector<8x8xf32>
    %cst_64 = arith.constant dense<0.000000e+00> : vector<8x2000xf32>
    %81 = tpu.matmul %80, %79, %cst_64 {dimension_numbers = #tpu.dot_dimension_numbers<[1], [0], [0], [1], [0, 0, 1, 1], [], []>} : vector<8x8xf32>, vector<8x2000xf32>, vector<8x2000xf32> -> vector<8x2000xf32>
    %82 = arith.addf %78, %81 : vector<8x2000xf32>
    %c0_65 = arith.constant 0 : index
    %c210 = arith.constant 210 : index
    %83 = vector.load %arg1[%c0_65, %c210] : memref<8x2222xf32, #tpu.memory_space<vmem>>, vector<8x2000xf32>
    %c0_66 = arith.constant 0 : index
    %c168 = arith.constant 168 : index
    %84 = vector.load %arg2[%c0_66, %c168] : memref<8x216xf32, #tpu.memory_space<vmem>>, vector<8x8xf32>
    %cst_67 = arith.constant dense<0.000000e+00> : vector<8x2000xf32>
    %85 = tpu.matmul %84, %83, %cst_67 {dimension_numbers = #tpu.dot_dimension_numbers<[1], [0], [0], [1], [0, 0, 1, 1], [], []>} : vector<8x8xf32>, vector<8x2000xf32>, vector<8x2000xf32> -> vector<8x2000xf32>
    %86 = arith.addf %82, %85 : vector<8x2000xf32>
    %c0_68 = arith.constant 0 : index
    %c211 = arith.constant 211 : index
    %87 = vector.load %arg1[%c0_68, %c211] : memref<8x2222xf32, #tpu.memory_space<vmem>>, vector<8x2000xf32>
    %c0_69 = arith.constant 0 : index
    %c176 = arith.constant 176 : index
    %88 = vector.load %arg2[%c0_69, %c176] : memref<8x216xf32, #tpu.memory_space<vmem>>, vector<8x8xf32>
    %cst_70 = arith.constant dense<0.000000e+00> : vector<8x2000xf32>
    %89 = tpu.matmul %88, %87, %cst_70 {dimension_numbers = #tpu.dot_dimension_numbers<[1], [0], [0], [1], [0, 0, 1, 1], [], []>} : vector<8x8xf32>, vector<8x2000xf32>, vector<8x2000xf32> -> vector<8x2000xf32>
    %90 = arith.addf %86, %89 : vector<8x2000xf32>
    %c0_71 = arith.constant 0 : index
    %c212 = arith.constant 212 : index
    %91 = vector.load %arg1[%c0_71, %c212] : memref<8x2222xf32, #tpu.memory_space<vmem>>, vector<8x2000xf32>
    %c0_72 = arith.constant 0 : index
    %c184 = arith.constant 184 : index
    %92 = vector.load %arg2[%c0_72, %c184] : memref<8x216xf32, #tpu.memory_space<vmem>>, vector<8x8xf32>
    %cst_73 = arith.constant dense<0.000000e+00> : vector<8x2000xf32>
    %93 = tpu.matmul %92, %91, %cst_73 {dimension_numbers = #tpu.dot_dimension_numbers<[1], [0], [0], [1], [0, 0, 1, 1], [], []>} : vector<8x8xf32>, vector<8x2000xf32>, vector<8x2000xf32> -> vector<8x2000xf32>
    %94 = arith.addf %90, %93 : vector<8x2000xf32>
    %c0_74 = arith.constant 0 : index
    %c220 = arith.constant 220 : index
    %95 = vector.load %arg1[%c0_74, %c220] : memref<8x2222xf32, #tpu.memory_space<vmem>>, vector<8x2000xf32>
    %c0_75 = arith.constant 0 : index
    %c192 = arith.constant 192 : index
    %96 = vector.load %arg2[%c0_75, %c192] : memref<8x216xf32, #tpu.memory_space<vmem>>, vector<8x8xf32>
    %cst_76 = arith.constant dense<0.000000e+00> : vector<8x2000xf32>
    %97 = tpu.matmul %96, %95, %cst_76 {dimension_numbers = #tpu.dot_dimension_numbers<[1], [0], [0], [1], [0, 0, 1, 1], [], []>} : vector<8x8xf32>, vector<8x2000xf32>, vector<8x2000xf32> -> vector<8x2000xf32>
    %98 = arith.addf %94, %97 : vector<8x2000xf32>
    %c0_77 = arith.constant 0 : index
    %c221 = arith.constant 221 : index
    %99 = vector.load %arg1[%c0_77, %c221] : memref<8x2222xf32, #tpu.memory_space<vmem>>, vector<8x2000xf32>
    %c0_78 = arith.constant 0 : index
    %c200_79 = arith.constant 200 : index
    %100 = vector.load %arg2[%c0_78, %c200_79] : memref<8x216xf32, #tpu.memory_space<vmem>>, vector<8x8xf32>
    %cst_80 = arith.constant dense<0.000000e+00> : vector<8x2000xf32>
    %101 = tpu.matmul %100, %99, %cst_80 {dimension_numbers = #tpu.dot_dimension_numbers<[1], [0], [0], [1], [0, 0, 1, 1], [], []>} : vector<8x8xf32>, vector<8x2000xf32>, vector<8x2000xf32> -> vector<8x2000xf32>
    %102 = arith.addf %98, %101 : vector<8x2000xf32>
    %c0_81 = arith.constant 0 : index
    %c222 = arith.constant 222 : index
    %103 = vector.load %arg1[%c0_81, %c222] : memref<8x2222xf32, #tpu.memory_space<vmem>>, vector<8x2000xf32>
    %c0_82 = arith.constant 0 : index
    %c208 = arith.constant 208 : index
    %104 = vector.load %arg2[%c0_82, %c208] : memref<8x216xf32, #tpu.memory_space<vmem>>, vector<8x8xf32>
    %cst_83 = arith.constant dense<0.000000e+00> : vector<8x2000xf32>
    %105 = tpu.matmul %104, %103, %cst_83 {dimension_numbers = #tpu.dot_dimension_numbers<[1], [0], [0], [1], [0, 0, 1, 1], [], []>} : vector<8x8xf32>, vector<8x2000xf32>, vector<8x2000xf32> -> vector<8x2000xf32>
    %106 = arith.addf %102, %105 : vector<8x2000xf32>
    %cst_84 = arith.constant 0.000000e+00 : f32
    %107 = vector.broadcast %cst_84 : f32 to vector<8x2000xf32>
    %108 = arith.maximumf %106, %107 : vector<8x2000xf32>
    %c0_85 = arith.constant 0 : index
    %c0_86 = arith.constant 0 : index
    %109 = vector.load %arg3[%c0_85, %c0_86] : memref<8x2000xf32, #tpu.memory_space<vmem>>, vector<8x2000xf32>
    tpu.vector_store %arg3[%c0_85, %c0_86], %108 {strides = array<i32>} : memref<8x2000xf32, #tpu.memory_space<vmem>>, vector<8x2000xf32>,
    return
  }
  func.func @transform_0(%arg0: i32) -> (i32, i32) {
    %c0_i32 = arith.constant 0 : i32
    %c0_i32_0 = arith.constant 0 : i32
    %c0_i32_1 = arith.constant 0 : i32
    return %c0_i32, %c0_i32_0 : i32, i32
  }
  func.func @transform_1(%arg0: i32) -> (i32, i32) {
    %c0_i32 = arith.constant 0 : i32
    %c0_i32_0 = arith.constant 0 : i32
    %c0_i32_1 = arith.constant 0 : i32
    return %c0_i32, %c0_i32_0 : i32, i32
  }
  func.func @transform_2(%arg0: i32) -> (i32, i32) {
    %c0_i32 = arith.constant 0 : i32
    %c0_i32_0 = arith.constant 0 : i32
    %c0_i32_1 = arith.constant 0 : i32
    return %c0_i32, %c0_i32_0 : i32, i32
  }
}

</mosaic_0001>

<bundles_post_ra>
// kernel: tpu_custom_call.1
= control target key start
LH: loop header
LB: loop body
LE: loop exit
PB: predicated region body
PF: predicated region fallthrough
CT: control target
= control target key end

     0   :  { %7 = vsyncpa [#allocation3], 0  ;;  %s21542_s0 = inlined_call_operand.hbm [shape: f32[8,2222], index: 0, kind: input, shape index: {}]   ;;  %s21543_s1 = inlined_call_operand.hbm [shape: f32[8,216], index: 1, kind: input, shape index: {}]   ;;  %s21544_s2 = inlined_call_operand.hbm [shape: f32[8,2000], index: 2, kind: output, shape index: {}]  }
   0x1   :  { %8 = vsyncpa [#allocation6], 0 }
   0x2   :  { %9 = vsyncpa [#allocation4], 0  ;;  %s18112_s9 = smov [#allocation2]   ;;  %s18113_s11 = smov [#allocation5]  }
   0x3   :  { %s16_s10 = sshll.u32 %s18112_s9, 4  ;;  %s26_s12 = sshll.u32 %s18113_s11, 4  ;;  %s17_s10 = int_to_ptr.vmem [resolvable:$true] %s16_s10  ;;  %s27_s12 = int_to_ptr.vmem [resolvable:$true] %s26_s12 }
   0x4   :  { %s18054_s13 = scalar_lea.vmem %s17_s10, 2304  ;;  %p18059_p1 = scmp.lt.s32.totalorder %s17_s10, %s17_s10 }
   0x5   :  { %p18055_p0 = scmp.ne.s32.totalorder %s17_s10, %s18054_s13  ;;  %p18060_p2 = scmp.lt.s32.totalorder %s18054_s13, %s18054_s13 }
   0x7   :  { %p18061_p3 = por %p18060_p2, %p18059_p1 }
   0x9   :  { %p18062_p4 = pnand %p18061_p3, %p18055_p0 }
   0xb   :  { %18065 = shalt.err (!%p18062_p4)
}
   0xc   :  { %19 = dma.hbm_to_vmem [thread:$0]  %s21542_s0, 2304, %s17_s10, [#allocation3]  }
   0xd   :  { %s18074_s16 = scalar_lea.vmem %s27_s12, 256  ;;  %p18079_p6 = scmp.lt.s32.totalorder %s27_s12, %s27_s12 }
   0xe   :  { %p18075_p5 = scmp.ne.s32.totalorder %s27_s12, %s18074_s16  ;;  %p18080_p7 = scmp.lt.s32.totalorder %s18074_s16, %s18074_s16 }
  0x10   :  { %p18081_p8 = por %p18080_p7, %p18079_p6 }
  0x12   :  { %p18082_p9 = pnand %p18081_p8, %p18075_p5 }
  0x14   :  { %18085 = shalt.err (!%p18082_p9)
}
  0x15   :  { %29 = dma.hbm_to_vmem [thread:$0]  %s21543_s1, 256, %s27_s12, [#allocation6]  }
  0x16   :  { %18106 = dma.done.wait [#allocation3], 2304  }
  0x17   :  { %18107 = vsyncadd [#allocation3], 4294964992 }
  0x18   :  { %18108 = dma.done.wait [#allocation6], 256  }
  0x19   :  { %18109 = vsyncadd [#allocation6], 4294967040  ;;  %v21545_v0 = vmov 0.0   ;;  %v18177_v1 = vld [vmem:[#allocation5] sm:$0xff]  ;;  %v18179_v2 = vld [vmem:[#allocation2 + $0x8] sm:$0xff]  ;;  %s18115_s0 = smov 120  }
  0x1a   :  { %203 = vmatprep.mubr.f32.mxu0 %v21545_v0  ;;  %274 = vmatprep.mubr.f32.mxu1 %v21545_v0  ;;  %s18116_s19 = smov 127   ;;  %v18185_v3 = vld [vmem:[#allocation2 + $0x10] sm:$0xff]  ;;  %v18187_v4 = vld [vmem:[#allocation2] sm:$0xff]  ;;  %v18195_v6 = vld [vmem:[#allocation2 + $0x18] sm:$0xff]  ;;  %s18117_s1 = smov 112   ;;  %vm104_vm0 = vcmask 1039360  }
  0x1b   :  { %54 = vrot.lane.b32.xlu0 %v18177_v1, %s18115_s0  ;;  %74 = vrot.lane.b32.xlu1 %v18179_v2, %s18116_s19  ;;  %v18193_v5 = vld [vmem:[#allocation2 + $0x20] sm:$0xff]  ;;  %v18201_v7 = vld [vmem:[#allocation2 + $0x30] sm:$0xff]  ;;  %v18203_v8 = vld [vmem:[#allocation2 + $0x28] sm:$0xff]  ;;  %s18118_s20 = smov 126   ;;  %s18119_s21 = smov 118   ;;  %vm136_vm1 = vcmask 64512  }
  0x1c   :  { %v18209_v9 = vld [vmem:[#allocation2 + $0x40] sm:$0xff]  ;;  %v18211_v10 = vld [vmem:[#allocation2 + $0x38] sm:$0xff]  ;;  %v18217_v11 = vld [vmem:[#allocation2 + $0x50] sm:$0xff]  ;;  %s18120_s22 = smov 104   ;;  %s18121_s23 = smov 96   ;;  %vm1311_vm2 = vcmask 1031168  }
  0x1d   :  { %v18219_v12 = vld [vmem:[#allocation2 + $0x48] sm:$0xff]  ;;  %v18225_v13 = vld [vmem:[#allocation2 + $0x60] sm:$0xff]  ;;  %v18227_v14 = vld [vmem:[#allocation2 + $0x58] sm:$0xff]  ;;  %s18122_s24 = smov 117   ;;  %s18123_s25 = smov 116   ;;  %vm1963_vm3 = vcmask 965632  }
  0x1e   :  { %v18233_v15 = vld [vmem:[#allocation2 + $0x70] sm:$0xff]  ;;  %v18235_v16 = vld [vmem:[#allocation2 + $0x68] sm:$0xff]  ;;  %v18241_v17 = vld [vmem:[#allocation2 + $0x78] sm:$0xff]  ;;  %s18124_s26 = smov 88   ;;  %s18125_s27 = smov 80   ;;  %vm2615_vm4 = vcmask 957440  }
  0x1f   :  { %76 = vrot.lane.b32.xlu1 %v18185_v3, %s18116_s19  ;;  %72 = vrot.lane.b32.xlu0 %v18187_v4, %s18116_s19  ;;  %s18126_s28 = smov 108   ;;  %s18127_s29 = smov 107   ;;  %vm3267_vm5 = vcmask 949248   ;;  %vm3919_vm6 = vcmask 883712   ;;  %vm4571_vm7 = vcmask 875520   ;;  %vm5223_vm8 = vcmask 867328  }
  0x20   :  { %s18128_s30 = smov 72   ;;  %s18129_s3 = smov 64   ;;  %vm5911_vm9 = vcmask 228352   ;;  %vm6566_vm10 = vcmask 220160   ;;  %vm7221_vm11 = vcmask 211968   ;;  %vm7876_vm12 = vcmask 146432  }
  0x21   :  { %s18130_s4 = smov 106   ;;  %s18131_s5 = smov 28   ;;  %vm8531_vm13 = vcmask 138240   ;;  %vm9186_vm14 = vcmask 130048   ;;  %vm10494_vm15 = vcmask 56320  }
  0x22   :  { %s18132_s6 = smov 56   ;;  %s18133_s7 = smov 27  }
  0x23   :  { %80 = vrot.lane.b32.xlu1 %v18193_v5, %s18116_s19  ;;  %78 = vrot.lane.b32.xlu0 %v18195_v6, %s18116_s19  ;;  %s18134_s8 = smov 48   ;;  %s18135_s9 = smov 26  }
  0x24   :  { %s18136_s10 = smov 40   ;;  %s18137_s11 = smov 18  }
  0x25   :  { %s18138_s12 = smov 32   ;;  %s18139_s13 = smov 17  }
  0x26   :  { %s18140_s14 = smov 24   ;;  %s18141_s15 = smov 16  }
  0x27   :  { %84 = vrot.lane.b32.xlu1 %v18201_v7, %s18116_s19  ;;  %82 = vrot.lane.b32.xlu0 %v18203_v8, %s18116_s19  ;;  %s18142_s16 = smov 8   ;;  %s18143_s17 = smov 7  }
  0x28   :  { %s18144_s18 = smov 6  }
  0x2b   :  { %88 = vrot.lane.b32.xlu1 %v18209_v9, %s18116_s19  ;;  %86 = vrot.lane.b32.xlu0 %v18211_v10, %s18116_s19 }
  0x2f   :  { %92 = vrot.lane.b32.xlu1 %v18217_v11, %s18116_s19  ;;  %90 = vrot.lane.b32.xlu0 %v18219_v12, %s18116_s19 }
  0x33   :  { %96 = vrot.lane.b32.xlu1 %v18225_v13, %s18116_s19  ;;  %94 = vrot.lane.b32.xlu0 %v18227_v14, %s18116_s19 }
  0x37   :  { %100 = vrot.lane.b32.xlu1 %v18233_v15, %s18116_s19  ;;  %98 = vrot.lane.b32.xlu0 %v18235_v16, %s18116_s19 }
  0x3b   :  { %1277 = vrot.lane.b32.xlu1 %v18177_v1, %s18117_s1  ;;  %102 = vrot.lane.b32.xlu0 %v18241_v17, %s18116_s19  ;;  %s18146_s19 = smov 54  }
  0x3f   :  { %1281 = vrot.lane.b32.xlu1 %v18179_v2, %s18118_s20  ;;  %1279 = vrot.lane.b32.xlu0 %v18187_v4, %s18118_s20 }
  0x43   :  { %1285 = vrot.lane.b32.xlu1 %v18195_v6, %s18118_s20  ;;  %1283 = vrot.lane.b32.xlu0 %v18185_v3, %s18118_s20 }
  0x47   :  { %1289 = vrot.lane.b32.xlu1 %v18203_v8, %s18118_s20  ;;  %1287 = vrot.lane.b32.xlu0 %v18193_v5, %s18118_s20 }
  0x4b   :  { %1293 = vrot.lane.b32.xlu1 %v18211_v10, %s18118_s20  ;;  %1291 = vrot.lane.b32.xlu0 %v18201_v7, %s18118_s20 }
  0x4f   :  { %1297 = vrot.lane.b32.xlu1 %v18219_v12, %s18118_s20  ;;  %1295 = vrot.lane.b32.xlu0 %v18209_v9, %s18118_s20 }
  0x53   :  { %1301 = vrot.lane.b32.xlu1 %v18227_v14, %s18118_s20  ;;  %1299 = vrot.lane.b32.xlu0 %v18217_v11, %s18118_s20 }
  0x57   :  { %1305 = vrot.lane.b32.xlu1 %v18235_v16, %s18118_s20  ;;  %1303 = vrot.lane.b32.xlu0 %v18225_v13, %s18118_s20 }
  0x5b   :  { %1309 = vrot.lane.b32.xlu1 %v18241_v17, %s18118_s20  ;;  %1307 = vrot.lane.b32.xlu0 %v18233_v15, %s18118_s20  ;;  %s18148_s20 = smov 45  }
  0x5f   :  { %1931 = vrot.lane.b32.xlu1 %v18187_v4, %s18119_s21  ;;  %1929 = vrot.lane.b32.xlu0 %v18177_v1, %s18120_s22 }
  0x63   :  { %1935 = vrot.lane.b32.xlu1 %v18185_v3, %s18119_s21  ;;  %1933 = vrot.lane.b32.xlu0 %v18179_v2, %s18119_s21 }
  0x67   :  { %1939 = vrot.lane.b32.xlu1 %v18193_v5, %s18119_s21  ;;  %1937 = vrot.lane.b32.xlu0 %v18195_v6, %s18119_s21 }
  0x6b   :  { %1943 = vrot.lane.b32.xlu1 %v18201_v7, %s18119_s21  ;;  %1941 = vrot.lane.b32.xlu0 %v18203_v8, %s18119_s21 }
  0x6f   :  { %1947 = vrot.lane.b32.xlu1 %v18209_v9, %s18119_s21  ;;  %1945 = vrot.lane.b32.xlu0 %v18211_v10, %s18119_s21 }
  0x73   :  { %1951 = vrot.lane.b32.xlu1 %v18217_v11, %s18119_s21  ;;  %1949 = vrot.lane.b32.xlu0 %v18219_v12, %s18119_s21 }
  0x77   :  { %1955 = vrot.lane.b32.xlu1 %v18225_v13, %s18119_s21  ;;  %1953 = vrot.lane.b32.xlu0 %v18227_v14, %s18119_s21 }
  0x7b   :  { %1959 = vrot.lane.b32.xlu1 %v18233_v15, %s18119_s21  ;;  %1957 = vrot.lane.b32.xlu0 %v18235_v16, %s18119_s21 }
  0x7f   :  { %2581 = vrot.lane.b32.xlu1 %v18177_v1, %s18121_s23  ;;  %1961 = vrot.lane.b32.xlu0 %v18241_v17, %s18119_s21  ;;  %s18149_s21 = smov 44  }
  0x83   :  { %2585 = vrot.lane.b32.xlu1 %v18179_v2, %s18122_s24  ;;  %2583 = vrot.lane.b32.xlu0 %v18187_v4, %s18122_s24 }
  0x87   :  { %2589 = vrot.lane.b32.xlu1 %v18195_v6, %s18122_s24  ;;  %2587 = vrot.lane.b32.xlu0 %v18185_v3, %s18122_s24 }
  0x8b   :  { %2593 = vrot.lane.b32.xlu1 %v18203_v8, %s18122_s24  ;;  %2591 = vrot.lane.b32.xlu0 %v18193_v5, %s18122_s24 }
  0x8d   :  { %v18295_v18 = vpop.permute.xlu0 %54  ;;  %v75_v19 = vpop.permute.xlu1 %74 }
  0x8f   :  { %2597 = vrot.lane.b32.xlu1 %v18211_v10, %s18122_s24  ;;  %2595 = vrot.lane.b32.xlu0 %v18201_v7, %s18122_s24 }
  0x91   :  { %v77_v20 = vpop.permute.xlu1 %76  ;;  %v73_v21 = vpop.permute.xlu0 %72 }
  0x92   :  { %v106_v22 = vsel %vm104_vm0, %v75_v19, %v77_v20  ;;  %v105_v23 = vsel %vm104_vm0, %v73_v21, %v75_v19 }
  0x93   :  { %169 = vmatprep.subr.mxu0 %v106_v22  ;;  %2601 = vrot.lane.b32.xlu1 %v18219_v12, %s18122_s24 }
  0x94   :  { %2599 = vrot.lane.b32.xlu0 %v18209_v9, %s18122_s24  ;;  %170 = vmatpush1.msra.mxu0 %v105_v23 }
  0x95   :  { %v81_v24 = vpop.permute.xlu1 %80  ;;  %17747 = vmatmul.mubr.msk.f32.vlgmr.msra.gmra.mxu0 %vm136_vm1, %v18295_v18  ;;  %v79_v25 = vpop.permute.xlu0 %78 }
  0x96   :  { %v108_v26 = vsel %vm104_vm0, %v79_v25, %v81_v24  ;;  %v107_v27 = vsel %vm104_vm0, %v77_v20, %v79_v25  ;;  %345 = vmatprep.mubr.f32.mxu0 %v21545_v0 }
  0x97   :  { %2605 = vrot.lane.b32.xlu1 %v18227_v14, %s18122_s24  ;;  %240 = vmatprep.subr.mxu1 %v108_v26 }
  0x98   :  { %2603 = vrot.lane.b32.xlu0 %v18217_v11, %s18122_s24  ;;  %241 = vmatpush1.msra.mxu1 %v107_v27 }
  0x99   :  { %v85_v28 = vpop.permute.xlu1 %84  ;;  %17748 = vmatmul.mubr.msk.f32.vlgmr.msra.gmra.mxu1 %vm136_vm1, %v18295_v18  ;;  %v83_v29 = vpop.permute.xlu0 %82 }
  0x9a   :  { %v110_v30 = vsel %vm104_vm0, %v83_v29, %v85_v28  ;;  %v109_v31 = vsel %vm104_vm0, %v81_v24, %v83_v29  ;;  %416 = vmatprep.mubr.f32.mxu1 %v21545_v0 }
  0x9b   :  { %2609 = vrot.lane.b32.xlu1 %v18235_v16, %s18122_s24  ;;  %311 = vmatprep.subr.mxu0 %v110_v30 }
  0x9c   :  { %2607 = vrot.lane.b32.xlu0 %v18225_v13, %s18122_s24  ;;  %312 = vmatpush1.msra.mxu0 %v109_v31 }
  0x9d   :  { %v89_v32 = vpop.permute.xlu1 %88  ;;  %17749 = vmatmul.mubr.msk.f32.vlgmr.msra.gmra.mxu0 %vm136_vm1, %v18295_v18  ;;  %v87_v33 = vpop.permute.xlu0 %86 }
  0x9e   :  { %v112_v34 = vsel %vm104_vm0, %v87_v33, %v89_v32  ;;  %v111_v35 = vsel %vm104_vm0, %v85_v28, %v87_v33  ;;  %487 = vmatprep.mubr.f32.mxu0 %v21545_v0 }
  0x9f   :  { %2613 = vrot.lane.b32.xlu1 %v18241_v17, %s18122_s24  ;;  %382 = vmatprep.subr.mxu1 %v112_v34 }
  0xa0   :  { %2611 = vrot.lane.b32.xlu0 %v18233_v15, %s18122_s24  ;;  %383 = vmatpush1.msra.mxu1 %v111_v35  ;;  %s18152_s24 = smov 34  }
  0xa1   :  { %v93_v36 = vpop.permute.xlu1 %92  ;;  %17750 = vmatmul.mubr.msk.f32.vlgmr.msra.gmra.mxu1 %vm136_vm1, %v18295_v18  ;;  %v91_v37 = vpop.permute.xlu0 %90 }
  0xa2   :  { %v114_v38 = vsel %vm104_vm0, %v91_v37, %v93_v36  ;;  %v113_v39 = vsel %vm104_vm0, %v89_v32, %v91_v37  ;;  %558 = vmatprep.mubr.f32.mxu1 %v21545_v0 }
  0xa3   :  { %3235 = vrot.lane.b32.xlu1 %v18187_v4, %s18123_s25  ;;  %453 = vmatprep.subr.mxu0 %v114_v38 }
  0xa4   :  { %3233 = vrot.lane.b32.xlu0 %v18177_v1, %s18124_s26  ;;  %454 = vmatpush1.msra.mxu0 %v113_v39 }
  0xa5   :  { %v97_v40 = vpop.permute.xlu1 %96  ;;  %17751 = vmatmul.mubr.msk.f32.vlgmr.msra.gmra.mxu0 %vm136_vm1, %v18295_v18  ;;  %v95_v41 = vpop.permute.xlu0 %94 }
  0xa6   :  { %v116_v42 = vsel %vm104_vm0, %v95_v41, %v97_v40  ;;  %v115_v43 = vsel %vm104_vm0, %v93_v36, %v95_v41  ;;  %629 = vmatprep.mubr.f32.mxu0 %v21545_v0 }
  0xa7   :  { %3239 = vrot.lane.b32.xlu1 %v18185_v3, %s18123_s25  ;;  %524 = vmatprep.subr.mxu1 %v116_v42 }
  0xa8   :  { %3237 = vrot.lane.b32.xlu0 %v18179_v2, %s18123_s25  ;;  %525 = vmatpush1.msra.mxu1 %v115_v43 }
  0xa9   :  { %v101_v44 = vpop.permute.xlu1 %100  ;;  %17752 = vmatmul.mubr.msk.f32.vlgmr.msra.gmra.mxu1 %vm136_vm1, %v18295_v18  ;;  %v99_v45 = vpop.permute.xlu0 %98 }
  0xaa   :  { %v118_v46 = vsel %vm104_vm0, %v99_v45, %v101_v44  ;;  %v117_v47 = vsel %vm104_vm0, %v97_v40, %v99_v45  ;;  %700 = vmatprep.mubr.f32.mxu1 %v21545_v0 }
  0xab   :  { %3243 = vrot.lane.b32.xlu1 %v18193_v5, %s18123_s25  ;;  %595 = vmatprep.subr.mxu0 %v118_v46 }
  0xac   :  { %3241 = vrot.lane.b32.xlu0 %v18195_v6, %s18123_s25  ;;  %596 = vmatpush1.msra.mxu0 %v117_v47 }
  0xad   :  { %v18361_v48 = vpop.permute.xlu1 %1277  ;;  %17753 = vmatmul.mubr.msk.f32.vlgmr.msra.gmra.mxu0 %vm136_vm1, %v18295_v18  ;;  %v103_v49 = vpop.permute.xlu0 %102  ;;  %739 = vmatprep.subr.mxu0 %v18179_v2 }
  0xae   :  { %666 = vmatprep.subr.mxu1 %v103_v49  ;;  %v119_v50 = vsel %vm104_vm0, %v101_v44, %v103_v49  ;;  %740 = vmatpush1.msra.mxu0 %v18187_v4  ;;  %vm11150_vm0 = vcmask 48128  }
  0xaf   :  { %3247 = vrot.lane.b32.xlu1 %v18201_v7, %s18123_s25  ;;  %667 = vmatpush1.msra.mxu1 %v119_v50 }
  0xb0   :  { %3245 = vrot.lane.b32.xlu0 %v18203_v8, %s18123_s25  ;;  %17754 = vmatmul.mubr.msk.f32.vlgmr.msra.gmra.mxu1 %vm136_vm1, %v18295_v18 }
  0xb1   :  { %773 = vmatprep.mubr.f32.mxu0 %v21545_v0  ;;  %v1282_v51 = vpop.permute.xlu1 %1281  ;;  %v1280_v52 = vpop.permute.xlu0 %1279  ;;  %810 = vmatprep.subr.mxu1 %v18195_v6 }
  0xb2   :  { %17755 = vmatmul.mubr.msk.f32.vlgmr.msra.gmra.mxu0 %vm136_vm1, %v18177_v1  ;;  %811 = vmatpush1.msra.mxu1 %v18185_v3  ;;  %v1312_v63 = vsel %vm1311_vm2, %v1280_v52, %v1282_v51 }
  0xb3   :  { %3251 = vrot.lane.b32.xlu1 %v18209_v9, %s18123_s25  ;;  %844 = vmatprep.mubr.f32.mxu1 %v21545_v0 }
  0xb4   :  { %3249 = vrot.lane.b32.xlu0 %v18211_v10, %s18123_s25  ;;  %881 = vmatprep.subr.mxu0 %v18203_v8 }
  0xb5   :  { %17756 = vmatmul.mubr.msk.f32.vlgmr.msra.gmra.mxu1 %vm136_vm1, %v18177_v1  ;;  %882 = vmatpush1.msra.mxu0 %v18193_v5  ;;  %v1286_v53 = vpop.permute.xlu1 %1285  ;;  %v1284_v54 = vpop.permute.xlu0 %1283 }
  0xb6   :  { %915 = vmatprep.mubr.f32.mxu0 %v21545_v0  ;;  %952 = vmatprep.subr.mxu1 %v18211_v10  ;;  %v1313_v57 = vsel %vm1311_vm2, %v1282_v51, %v1284_v54  ;;  %v1314_v19 = vsel %vm1311_vm2, %v1284_v54, %v1286_v53 }
  0xb7   :  { %17757 = vmatmul.mubr.msk.f32.vlgmr.msra.gmra.mxu0 %vm136_vm1, %v18177_v1  ;;  %1023 = vmatprep.subr.mxu0 %v18219_v12 }
  0xb8   :  { %3255 = vrot.lane.b32.xlu1 %v18217_v11, %s18123_s25  ;;  %3253 = vrot.lane.b32.xlu0 %v18219_v12, %s18123_s25 }
  0xb9   :  { %953 = vmatpush1.msra.mxu1 %v18201_v7  ;;  %986 = vmatprep.mubr.f32.mxu1 %v21545_v0  ;;  %v1290_v55 = vpop.permute.xlu1 %1289  ;;  %v1288_v56 = vpop.permute.xlu0 %1287 }
  0xba   :  { %1024 = vmatpush1.msra.mxu0 %v18209_v9  ;;  %17758 = vmatmul.mubr.msk.f32.vlgmr.msra.gmra.mxu1 %vm136_vm1, %v18177_v1  ;;  %v1315_v60 = vsel %vm1311_vm2, %v1286_v53, %v1288_v56  ;;  %v1316_v23 = vsel %vm1311_vm2, %v1288_v56, %v1290_v55 }
  0xbb   :  { %1057 = vmatprep.mubr.f32.mxu0 %v21545_v0  ;;  %1165 = vmatprep.subr.mxu0 %v18235_v16 }
  0xbc   :  { %17759 = vmatmul.mubr.msk.f32.vlgmr.msra.gmra.mxu0 %vm136_vm1, %v18177_v1  ;;  %1094 = vmatprep.subr.mxu1 %v18227_v14 }
  0xbd   :  { %1166 = vmatpush1.msra.mxu0 %v18225_v13  ;;  %1095 = vmatpush1.msra.mxu1 %v18217_v11  ;;  %v1294_v58 = vpop.permute.xlu1 %1293  ;;  %v1292_v59 = vpop.permute.xlu0 %1291 }
  0xbe   :  { %1375 = vmatprep.subr.mxu0 %v1313_v57  ;;  %3259 = vrot.lane.b32.xlu1 %v18225_v13, %s18123_s25  ;;  %v1317_v18 = vsel %vm1311_vm2, %v1290_v55, %v1292_v59  ;;  %v1318_v26 = vsel %vm1311_vm2, %v1292_v59, %v1294_v58 }
  0xbf   :  { %3257 = vrot.lane.b32.xlu0 %v18227_v14, %s18123_s25  ;;  %1128 = vmatprep.mubr.f32.mxu1 %v21545_v0 }
  0xc0   :  { %1236 = vmatprep.subr.mxu1 %v18241_v17  ;;  %17760 = vmatmul.mubr.msk.f32.vlgmr.msra.gmra.mxu1 %vm136_vm1, %v18177_v1 }
  0xc1   :  { %1199 = vmatprep.mubr.f32.mxu0 %v21545_v0  ;;  %1237 = vmatpush1.msra.mxu1 %v18233_v15  ;;  %v1298_v61 = vpop.permute.xlu1 %1297  ;;  %v1296_v62 = vpop.permute.xlu0 %1295 }
  0xc2   :  { %17761 = vmatmul.mubr.msk.f32.vlgmr.msra.gmra.mxu0 %vm136_vm1, %v18177_v1  ;;  %1446 = vmatprep.subr.mxu1 %v1315_v60  ;;  %v1319_v22 = vsel %vm1311_vm2, %v1294_v58, %v1296_v62  ;;  %v1320_v29 = vsel %vm1311_vm2, %v1296_v62, %v1298_v61 }
  0xc3   :  { %1376 = vmatpush1.msra.mxu0 %v1312_v63  ;;  %3263 = vrot.lane.b32.xlu1 %v18233_v15, %s18123_s25 }
  0xc4   :  { %3261 = vrot.lane.b32.xlu0 %v18235_v16, %s18123_s25  ;;  %1270 = vmatprep.mubr.f32.mxu1 %v21545_v0 }
  0xc5   :  { %1517 = vmatprep.subr.mxu0 %v1317_v18  ;;  %17762 = vmatmul.mubr.msk.f32.vlgmr.msra.gmra.mxu1 %vm136_vm1, %v18177_v1  ;;  %v1302_v20 = vpop.permute.xlu1 %1301  ;;  %v1300_v21 = vpop.permute.xlu0 %1299 }
  0xc6   :  { %1409 = vmatprep.mubr.f32.mxu0 %v21545_v0  ;;  %1447 = vmatpush1.msra.mxu1 %v1314_v19  ;;  %v1321_v27 = vsel %vm1311_vm2, %v1298_v61, %v1300_v21  ;;  %v1322_v32 = vsel %vm1311_vm2, %v1300_v21, %v1302_v20 }
  0xc7   :  { %17763 = vmatmul.mubr.msk.f32.vlgmr.msra.gmra.mxu0 %vm136_vm1, %v18361_v48  ;;  %3885 = vrot.lane.b32.xlu1 %v18177_v1, %s18125_s27 }
  0xc8   :  { %1518 = vmatpush1.msra.mxu0 %v1316_v23  ;;  %3265 = vrot.lane.b32.xlu0 %v18241_v17, %s18123_s25  ;;  %s18153_s25 = smov [#allocation7]  }
  0xc9   :  { %1480 = vmatprep.mubr.f32.mxu1 %v21545_v0  ;;  %1588 = vmatprep.subr.mxu1 %v1319_v22  ;;  %v1306_v24 = vpop.permute.xlu1 %1305  ;;  %v1304_v25 = vpop.permute.xlu0 %1303 }
  0xca   :  { %17764 = vmatmul.mubr.msk.f32.vlgmr.msra.gmra.mxu1 %vm136_vm1, %v18361_v48  ;;  %1551 = vmatprep.mubr.f32.mxu0 %v21545_v0  ;;  %v1323_v28 = vsel %vm1311_vm2, %v1302_v20, %v1304_v25  ;;  %v1324_v37 = vsel %vm1311_vm2, %v1304_v25, %v1306_v24 }
  0xcb   :  { %1589 = vmatpush1.msra.mxu1 %v1318_v26  ;;  %17765 = vmatmul.mubr.msk.f32.vlgmr.msra.gmra.mxu0 %vm136_vm1, %v18361_v48 }
  0xcc   :  { %3889 = vrot.lane.b32.xlu1 %v18179_v2, %s18126_s28  ;;  %3887 = vrot.lane.b32.xlu0 %v18187_v4, %s18126_s28 }
  0xcd   :  { %1622 = vmatprep.mubr.f32.mxu1 %v21545_v0  ;;  %1659 = vmatprep.subr.mxu0 %v1321_v27  ;;  %v1310_v30 = vpop.permute.xlu1 %1309  ;;  %v1308_v31 = vpop.permute.xlu0 %1307 }
  0xce   :  { %17766 = vmatmul.mubr.msk.f32.vlgmr.msra.gmra.mxu1 %vm136_vm1, %v18361_v48  ;;  %1660 = vmatpush1.msra.mxu0 %v1320_v29  ;;  %v1325_v33 = vsel %vm1311_vm2, %v1306_v24, %v1308_v31  ;;  %v1326_v34 = vsel %vm1311_vm2, %v1308_v31, %v1310_v30  ;;  %vm11839_vm2 = vcmask 457728  }
  0xcf   :  { %1693 = vmatprep.mubr.f32.mxu0 %v21545_v0  ;;  %1730 = vmatprep.subr.mxu1 %v1323_v28 }
  0xd0   :  { %17767 = vmatmul.mubr.msk.f32.vlgmr.msra.gmra.mxu0 %vm136_vm1, %v18361_v48  ;;  %3893 = vrot.lane.b32.xlu1 %v18195_v6, %s18126_s28 }
  0xd1   :  { %3891 = vrot.lane.b32.xlu0 %v18185_v3, %s18126_s28  ;;  %1731 = vmatpush1.msra.mxu1 %v1322_v32  ;;  %v1932_v35 = vpop.permute.xlu1 %1931  ;;  %v18469_v36 = vpop.permute.xlu0 %1929 }
  0xd2   :  { %1764 = vmatprep.mubr.f32.mxu1 %v21545_v0  ;;  %1872 = vmatprep.subr.mxu1 %v1310_v30 }
  0xd3   :  { %17768 = vmatmul.mubr.msk.f32.vlgmr.msra.gmra.mxu1 %vm136_vm1, %v18361_v48  ;;  %1801 = vmatprep.subr.mxu0 %v1325_v33 }
  0xd4   :  { %3897 = vrot.lane.b32.xlu1 %v18203_v8, %s18126_s28  ;;  %1873 = vmatpush1.msra.mxu1 %v1326_v34 }
  0xd5   :  { %3895 = vrot.lane.b32.xlu0 %v18193_v5, %s18126_s28  ;;  %1802 = vmatpush1.msra.mxu0 %v1324_v37  ;;  %v1936_v38 = vpop.permute.xlu1 %1935  ;;  %v1934_v39 = vpop.permute.xlu0 %1933 }
  0xd6   :  { %1835 = vmatprep.mubr.f32.mxu0 %v21545_v0  ;;  %1906 = vmatprep.mubr.f32.mxu1 %v21545_v0  ;;  %v1965_v40 = vsel %vm1963_vm3, %v1934_v39, %v1936_v38  ;;  %v1964_v41 = vsel %vm1963_vm3, %v1932_v35, %v1934_v39 }
  0xd7   :  { %17769 = vmatmul.mubr.msk.f32.vlgmr.msra.gmra.mxu0 %vm136_vm1, %v18361_v48  ;;  %17770 = vmatmul.mubr.msk.f32.vlgmr.msra.gmra.mxu1 %vm136_vm1, %v18361_v48 }
  0xd8   :  { %3901 = vrot.lane.b32.xlu1 %v18211_v10, %s18126_s28  ;;  %2027 = vmatprep.subr.mxu0 %v1965_v40 }
  0xd9   :  { %3899 = vrot.lane.b32.xlu0 %v18201_v7, %s18126_s28  ;;  %2028 = vmatpush1.msra.mxu0 %v1964_v41  ;;  %v1940_v42 = vpop.permute.xlu1 %1939  ;;  %v1938_v43 = vpop.permute.xlu0 %1937 }
  0xda   :  { %2061 = vmatprep.mubr.f32.mxu0 %v21545_v0  ;;  %v1967_v44 = vsel %vm1963_vm3, %v1938_v43, %v1940_v42  ;;  %v1966_v45 = vsel %vm1963_vm3, %v1936_v38, %v1938_v43  ;;  %2132 = vmatprep.mubr.f32.mxu1 %v21545_v0 }
  0xdb   :  { %17771 = vmatmul.mubr.msk.f32.vlgmr.msra.gmra.mxu0 %vm136_vm1, %v18469_v36  ;;  %2098 = vmatprep.subr.mxu1 %v1967_v44 }
  0xdc   :  { %3905 = vrot.lane.b32.xlu1 %v18219_v12, %s18126_s28  ;;  %2099 = vmatpush1.msra.mxu1 %v1966_v45 }
  0xdd   :  { %3903 = vrot.lane.b32.xlu0 %v18209_v9, %s18126_s28  ;;  %v1944_v46 = vpop.permute.xlu1 %1943  ;;  %17772 = vmatmul.mubr.msk.f32.vlgmr.msra.gmra.mxu1 %vm136_vm1, %v18469_v36  ;;  %v1942_v47 = vpop.permute.xlu0 %1941 }
  0xde   :  { %v1969_v48 = vsel %vm1963_vm3, %v1942_v47, %v1944_v46  ;;  %v1968_v49 = vsel %vm1963_vm3, %v1940_v42, %v1942_v47  ;;  %2203 = vmatprep.mubr.f32.mxu0 %v21545_v0  ;;  %2274 = vmatprep.mubr.f32.mxu1 %v21545_v0 }
  0xdf   :  { %2169 = vmatprep.subr.mxu0 %v1969_v48 }
  0xe0   :  { %3909 = vrot.lane.b32.xlu1 %v18227_v14, %s18126_s28  ;;  %2170 = vmatpush1.msra.mxu0 %v1968_v49 }
  0xe1   :  { %3907 = vrot.lane.b32.xlu0 %v18217_v11, %s18126_s28  ;;  %v1948_v50 = vpop.permute.xlu1 %1947  ;;  %17773 = vmatmul.mubr.msk.f32.vlgmr.msra.gmra.mxu0 %vm136_vm1, %v18469_v36  ;;  %v1946_v51 = vpop.permute.xlu0 %1945 }
  0xe2   :  { %v1971_v52 = vsel %vm1963_vm3, %v1946_v51, %v1948_v50  ;;  %v1970_v53 = vsel %vm1963_vm3, %v1944_v46, %v1946_v51  ;;  %2345 = vmatprep.mubr.f32.mxu0 %v21545_v0 }
  0xe3   :  { %2240 = vmatprep.subr.mxu1 %v1971_v52 }
  0xe4   :  { %3913 = vrot.lane.b32.xlu1 %v18235_v16, %s18126_s28  ;;  %2241 = vmatpush1.msra.mxu1 %v1970_v53 }
  0xe5   :  { %3911 = vrot.lane.b32.xlu0 %v18225_v13, %s18126_s28  ;;  %v1952_v54 = vpop.permute.xlu1 %1951  ;;  %17774 = vmatmul.mubr.msk.f32.vlgmr.msra.gmra.mxu1 %vm136_vm1, %v18469_v36  ;;  %v1950_v55 = vpop.permute.xlu0 %1949 }
  0xe6   :  { %v1973_v56 = vsel %vm1963_vm3, %v1950_v55, %v1952_v54  ;;  %v1972_v57 = vsel %vm1963_vm3, %v1948_v50, %v1950_v55  ;;  %2416 = vmatprep.mubr.f32.mxu1 %v21545_v0 }
  0xe7   :  { %2311 = vmatprep.subr.mxu0 %v1973_v56 }
  0xe8   :  { %3917 = vrot.lane.b32.xlu1 %v18241_v17, %s18126_s28  ;;  %2312 = vmatpush1.msra.mxu0 %v1972_v57 }
  0xe9   :  { %3915 = vrot.lane.b32.xlu0 %v18233_v15, %s18126_s28  ;;  %v1956_v58 = vpop.permute.xlu1 %1955  ;;  %17775 = vmatmul.mubr.msk.f32.vlgmr.msra.gmra.mxu0 %vm136_vm1, %v18469_v36  ;;  %v1954_v59 = vpop.permute.xlu0 %1953 }
  0xea   :  { %v1975_v60 = vsel %vm1963_vm3, %v1954_v59, %v1956_v58  ;;  %v1974_v61 = vsel %vm1963_vm3, %v1952_v54, %v1954_v59  ;;  %2487 = vmatprep.mubr.f32.mxu0 %v21545_v0 }
  0xeb   :  { %2382 = vmatprep.subr.mxu1 %v1975_v60 }
  0xec   :  { %4539 = vrot.lane.b32.xlu1 %v18187_v4, %s18127_s29  ;;  %2383 = vmatpush1.msra.mxu1 %v1974_v61 }
  0xed   :  { %4537 = vrot.lane.b32.xlu0 %v18177_v1, %s18128_s30  ;;  %v1960_v62 = vpop.permute.xlu1 %1959  ;;  %17776 = vmatmul.mubr.msk.f32.vlgmr.msra.gmra.mxu1 %vm136_vm1, %v18469_v36  ;;  %v1958_v63 = vpop.permute.xlu0 %1957 }
  0xee   :  { %v1977_v18 = vsel %vm1963_vm3, %v1958_v63, %v1960_v62  ;;  %v1976_v19 = vsel %vm1963_vm3, %v1956_v58, %v1958_v63  ;;  %2558 = vmatprep.mubr.f32.mxu1 %v21545_v0 }
  0xef   :  { %2453 = vmatprep.subr.mxu0 %v1977_v18 }
  0xf0   :  { %4543 = vrot.lane.b32.xlu1 %v18185_v3, %s18127_s29  ;;  %2454 = vmatpush1.msra.mxu0 %v1976_v19 }
  0xf1   :  { %4541 = vrot.lane.b32.xlu0 %v18179_v2, %s18127_s29  ;;  %v18547_v20 = vpop.permute.xlu1 %2581  ;;  %17777 = vmatmul.mubr.msk.f32.vlgmr.msra.gmra.mxu0 %vm136_vm1, %v18469_v36  ;;  %v1962_v21 = vpop.permute.xlu0 %1961 }
  0xf2   :  { %2524 = vmatprep.subr.mxu1 %v1962_v21  ;;  %v1978_v22 = vsel %vm1963_vm3, %v1960_v62, %v1962_v21  ;;  %2713 = vmatprep.mubr.f32.mxu0 %v21545_v0  ;;  %vm12494_vm3 = vcmask 449536  }
  0xf3   :  { %2525 = vmatpush1.msra.mxu1 %v1978_v22  ;;  %v18698_v22 = vld [vmem:[#allocation2 + $0x18] sm:$0xff] }
  0xf4   :  { %4547 = vrot.lane.b32.xlu1 %v18193_v5, %s18127_s29  ;;  %17778 = vmatmul.mubr.msk.f32.vlgmr.msra.gmra.mxu1 %vm136_vm1, %v18469_v36 }
  0xf5   :  { %4545 = vrot.lane.b32.xlu0 %v18195_v6, %s18127_s29  ;;  %v2586_v23 = vpop.permute.xlu1 %2585  ;;  %v2584_v24 = vpop.permute.xlu0 %2583  ;;  %2784 = vmatprep.mubr.f32.mxu1 %v21545_v0 }
  0xf6   :  { %v2616_v28 = vsel %vm2615_vm4, %v2584_v24, %v2586_v23 }
  0xf8   :  { %4551 = vrot.lane.b32.xlu1 %v18201_v7, %s18127_s29 }
  0xf9   :  { %4549 = vrot.lane.b32.xlu0 %v18203_v8, %s18127_s29  ;;  %v2590_v25 = vpop.permute.xlu1 %2589  ;;  %v2588_v26 = vpop.permute.xlu0 %2587 }
  0xfa   :  { %v2617_v27 = vsel %vm2615_vm4, %v2586_v23, %v2588_v26  ;;  %v2618_v32 = vsel %vm2615_vm4, %v2588_v26, %v2590_v25 }
  0xfb   :  { %2679 = vmatprep.subr.mxu0 %v2617_v27  ;;  %v18713_v27 = vld [vmem:[#allocation2 + $0x28] sm:$0xff] }
  0xfc   :  { %4555 = vrot.lane.b32.xlu1 %v18209_v9, %s18127_s29  ;;  %2680 = vmatpush1.msra.mxu0 %v2616_v28 }
  0xfd   :  { %4553 = vrot.lane.b32.xlu0 %v18211_v10, %s18127_s29  ;;  %v2594_v29 = vpop.permute.xlu1 %2593  ;;  %17779 = vmatmul.mubr.msk.f32.vlgmr.msra.gmra.mxu0 %vm136_vm1, %v18547_v20  ;;  %v2592_v30 = vpop.permute.xlu0 %2591 }
  0xfe   :  { %v2619_v31 = vsel %vm2615_vm4, %v2590_v25, %v2592_v30  ;;  %2855 = vmatprep.mubr.f32.mxu0 %v21545_v0  ;;  %v2620_v36 = vsel %vm2615_vm4, %v2592_v30, %v2594_v29  ;;  %v18709_v25 = vld [vmem:[#allocation2 + $0x30] sm:$0xff] }
  0xff   :  { %2750 = vmatprep.subr.mxu1 %v2619_v31 }
 0x100   :  { %4559 = vrot.lane.b32.xlu1 %v18217_v11, %s18127_s29  ;;  %2751 = vmatpush1.msra.mxu1 %v2618_v32  ;;  %v18725_v32 = vld [vmem:[#allocation2 + $0x38] sm:$0xff] }
 0x101   :  { %4557 = vrot.lane.b32.xlu0 %v18219_v12, %s18127_s29  ;;  %v2598_v33 = vpop.permute.xlu1 %2597  ;;  %17780 = vmatmul.mubr.msk.f32.vlgmr.msra.gmra.mxu1 %vm136_vm1, %v18547_v20  ;;  %v2596_v34 = vpop.permute.xlu0 %2595 }
 0x102   :  { %v2621_v35 = vsel %vm2615_vm4, %v2594_v29, %v2596_v34  ;;  %2926 = vmatprep.mubr.f32.mxu1 %v21545_v0  ;;  %v2622_v40 = vsel %vm2615_vm4, %v2596_v34, %v2598_v33  ;;  %v18723_v29 = vld [vmem:[#allocation2 + $0x40] sm:$0xff] }
 0x103   :  { %2821 = vmatprep.subr.mxu0 %v2621_v35  ;;  %v18734_v35 = vld [vmem:[#allocation2 + $0x48] sm:$0xff] }
 0x104   :  { %4563 = vrot.lane.b32.xlu1 %v18225_v13, %s18127_s29  ;;  %2822 = vmatpush1.msra.mxu0 %v2620_v36 }
 0x105   :  { %4561 = vrot.lane.b32.xlu0 %v18227_v14, %s18127_s29  ;;  %v2602_v37 = vpop.permute.xlu1 %2601  ;;  %17781 = vmatmul.mubr.msk.f32.vlgmr.msra.gmra.mxu0 %vm136_vm1, %v18547_v20 }
 0x106   :  { %v2600_v38 = vpop.permute.xlu0 %2599  ;;  %2997 = vmatprep.mubr.f32.mxu0 %v21545_v0 }
 0x107   :  { %v2623_v39 = vsel %vm2615_vm4, %v2598_v33, %v2600_v38  ;;  %v2624_v44 = vsel %vm2615_vm4, %v2600_v38, %v2602_v37  ;;  %v18732_v33 = vld [vmem:[#allocation2 + $0x50] sm:$0xff] }
 0x108   :  { %4567 = vrot.lane.b32.xlu1 %v18233_v15, %s18127_s29  ;;  %2892 = vmatprep.subr.mxu1 %v2623_v39  ;;  %v18742_v39 = vld [vmem:[#allocation2 + $0x60] sm:$0xff] }
 0x109   :  { %4565 = vrot.lane.b32.xlu0 %v18235_v16, %s18127_s29  ;;  %2893 = vmatpush1.msra.mxu1 %v2622_v40  ;;  %v2606_v41 = vpop.permute.xlu1 %2605 }
 0x10a   :  { %17782 = vmatmul.mubr.msk.f32.vlgmr.msra.gmra.mxu1 %vm136_vm1, %v18547_v20  ;;  %v2604_v42 = vpop.permute.xlu0 %2603 }
 0x10b   :  { %v2625_v43 = vsel %vm2615_vm4, %v2602_v37, %v2604_v42  ;;  %3068 = vmatprep.mubr.f32.mxu1 %v21545_v0  ;;  %v2626_v48 = vsel %vm2615_vm4, %v2604_v42, %v2606_v41 }
 0x10c   :  { %5189 = vrot.lane.b32.xlu1 %v18177_v1, %s18129_s3  ;;  %2963 = vmatprep.subr.mxu0 %v2625_v43 }
 0x10d   :  { %4569 = vrot.lane.b32.xlu0 %v18241_v17, %s18127_s29  ;;  %2964 = vmatpush1.msra.mxu0 %v2624_v44  ;;  %v2610_v45 = vpop.permute.xlu1 %2609 }
 0x10e   :  { %17783 = vmatmul.mubr.msk.f32.vlgmr.msra.gmra.mxu0 %vm136_vm1, %v18547_v20  ;;  %v2608_v46 = vpop.permute.xlu0 %2607 }
 0x10f   :  { %v2627_v47 = vsel %vm2615_vm4, %v2606_v41, %v2608_v46  ;;  %3139 = vmatprep.mubr.f32.mxu0 %v21545_v0  ;;  %v18744_v41 = vld [vmem:[#allocation2 + $0x58] sm:$0xff] }
 0x110   :  { %5193 = vrot.lane.b32.xlu1 %v18179_v2, %s18130_s4  ;;  %3034 = vmatprep.subr.mxu1 %v2627_v47  ;;  %v2628_v2 = vsel %vm2615_vm4, %v2608_v46, %v2610_v45  ;;  %v18757_v47 = vld [vmem:[#allocation2 + $0x68] sm:$0xff] }
 0x111   :  { %5191 = vrot.lane.b32.xlu0 %v18187_v4, %s18130_s4  ;;  %3035 = vmatpush1.msra.mxu1 %v2626_v48  ;;  %v2614_v49 = vpop.permute.xlu1 %2613 }
 0x112   :  { %17784 = vmatmul.mubr.msk.f32.vlgmr.msra.gmra.mxu1 %vm136_vm1, %v18547_v20  ;;  %v2612_v50 = vpop.permute.xlu0 %2611  ;;  %3176 = vmatprep.subr.mxu1 %v2614_v49 }
 0x113   :  { %v2629_v51 = vsel %vm2615_vm4, %v2610_v45, %v2612_v50  ;;  %v2630_v52 = vsel %vm2615_vm4, %v2612_v50, %v2614_v49  ;;  %3210 = vmatprep.mubr.f32.mxu1 %v21545_v0  ;;  %v18755_v45 = vld [vmem:[#allocation2 + $0x70] sm:$0xff]  ;;  %vm13149_vm4 = vcmask 441344  }
 0x114   :  { %5197 = vrot.lane.b32.xlu1 %v18195_v6, %s18130_s4  ;;  %3105 = vmatprep.subr.mxu0 %v2629_v51  ;;  %v18768_v51 = vld [vmem:[#allocation2 + $0x80] sm:$0xff] }
 0x115   :  { %5195 = vrot.lane.b32.xlu0 %v18185_v3, %s18130_s4  ;;  %3177 = vmatpush1.msra.mxu1 %v2630_v52  ;;  %v3236_v53 = vpop.permute.xlu1 %3235 }
 0x116   :  { %3106 = vmatpush1.msra.mxu0 %v2628_v2  ;;  %17786 = vmatmul.mubr.msk.f32.vlgmr.msra.gmra.mxu1 %vm136_vm1, %v18547_v20  ;;  %v18627_v54 = vpop.permute.xlu0 %3233  ;;  %v18770_v2 = vld [vmem:[#allocation2 + $0x78] sm:$0xff] }
 0x117   :  { %17785 = vmatmul.mubr.msk.f32.vlgmr.msra.gmra.mxu0 %vm136_vm1, %v18547_v20  ;;  %3436 = vmatprep.mubr.f32.mxu1 %v21545_v0  ;;  %v18690_v20 = vld [vmem:[#allocation2 + $0x8] sm:$0xff] }
 0x118   :  { %5201 = vrot.lane.b32.xlu1 %v18203_v8, %s18130_s4  ;;  %3365 = vmatprep.mubr.f32.mxu0 %v21545_v0 }
 0x119   :  { %5199 = vrot.lane.b32.xlu0 %v18193_v5, %s18130_s4  ;;  %v3240_v6 = vpop.permute.xlu1 %3239 }
 0x11a   :  { %v3238_v55 = vpop.permute.xlu0 %3237 }
 0x11b   :  { %v3269_v56 = vsel %vm3267_vm5, %v3238_v55, %v3240_v6  ;;  %v3268_v57 = vsel %vm3267_vm5, %v3236_v53, %v3238_v55 }
 0x11c   :  { %5205 = vrot.lane.b32.xlu1 %v18211_v10, %s18130_s4  ;;  %3331 = vmatprep.subr.mxu0 %v3269_v56 }
 0x11d   :  { %5203 = vrot.lane.b32.xlu0 %v18201_v7, %s18130_s4  ;;  %3332 = vmatpush1.msra.mxu0 %v3268_v57  ;;  %v3244_v8 = vpop.permute.xlu1 %3243  ;;  %v18783_v57 = vld [vmem:[#allocation2] sm:$0xff] }
 0x11e   :  { %17787 = vmatmul.mubr.msk.f32.vlgmr.msra.gmra.mxu0 %vm136_vm1, %v18627_v54  ;;  %v3242_v58 = vpop.permute.xlu0 %3241 }
 0x11f   :  { %v3271_v5 = vsel %vm3267_vm5, %v3242_v58, %v3244_v8  ;;  %v3270_v59 = vsel %vm3267_vm5, %v3240_v6, %v3242_v58  ;;  %3507 = vmatprep.mubr.f32.mxu0 %v21545_v0  ;;  %v18789_v58 = vld [vmem:[#allocation5] sm:$0xff] }
 0x120   :  { %5209 = vrot.lane.b32.xlu1 %v18219_v12, %s18130_s4  ;;  %3402 = vmatprep.subr.mxu1 %v3271_v5 }
 0x121   :  { %5207 = vrot.lane.b32.xlu0 %v18209_v9, %s18130_s4  ;;  %3403 = vmatpush1.msra.mxu1 %v3270_v59  ;;  %v3248_v7 = vpop.permute.xlu1 %3247 }
 0x122   :  { %17788 = vmatmul.mubr.msk.f32.vlgmr.msra.gmra.mxu1 %vm136_vm1, %v18627_v54  ;;  %v3246_v10 = vpop.permute.xlu0 %3245 }
 0x123   :  { %v3273_v60 = vsel %vm3267_vm5, %v3246_v10, %v3248_v7  ;;  %v3272_v61 = vsel %vm3267_vm5, %v3244_v8, %v3246_v10  ;;  %3578 = vmatprep.mubr.f32.mxu1 %v21545_v0  ;;  %v18796_v10 = vld [vmem:[#allocation2 + $0x10] sm:$0xff] }
 0x124   :  { %5213 = vrot.lane.b32.xlu1 %v18227_v14, %s18130_s4  ;;  %3473 = vmatprep.subr.mxu0 %v3273_v60 }
 0x125   :  { %5211 = vrot.lane.b32.xlu0 %v18217_v11, %s18130_s4  ;;  %3474 = vmatpush1.msra.mxu0 %v3272_v61  ;;  %v3252_v9 = vpop.permute.xlu1 %3251 }
 0x126   :  { %17789 = vmatmul.mubr.msk.f32.vlgmr.msra.gmra.mxu0 %vm136_vm1, %v18627_v54  ;;  %v3250_v12 = vpop.permute.xlu0 %3249 }
 0x127   :  { %v3275_v62 = vsel %vm3267_vm5, %v3250_v12, %v3252_v9  ;;  %v3274_v63 = vsel %vm3267_vm5, %v3248_v7, %v3250_v12  ;;  %3649 = vmatprep.mubr.f32.mxu0 %v21545_v0 }
 0x128   :  { %5217 = vrot.lane.b32.xlu1 %v18235_v16, %s18130_s4  ;;  %3544 = vmatprep.subr.mxu1 %v3275_v62 }
 0x129   :  { %5215 = vrot.lane.b32.xlu0 %v18225_v13, %s18130_s4  ;;  %3545 = vmatpush1.msra.mxu1 %v3274_v63 }
 0x12a   :  { %v3256_v11 = vpop.permute.xlu1 %3255  ;;  %17790 = vmatmul.mubr.msk.f32.vlgmr.msra.gmra.mxu1 %vm136_vm1, %v18627_v54  ;;  %v3254_v14 = vpop.permute.xlu0 %3253 }
 0x12b   :  { %v3277_v18 = vsel %vm3267_vm5, %v3254_v14, %v3256_v11  ;;  %v3276_v19 = vsel %vm3267_vm5, %v3252_v9, %v3254_v14  ;;  %3720 = vmatprep.mubr.f32.mxu1 %v21545_v0 }
 0x12c   :  { %5221 = vrot.lane.b32.xlu1 %v18241_v17, %s18130_s4  ;;  %3615 = vmatprep.subr.mxu0 %v3277_v18 }
 0x12d   :  { %5219 = vrot.lane.b32.xlu0 %v18233_v15, %s18130_s4  ;;  %3616 = vmatpush1.msra.mxu0 %v3276_v19 }
 0x12e   :  { %17791 = vmatmul.mubr.msk.f32.vlgmr.msra.gmra.mxu0 %vm136_vm1, %v18627_v54 }
 0x12f   :  { %3791 = vmatprep.mubr.f32.mxu0 %v21545_v0 }
 0x130   :  { %5877 = vrot.lane.b32.xlu1 %v18187_v4, %s18131_s5  ;;  %v3260_v13 = vpop.permute.xlu1 %3259 }
 0x131   :  { %5858 = vrot.lane.b32.xlu0 %v18177_v1, %s18132_s6  ;;  %v3258_v16 = vpop.permute.xlu0 %3257  ;;  %v18696_v1 = vld [vmem:[#allocation2 + $0x20] sm:$0xff] }
 0x132   :  { %v3279_v17 = vsel %vm3267_vm5, %v3258_v16, %v3260_v13  ;;  %v3278_v15 = vsel %vm3267_vm5, %v3256_v11, %v3258_v16 }
 0x133   :  { %3686 = vmatprep.subr.mxu1 %v3279_v17 }
 0x134   :  { %5881 = vrot.lane.b32.xlu1 %v18185_v3, %s18131_s5  ;;  %3687 = vmatpush1.msra.mxu1 %v3278_v15 }
 0x135   :  { %5879 = vrot.lane.b32.xlu0 %v18690_v20, %s18131_s5  ;;  %v3264_v4 = vpop.permute.xlu1 %3263  ;;  %17792 = vmatmul.mubr.msk.f32.vlgmr.msra.gmra.mxu1 %vm136_vm1, %v18627_v54 }
 0x136   :  { %v3262_v21 = vpop.permute.xlu0 %3261  ;;  %3862 = vmatprep.mubr.f32.mxu1 %v21545_v0 }
 0x137   :  { %v3281_v23 = vsel %vm3267_vm5, %v3262_v21, %v3264_v4  ;;  %v3280_v3 = vsel %vm3267_vm5, %v3260_v13, %v3262_v21 }
 0x138   :  { %5885 = vrot.lane.b32.xlu1 %v18696_v1, %s18131_s5  ;;  %3757 = vmatprep.subr.mxu0 %v3281_v23 }
 0x139   :  { %5883 = vrot.lane.b32.xlu0 %v18698_v22, %s18131_s5  ;;  %3758 = vmatpush1.msra.mxu0 %v3280_v3  ;;  %v18707_v24 = vpop.permute.xlu1 %3885 }
 0x13a   :  { %17793 = vmatmul.mubr.msk.f32.vlgmr.msra.gmra.mxu0 %vm136_vm1, %v18627_v54  ;;  %v3266_v26 = vpop.permute.xlu0 %3265 }
 0x13b   :  { %3828 = vmatprep.subr.mxu1 %v3266_v26  ;;  %v3282_v28 = vsel %vm3267_vm5, %v3264_v4, %v3266_v26  ;;  %4017 = vmatprep.mubr.f32.mxu0 %v21545_v0  ;;  %vm13804_vm5 = vcmask 375808  }
 0x13c   :  { %5889 = vrot.lane.b32.xlu1 %v18709_v25, %s18131_s5  ;;  %3829 = vmatpush1.msra.mxu1 %v3282_v28 }
 0x13d   :  { %5887 = vrot.lane.b32.xlu0 %v18713_v27, %s18131_s5  ;;  %17794 = vmatmul.mubr.msk.f32.vlgmr.msra.gmra.mxu1 %vm136_vm1, %v18627_v54 }
 0x13e   :  { %v3890_v30 = vpop.permute.xlu1 %3889  ;;  %v3888_v31 = vpop.permute.xlu0 %3887  ;;  %4088 = vmatprep.mubr.f32.mxu1 %v21545_v0 }
 0x13f   :  { %v3920_v38 = vsel %vm3919_vm6, %v3888_v31, %v3890_v30 }
 0x140   :  { %5893 = vrot.lane.b32.xlu1 %v18723_v29, %s18131_s5 }
 0x141   :  { %5891 = vrot.lane.b32.xlu0 %v18725_v32, %s18131_s5 }
 0x142   :  { %v3894_v34 = vpop.permute.xlu1 %3893 }
 0x143   :  { %v3892_v36 = vpop.permute.xlu0 %3891 }
 0x144   :  { %5897 = vrot.lane.b32.xlu1 %v18732_v33, %s18131_s5  ;;  %v3921_v37 = vsel %vm3919_vm6, %v3890_v30, %v3892_v36  ;;  %v3922_v44 = vsel %vm3919_vm6, %v3892_v36, %v3894_v34 }
 0x145   :  { %5895 = vrot.lane.b32.xlu0 %v18734_v35, %s18131_s5  ;;  %3983 = vmatprep.subr.mxu0 %v3921_v37 }
 0x146   :  { %3984 = vmatpush1.msra.mxu0 %v3920_v38  ;;  %v3898_v40 = vpop.permute.xlu1 %3897 }
 0x147   :  { %17795 = vmatmul.mubr.msk.f32.vlgmr.msra.gmra.mxu0 %vm136_vm1, %v18707_v24  ;;  %v3896_v42 = vpop.permute.xlu0 %3895 }
 0x148   :  { %5901 = vrot.lane.b32.xlu1 %v18742_v39, %s18131_s5  ;;  %v3923_v43 = vsel %vm3919_vm6, %v3894_v34, %v3896_v42  ;;  %4159 = vmatprep.mubr.f32.mxu0 %v21545_v0  ;;  %v3924_v50 = vsel %vm3919_vm6, %v3896_v42, %v3898_v40 }
 0x149   :  { %5899 = vrot.lane.b32.xlu0 %v18744_v41, %s18131_s5  ;;  %4054 = vmatprep.subr.mxu1 %v3923_v43 }
 0x14a   :  { %4055 = vmatpush1.msra.mxu1 %v3922_v44  ;;  %v3902_v46 = vpop.permute.xlu1 %3901 }
 0x14b   :  { %17796 = vmatmul.mubr.msk.f32.vlgmr.msra.gmra.mxu1 %vm136_vm1, %v18707_v24  ;;  %v3900_v48 = vpop.permute.xlu0 %3899 }
 0x14c   :  { %5905 = vrot.lane.b32.xlu1 %v18755_v45, %s18131_s5  ;;  %v3925_v49 = vsel %vm3919_vm6, %v3898_v40, %v3900_v48  ;;  %4230 = vmatprep.mubr.f32.mxu1 %v21545_v0  ;;  %v3926_v6 = vsel %vm3919_vm6, %v3900_v48, %v3902_v46 }
 0x14d   :  { %5903 = vrot.lane.b32.xlu0 %v18757_v47, %s18131_s5  ;;  %4125 = vmatprep.subr.mxu0 %v3925_v49 }
 0x14e   :  { %4126 = vmatpush1.msra.mxu0 %v3924_v50  ;;  %v3906_v52 = vpop.permute.xlu1 %3905 }
 0x14f   :  { %17797 = vmatmul.mubr.msk.f32.vlgmr.msra.gmra.mxu0 %vm136_vm1, %v18707_v24  ;;  %v3904_v53 = vpop.permute.xlu0 %3903 }
 0x150   :  { %5909 = vrot.lane.b32.xlu1 %v18768_v51, %s18131_s5  ;;  %v3927_v54 = vsel %vm3919_vm6, %v3902_v46, %v3904_v53  ;;  %4301 = vmatprep.mubr.f32.mxu0 %v21545_v0  ;;  %v3928_v5 = vsel %vm3919_vm6, %v3904_v53, %v3906_v52 }
 0x151   :  { %5907 = vrot.lane.b32.xlu0 %v18770_v2, %s18131_s5  ;;  %4196 = vmatprep.subr.mxu1 %v3927_v54 }
 0x152   :  { %4197 = vmatpush1.msra.mxu1 %v3926_v6  ;;  %v3910_v55 = vpop.permute.xlu1 %3909 }
 0x153   :  { %17798 = vmatmul.mubr.msk.f32.vlgmr.msra.gmra.mxu1 %vm136_vm1, %v18707_v24  ;;  %v3908_v56 = vpop.permute.xlu0 %3907 }
 0x154   :  { %6532 = vrot.lane.b32.xlu1 %v18783_v57, %s18133_s7  ;;  %v3929_v8 = vsel %vm3919_vm6, %v3906_v52, %v3908_v56  ;;  %4372 = vmatprep.mubr.f32.mxu1 %v21545_v0  ;;  %v3930_v61 = vsel %vm3919_vm6, %v3908_v56, %v3910_v55 }
 0x155   :  { %6530 = vrot.lane.b32.xlu0 %v18789_v58, %s18134_s8  ;;  %4267 = vmatprep.subr.mxu0 %v3929_v8  ;;  %v18805_v12 = vpop.f32.mrf.mxu0 }
 0x156   :  { %4268 = vmatpush1.msra.mxu0 %v3928_v5  ;;  %v3914_v59 = vpop.permute.xlu1 %3913 }
 0x157   :  { %17799 = vmatmul.mubr.msk.f32.vlgmr.msra.gmra.mxu0 %vm136_vm1, %v18707_v24  ;;  %v3912_v7 = vpop.permute.xlu0 %3911  ;;  %v18819_v13 = vpop.f32.mrf.mxu0 }
 0x158   :  { %6536 = vrot.lane.b32.xlu1 %v18796_v10, %s18133_s7  ;;  %v3931_v60 = vsel %vm3919_vm6, %v3910_v55, %v3912_v7  ;;  %4443 = vmatprep.mubr.f32.mxu0 %v21545_v0  ;;  %v3932_v14 = vsel %vm3919_vm6, %v3912_v7, %v3914_v59 }
 0x159   :  { %6534 = vrot.lane.b32.xlu0 %v18690_v20, %s18133_s7  ;;  %4338 = vmatprep.subr.mxu1 %v3931_v60  ;;  %v18817_v19 = vpop.f32.mrf.mxu1 }
 0x15a   :  { %4339 = vmatpush1.msra.mxu1 %v3930_v61  ;;  %v3918_v9 = vpop.permute.xlu1 %3917 }
 0x15b   :  { %17800 = vmatmul.mubr.msk.f32.vlgmr.msra.gmra.mxu1 %vm136_vm1, %v18707_v24  ;;  %v3916_v62 = vpop.permute.xlu0 %3915  ;;  %4480 = vmatprep.subr.mxu1 %v3918_v9  ;;  %v18835_v15 = vpop.f32.mrf.mxu1 }
 0x15c   :  { %6540 = vrot.lane.b32.xlu1 %v18696_v1, %s18133_s7  ;;  %v3933_v63 = vsel %vm3919_vm6, %v3914_v59, %v3916_v62  ;;  %v3934_v11 = vsel %vm3919_vm6, %v3916_v62, %v3918_v9  ;;  %4514 = vmatprep.mubr.f32.mxu1 %v21545_v0  ;;  %vm14459_vm6 = vcmask 367616  }
 0x15d   :  { %6538 = vrot.lane.b32.xlu0 %v18698_v22, %s18133_s7  ;;  %4409 = vmatprep.subr.mxu0 %v3933_v63  ;;  %v18832_v17 = vpop.f32.mrf.mxu0 }
 0x15e   :  { %4481 = vmatpush1.msra.mxu1 %v3934_v11  ;;  %4410 = vmatpush1.msra.mxu0 %v3932_v14  ;;  %v4540_v18 = vpop.permute.xlu1 %4539 }
 0x15f   :  { %17801 = vmatmul.mubr.msk.f32.vlgmr.msra.gmra.mxu0 %vm136_vm1, %v18707_v24  ;;  %17802 = vmatmul.mubr.msk.f32.vlgmr.msra.gmra.mxu1 %vm136_vm1, %v18707_v24  ;;  %v18825_v16 = vpop.permute.xlu0 %4537  ;;  %v18843_v26 = vpop.f32.mrf.mxu0 }
 0x160   :  { %6544 = vrot.lane.b32.xlu1 %v18709_v25, %s18133_s7  ;;  %4669 = vmatprep.mubr.f32.mxu0 %v21545_v0 }
 0x161   :  { %6542 = vrot.lane.b32.xlu0 %v18713_v27, %s18133_s7  ;;  %4740 = vmatprep.mubr.f32.mxu1 %v21545_v0  ;;  %v18841_v24 = vpop.f32.mrf.mxu1 }
 0x162   :  { %v4544_v4 = vpop.permute.xlu1 %4543 }
 0x163   :  { %v4542_v21 = vpop.permute.xlu0 %4541  ;;  %v18853_v34 = vpop.f32.mrf.mxu1 }
 0x164   :  { %6548 = vrot.lane.b32.xlu1 %v18723_v29, %s18133_s7  ;;  %v4573_v23 = vsel %vm4571_vm7, %v4542_v21, %v4544_v4  ;;  %v4572_v3 = vsel %vm4571_vm7, %v4540_v18, %v4542_v21 }
 0x165   :  { %6546 = vrot.lane.b32.xlu0 %v18725_v32, %s18133_s7  ;;  %4635 = vmatprep.subr.mxu0 %v4573_v23  ;;  %v18849_v31 = vpop.f32.mrf.mxu0 }
 0x166   :  { %4636 = vmatpush1.msra.mxu0 %v4572_v3  ;;  %v4548_v28 = vpop.permute.xlu1 %4547 }
 0x167   :  { %17803 = vmatmul.mubr.msk.f32.vlgmr.msra.gmra.mxu0 %vm136_vm1, %v18825_v16  ;;  %v4546_v30 = vpop.permute.xlu0 %4545  ;;  %v18864_v43 = vpop.f32.mrf.mxu0 }
 0x168   :  { %6552 = vrot.lane.b32.xlu1 %v18732_v33, %s18133_s7  ;;  %v4575_v36 = vsel %vm4571_vm7, %v4546_v30, %v4548_v28  ;;  %v4574_v37 = vsel %vm4571_vm7, %v4544_v4, %v4546_v30  ;;  %4811 = vmatprep.mubr.f32.mxu0 %v21545_v0 }
 0x169   :  { %6550 = vrot.lane.b32.xlu0 %v18734_v35, %s18133_s7  ;;  %4706 = vmatprep.subr.mxu1 %v4575_v36  ;;  %v18860_v40 = vpop.f32.mrf.mxu1 }
 0x16a   :  { %4707 = vmatpush1.msra.mxu1 %v4574_v37  ;;  %v4552_v38 = vpop.permute.xlu1 %4551 }
 0x16b   :  { %17804 = vmatmul.mubr.msk.f32.vlgmr.msra.gmra.mxu1 %vm136_vm1, %v18825_v16  ;;  %v4550_v42 = vpop.permute.xlu0 %4549  ;;  %v18875_v50 = vpop.f32.mrf.mxu1 }
 0x16c   :  { %6556 = vrot.lane.b32.xlu1 %v18742_v39, %s18133_s7  ;;  %v4577_v44 = vsel %vm4571_vm7, %v4550_v42, %v4552_v38  ;;  %v4576_v46 = vsel %vm4571_vm7, %v4548_v28, %v4550_v42  ;;  %4882 = vmatprep.mubr.f32.mxu1 %v21545_v0 }
 0x16d   :  { %6554 = vrot.lane.b32.xlu0 %v18744_v41, %s18133_s7  ;;  %4777 = vmatprep.subr.mxu0 %v4577_v44  ;;  %v18873_v48 = vpop.f32.mrf.mxu0 }
 0x16e   :  { %4778 = vmatpush1.msra.mxu0 %v4576_v46  ;;  %v4556_v49 = vpop.permute.xlu1 %4555 }
 0x16f   :  { %17805 = vmatmul.mubr.msk.f32.vlgmr.msra.gmra.mxu0 %vm136_vm1, %v18825_v16  ;;  %v4554_v52 = vpop.permute.xlu0 %4553  ;;  %v18879_v53 = vpop.f32.mrf.mxu0 }
 0x170   :  { %6560 = vrot.lane.b32.xlu1 %v18755_v45, %s18133_s7  ;;  %v4579_v54 = vsel %vm4571_vm7, %v4554_v52, %v4556_v49  ;;  %v4578_v6 = vsel %vm4571_vm7, %v4552_v38, %v4554_v52  ;;  %v18885_v55 = vpop.f32.mrf.mxu1  ;;  %4953 = vmatprep.mubr.f32.mxu0 %v21545_v0 }
 0x171   :  { %6558 = vrot.lane.b32.xlu0 %v18757_v47, %s18133_s7  ;;  %4848 = vmatprep.subr.mxu1 %v4579_v54 }
 0x172   :  { %4849 = vmatpush1.msra.mxu1 %v4578_v6  ;;  %v4560_v56 = vpop.permute.xlu1 %4559  ;;  %v775_v8 = vpop.f32.mrf.mxu0 }
 0x173   :  { %17806 = vmatmul.mubr.msk.f32.vlgmr.msra.gmra.mxu1 %vm136_vm1, %v18825_v16  ;;  %v4558_v5 = vpop.permute.xlu0 %4557  ;;  %v18893_v59 = vadd.f32 %v775_v8, %v18805_v12  ;;  %v18895_v7 = vpop.f32.mrf.mxu1 }
 0x174   :  { %6564 = vrot.lane.b32.xlu1 %v18768_v51, %s18133_s7  ;;  %v4581_v60 = vsel %vm4571_vm7, %v4558_v5, %v4560_v56  ;;  %v4580_v61 = vsel %vm4571_vm7, %v4556_v49, %v4558_v5  ;;  %v18901_v9 = vpop.f32.mrf.mxu0  ;;  %5024 = vmatprep.mubr.f32.mxu1 %v21545_v0 }
 0x175   :  { %6562 = vrot.lane.b32.xlu0 %v18770_v2, %s18133_s7  ;;  %4919 = vmatprep.subr.mxu0 %v4581_v60  ;;  %v846_v62 = vpop.f32.mrf.mxu1 }
 0x176   :  { %4920 = vmatpush1.msra.mxu0 %v4580_v61  ;;  %v4564_v12 = vpop.permute.xlu1 %4563  ;;  %v18907_v63 = vadd.f32 %v846_v62, %v18817_v19 }
 0x177   :  { %17807 = vmatmul.mubr.msk.f32.vlgmr.msra.gmra.mxu0 %vm136_vm1, %v18825_v16  ;;  %v4562_v11 = vpop.permute.xlu0 %4561  ;;  %v917_v14 = vpop.f32.mrf.mxu0 }
 0x178   :  { %7187 = vrot.lane.b32.xlu1 %v18783_v57, %s18135_s9  ;;  %v4583_v18 = vsel %vm4571_vm7, %v4562_v11, %v4564_v12  ;;  %v4582_v4 = vsel %vm4571_vm7, %v4560_v56, %v4562_v11  ;;  %v18916_v21 = vadd.f32 %v917_v14, %v18832_v17  ;;  %v18918_v23 = vpop.f32.mrf.mxu1  ;;  %5095 = vmatprep.mubr.f32.mxu0 %v21545_v0 }
 0x179   :  { %7185 = vrot.lane.b32.xlu0 %v18789_v58, %s18136_s10  ;;  %4990 = vmatprep.subr.mxu1 %v4583_v18  ;;  %v18922_v19 = vpop.f32.mrf.mxu0 }
 0x17a   :  { %4991 = vmatpush1.msra.mxu1 %v4582_v4  ;;  %v4568_v3 = vpop.permute.xlu1 %4567  ;;  %v988_v28 = vpop.f32.mrf.mxu1 }
 0x17b   :  { %17808 = vmatmul.mubr.msk.f32.vlgmr.msra.gmra.mxu1 %vm136_vm1, %v18825_v16  ;;  %v4566_v30 = vpop.permute.xlu0 %4565  ;;  %v18927_v17 = vadd.f32 %v988_v28, %v18841_v24 }
 0x17c   :  { %7191 = vrot.lane.b32.xlu1 %v18796_v10, %s18135_s9  ;;  %v4585_v36 = vsel %vm4571_vm7, %v4566_v30, %v4568_v3  ;;  %v4584_v37 = vsel %vm4571_vm7, %v4564_v12, %v4566_v30  ;;  %v1059_v38 = vpop.f32.mrf.mxu0  ;;  %v18933_v42 = vpop.f32.mrf.mxu1  ;;  %5166 = vmatprep.mubr.f32.mxu1 %v21545_v0 }
 0x17d   :  { %7189 = vrot.lane.b32.xlu0 %v18690_v20, %s18135_s9  ;;  %5061 = vmatprep.subr.mxu0 %v4585_v36  ;;  %v18939_v44 = vadd.f32 %v1059_v38, %v18849_v31 }
 0x17e   :  { %5062 = vmatpush1.msra.mxu0 %v4584_v37  ;;  %v18941_v24 = vpop.permute.xlu1 %5189  ;;  %v18943_v46 = vpop.f32.mrf.mxu0 }
 0x17f   :  { %17809 = vmatmul.mubr.msk.f32.vlgmr.msra.gmra.mxu0 %vm136_vm1, %v18825_v16  ;;  %v4570_v49 = vpop.permute.xlu0 %4569 }
 0x180   :  { %5132 = vmatprep.subr.mxu1 %v4570_v49  ;;  %7195 = vrot.lane.b32.xlu1 %v18696_v1, %s18135_s9  ;;  %v4586_v52 = vsel %vm4571_vm7, %v4568_v3, %v4570_v49  ;;  %v1130_v54 = vpop.f32.mrf.mxu1  ;;  %vm15114_vm7 = vcmask 359424  }
 0x181   :  { %7193 = vrot.lane.b32.xlu0 %v18698_v22, %s18135_s9  ;;  %5133 = vmatpush1.msra.mxu1 %v4586_v52  ;;  %v1131_v31 = vadd.f32 %v1130_v54, %v18860_v40 }
 0x182   :  { %17810 = vmatmul.mubr.msk.f32.vlgmr.msra.gmra.mxu1 %vm136_vm1, %v18825_v16  ;;  %v5194_v6 = vpop.permute.xlu1 %5193  ;;  %v1201_v56 = vpop.f32.mrf.mxu0  ;;  %5321 = vmatprep.mubr.f32.mxu0 %v21545_v0 }
 0x183   :  { %v18957_v8 = vadd.f32 %v1201_v56, %v18873_v48  ;;  %v5192_v5 = vpop.permute.xlu0 %5191  ;;  %v18959_v60 = vpop.f32.mrf.mxu1  ;;  %5392 = vmatprep.mubr.f32.mxu1 %v21545_v0 }
 0x184   :  { %7199 = vrot.lane.b32.xlu1 %v18709_v25, %s18135_s9  ;;  %v18964_v61 = vpop.f32.mrf.mxu0  ;;  %v5224_v4 = vsel %vm5223_vm8, %v5192_v5, %v5194_v6 }
 0x185   :  { %7197 = vrot.lane.b32.xlu0 %v18713_v27, %s18135_s9  ;;  %v1272_v16 = vpop.f32.mrf.mxu1 }
 0x186   :  { %v18969_v40 = vadd.f32 %v1272_v16, %v18885_v55  ;;  %v5198_v48 = vpop.permute.xlu1 %5197 }
 0x187   :  { %v1411_v62 = vpop.f32.mrf.mxu0  ;;  %v5196_v12 = vpop.permute.xlu0 %5195 }
 0x188   :  { %v18972_v11 = vadd.f32 %v1411_v62, %v18893_v59  ;;  %v18974_v14 = vpop.f32.mrf.mxu1  ;;  %7203 = vrot.lane.b32.xlu1 %v18723_v29, %s18135_s9  ;;  %v5225_v18 = vsel %vm5223_vm8, %v5194_v6, %v5196_v12 }
 0x189   :  { %v18980_v3 = vpop.f32.mrf.mxu0  ;;  %7201 = vrot.lane.b32.xlu0 %v18725_v32, %s18135_s9  ;;  %5287 = vmatprep.subr.mxu0 %v5225_v18 }
 0x18a   :  { %v1482_v55 = vpop.f32.mrf.mxu1  ;;  %5288 = vmatpush1.msra.mxu0 %v5224_v4  ;;  %v5202_v28 = vpop.permute.xlu1 %5201 }
 0x18b   :  { %v18985_v59 = vadd.f32 %v1482_v55, %v18907_v63  ;;  %v1553_v30 = vpop.f32.mrf.mxu0  ;;  %17811 = vmatmul.mubr.msk.f32.vlgmr.msra.gmra.mxu0 %vm136_vm1, %v18941_v24  ;;  %v5200_v36 = vpop.permute.xlu0 %5199  ;;  %v5226_v63 = vsel %vm5223_vm8, %v5196_v12, %v5198_v48 }
 0x18c   :  { %v18990_v37 = vadd.f32 %v1553_v30, %v18916_v21  ;;  %v18992_v38 = vpop.f32.mrf.mxu1  ;;  %7207 = vrot.lane.b32.xlu1 %v18732_v33, %s18135_s9  ;;  %v5227_v49 = vsel %vm5223_vm8, %v5198_v48, %v5200_v36  ;;  %5463 = vmatprep.mubr.f32.mxu0 %v21545_v0 }
 0x18d   :  { %v18998_v52 = vpop.f32.mrf.mxu0  ;;  %7205 = vrot.lane.b32.xlu0 %v18734_v35, %s18135_s9  ;;  %5358 = vmatprep.subr.mxu1 %v5227_v49 }
 0x18e   :  { %v1624_v54 = vpop.f32.mrf.mxu1  ;;  %5359 = vmatpush1.msra.mxu1 %v5226_v63  ;;  %v5206_v21 = vpop.permute.xlu1 %5205 }
 0x18f   :  { %v19004_v6 = vadd.f32 %v1624_v54, %v18927_v17  ;;  %17812 = vmatmul.mubr.msk.f32.vlgmr.msra.gmra.mxu1 %vm136_vm1, %v18941_v24  ;;  %v5204_v56 = vpop.permute.xlu0 %5203  ;;  %v5228_v17 = vsel %vm5223_vm8, %v5200_v36, %v5202_v28 }
 0x190   :  { %v1695_v5 = vpop.f32.mrf.mxu0  ;;  %v19008_v16 = vpop.f32.mrf.mxu1  ;;  %7211 = vrot.lane.b32.xlu1 %v18742_v39, %s18135_s9  ;;  %v5229_v62 = vsel %vm5223_vm8, %v5202_v28, %v5204_v56  ;;  %5534 = vmatprep.mubr.f32.mxu1 %v21545_v0  ;;  %v5230_v28 = vsel %vm5223_vm8, %v5204_v56, %v5206_v21 }
 0x191   :  { %21547 = vst [vmem:[#allocation11_spill] sm:$0xff] %v19008_v16  ;;  %v19015_v48 = vadd.f32 %v1695_v5, %v18939_v44  ;;  %7209 = vrot.lane.b32.xlu0 %v18744_v41, %s18135_s9  ;;  %5429 = vmatprep.subr.mxu0 %v5229_v62 }
 0x192   :  { %5430 = vmatpush1.msra.mxu0 %v5228_v17  ;;  %v5210_v12 = vpop.permute.xlu1 %5209  ;;  %v19028_v30 = vpop.f32.mrf.mxu0 }
 0x193   :  { %v1766_v18 = vpop.f32.mrf.mxu1  ;;  %17813 = vmatmul.mubr.msk.f32.vlgmr.msra.gmra.mxu0 %vm136_vm1, %v18941_v24  ;;  %v5208_v4 = vpop.permute.xlu0 %5207  ;;  %21548 = vst [vmem:[#allocation12_spill] sm:$0xff] %v19028_v30 }
 0x194   :  { %v19022_v55 = vadd.f32 %v1766_v18, %v1131_v31  ;;  %7215 = vrot.lane.b32.xlu1 %v18755_v45, %s18135_s9  ;;  %v5231_v44 = vsel %vm5223_vm8, %v5206_v21, %v5208_v4  ;;  %5605 = vmatprep.mubr.f32.mxu0 %v21545_v0 }
 0x195   :  { %v19030_v49 = vpop.f32.mrf.mxu1  ;;  %7213 = vrot.lane.b32.xlu0 %v18757_v47, %s18135_s9  ;;  %5500 = vmatprep.subr.mxu1 %v5231_v44 }
 0x196   :  { %21549 = vst [vmem:[#allocation13_spill] sm:$0xff] %v19030_v49  ;;  %5501 = vmatpush1.msra.mxu1 %v5230_v28  ;;  %v5214_v31 = vpop.permute.xlu1 %5213  ;;  %v19445_v49 = vld [vmem:[#allocation2 + $0x10] sm:$0xff] }
 0x197   :  { %v1837_v36 = vpop.f32.mrf.mxu0  ;;  %v1908_v63 = vpop.f32.mrf.mxu1  ;;  %17814 = vmatmul.mubr.msk.f32.vlgmr.msra.gmra.mxu1 %vm136_vm1, %v18941_v24 }
 0x198   :  { %v19038_v54 = vadd.f32 %v1837_v36, %v18957_v8  ;;  %v19041_v5 = vadd.f32 %v1908_v63, %v18969_v40  ;;  %v5212_v62 = vpop.permute.xlu0 %5211  ;;  %7219 = vrot.lane.b32.xlu1 %v18768_v51, %s18135_s9  ;;  %5676 = vmatprep.mubr.f32.mxu1 %v21545_v0  ;;  %v5232_v8 = vsel %vm5223_vm8, %v5208_v4, %v5210_v12 }
 0x199   :  { %v19046_v21 = vpop.f32.mrf.mxu0  ;;  %7217 = vrot.lane.b32.xlu0 %v18770_v2, %s18135_s9  ;;  %v5233_v56 = vsel %vm5223_vm8, %v5210_v12, %v5212_v62  ;;  %v19052_v18 = vpop.f32.mrf.mxu1  ;;  %v5234_v36 = vsel %vm5223_vm8, %v5212_v62, %v5214_v31 }
 0x19a   :  { %21550 = vst [vmem:[#allocation14_spill] sm:$0xff] %v19046_v21  ;;  %5571 = vmatprep.subr.mxu0 %v5233_v56  ;;  %v5218_v17 = vpop.permute.xlu1 %5217  ;;  %21551 = vst [vmem:[#allocation15_spill] sm:$0xff] %v19052_v18 }
 0x19b   :  { %5572 = vmatpush1.msra.mxu0 %v5232_v8  ;;  %v2063_v40 = vpop.f32.mrf.mxu0 }
 0x19c   :  { %17815 = vmatmul.mubr.msk.f32.vlgmr.msra.gmra.mxu0 %vm136_vm1, %v18941_v24  ;;  %v5216_v44 = vpop.permute.xlu0 %5215  ;;  %7842 = vrot.lane.b32.xlu1 %v18783_v57, %s18137_s11  ;;  %v19059_v28 = vadd.f32 %v2063_v40, %v18972_v11 }
 0x19d   :  { %7840 = vrot.lane.b32.xlu0 %v18789_v58, %s18138_s12  ;;  %v5235_v12 = vsel %vm5223_vm8, %v5214_v31, %v5216_v44  ;;  %5747 = vmatprep.mubr.f32.mxu0 %v21545_v0  ;;  %v2134_v4 = vpop.f32.mrf.mxu1  ;;  %v19068_v8 = vpop.f32.mrf.mxu0  ;;  %v5236_v40 = vsel %vm5223_vm8, %v5216_v44, %v5218_v17 }
 0x19e   :  { %5642 = vmatprep.subr.mxu1 %v5235_v12  ;;  %v5222_v63 = vpop.permute.xlu1 %5221  ;;  %v19066_v56 = vadd.f32 %v2134_v4, %v18985_v59 }
 0x19f   :  { %5643 = vmatpush1.msra.mxu1 %v5234_v36  ;;  %v19083_v36 = vpop.f32.mrf.mxu1 }
 0x1a0   :  { %17816 = vmatmul.mubr.msk.f32.vlgmr.msra.gmra.mxu1 %vm136_vm1, %v18941_v24  ;;  %v5220_v11 = vpop.permute.xlu0 %5219  ;;  %5784 = vmatprep.subr.mxu1 %v5222_v63 }
 0x1a1   :  { %7846 = vrot.lane.b32.xlu1 %v18796_v10, %s18137_s11  ;;  %7844 = vrot.lane.b32.xlu0 %v18690_v20, %s18137_s11  ;;  %v5237_v31 = vsel %vm5223_vm8, %v5218_v17, %v5220_v11  ;;  %v5238_v62 = vsel %vm5223_vm8, %v5220_v11, %v5222_v63  ;;  %v2205_v59 = vpop.f32.mrf.mxu0  ;;  %vm15769_vm8 = vcmask 293888  }
 0x1a2   :  { %5713 = vmatprep.subr.mxu0 %v5237_v31  ;;  %5785 = vmatpush1.msra.mxu1 %v5238_v62  ;;  %v5878_v12 = vpop.permute.xlu1 %5877  ;;  %v19080_v4 = vadd.f32 %v2205_v59, %v18990_v37 }
 0x1a3   :  { %5714 = vmatpush1.msra.mxu0 %v5236_v40  ;;  %5818 = vmatprep.mubr.f32.mxu1 %v21545_v0  ;;  %v19100_v11 = vpop.f32.mrf.mxu0 }
 0x1a4   :  { %17817 = vmatmul.mubr.msk.f32.vlgmr.msra.gmra.mxu0 %vm136_vm1, %v18941_v24  ;;  %17818 = vmatmul.mubr.msk.f32.vlgmr.msra.gmra.mxu1 %vm136_vm1, %v18941_v24  ;;  %v19089_v63 = vpop.permute.xlu0 %5858  ;;  %21552 = vst [vmem:[#allocation16_spill] sm:$0xff] %v19100_v11 }
 0x1a5   :  { %7850 = vrot.lane.b32.xlu1 %v18696_v1, %s18137_s11  ;;  %7848 = vrot.lane.b32.xlu0 %v18698_v22, %s18137_s11  ;;  %v2276_v37 = vpop.f32.mrf.mxu1 }
 0x1a6   :  { %v5882_v17 = vpop.permute.xlu1 %5881  ;;  %6010 = vmatprep.mubr.f32.mxu0 %v21545_v0  ;;  %v19097_v44 = vadd.f32 %v2276_v37, %v19004_v6  ;;  %6081 = vmatprep.mubr.f32.mxu1 %v21545_v0 }
 0x1a7   :  { %v19111_v37 = vpop.f32.mrf.mxu1 }
 0x1a8   :  { %v5880_v24 = vpop.permute.xlu0 %5879  ;;  %21553 = vst [vmem:[#allocation17_spill] sm:$0xff] %v19111_v37 }
 0x1a9   :  { %7854 = vrot.lane.b32.xlu1 %v18709_v25, %s18137_s11  ;;  %7852 = vrot.lane.b32.xlu0 %v18713_v27, %s18137_s11  ;;  %v5913_v31 = vsel %vm5911_vm9, %v5880_v24, %v5882_v17  ;;  %v5912_v62 = vsel %vm5911_vm9, %v5878_v12, %v5880_v24  ;;  %v2347_v59 = vpop.f32.mrf.mxu0 }
 0x1aa   :  { %5976 = vmatprep.subr.mxu0 %v5913_v31  ;;  %v5886_v40 = vpop.permute.xlu1 %5885  ;;  %v19109_v6 = vadd.f32 %v2347_v59, %v19015_v48 }
 0x1ab   :  { %5977 = vmatpush1.msra.mxu0 %v5912_v62  ;;  %v21554_v62 = vmov 0.0   ;;  %v19125_v37 = vpop.f32.mrf.mxu0 }
 0x1ac   :  { %17819 = vmatmul.mubr.msk.f32.vlgmr.msra.gmra.mxu0 %vm136_vm1, %v19089_v63  ;;  %v5884_v0 = vpop.permute.xlu0 %5883  ;;  %21555 = vst [vmem:[#allocation18_spill] sm:$0xff] %v19125_v37 }
 0x1ad   :  { %7858 = vrot.lane.b32.xlu1 %v18723_v29, %s18137_s11  ;;  %7856 = vrot.lane.b32.xlu0 %v18725_v32, %s18137_s11  ;;  %v5915_v12 = vsel %vm5911_vm9, %v5884_v0, %v5886_v40  ;;  %v5914_v24 = vsel %vm5911_vm9, %v5882_v17, %v5884_v0  ;;  %v2418_v31 = vpop.f32.mrf.mxu1 }
 0x1ae   :  { %6047 = vmatprep.subr.mxu1 %v5915_v12  ;;  %v5890_v48 = vpop.permute.xlu1 %5889  ;;  %6152 = vmatprep.mubr.f32.mxu0 %v21554_v62  ;;  %v19123_v59 = vadd.f32 %v2418_v31, %v19022_v55 }
 0x1af   :  { %6048 = vmatpush1.msra.mxu1 %v5914_v24  ;;  %v19135_v24 = vpop.f32.mrf.mxu1 }
 0x1b0   :  { %17820 = vmatmul.mubr.msk.f32.vlgmr.msra.gmra.mxu1 %vm136_vm1, %v19089_v63  ;;  %v5888_v18 = vpop.permute.xlu0 %5887  ;;  %21556 = vst [vmem:[#allocation19_spill] sm:$0xff] %v19135_v24 }
 0x1b1   :  { %7862 = vrot.lane.b32.xlu1 %v18732_v33, %s18137_s11  ;;  %7860 = vrot.lane.b32.xlu0 %v18734_v35, %s18137_s11  ;;  %v5917_v0 = vsel %vm5911_vm9, %v5888_v18, %v5890_v48  ;;  %v5916_v17 = vsel %vm5911_vm9, %v5886_v40, %v5888_v18  ;;  %v2489_v12 = vpop.f32.mrf.mxu0 }
 0x1b2   :  { %6118 = vmatprep.subr.mxu0 %v5917_v0  ;;  %v5894_v55 = vpop.permute.xlu1 %5893  ;;  %6223 = vmatprep.mubr.f32.mxu1 %v21554_v62  ;;  %v19139_v31 = vadd.f32 %v2489_v12, %v19038_v54 }
 0x1b3   :  { %6119 = vmatpush1.msra.mxu0 %v5916_v17 }
 0x1b4   :  { %17821 = vmatmul.mubr.msk.f32.vlgmr.msra.gmra.mxu0 %vm136_vm1, %v19089_v63  ;;  %v5892_v37 = vpop.permute.xlu0 %5891  ;;  %v2560_v21 = vpop.f32.mrf.mxu1 }
 0x1b5   :  { %7866 = vrot.lane.b32.xlu1 %v18742_v39, %s18137_s11  ;;  %7864 = vrot.lane.b32.xlu0 %v18744_v41, %s18137_s11  ;;  %v5919_v18 = vsel %vm5911_vm9, %v5892_v37, %v5894_v55  ;;  %v5918_v40 = vsel %vm5911_vm9, %v5890_v48, %v5892_v37  ;;  %v19150_v0 = vadd.f32 %v2560_v21, %v19041_v5  ;;  %v19162_v48 = vpop.f32.mrf.mxu0 }
 0x1b6   :  { %6189 = vmatprep.subr.mxu1 %v5919_v18  ;;  %v5898_v54 = vpop.permute.xlu1 %5897  ;;  %6294 = vmatprep.mubr.f32.mxu0 %v21554_v62  ;;  %21557 = vst [vmem:[#allocation20_spill] sm:$0xff] %v19162_v48 }
 0x1b7   :  { %6190 = vmatpush1.msra.mxu1 %v5918_v40 }
 0x1b8   :  { %17822 = vmatmul.mubr.msk.f32.vlgmr.msra.gmra.mxu1 %vm136_vm1, %v19089_v63  ;;  %v5896_v17 = vpop.permute.xlu0 %5895 }
 0x1b9   :  { %7870 = vrot.lane.b32.xlu1 %v18755_v45, %s18137_s11  ;;  %7868 = vrot.lane.b32.xlu0 %v18757_v47, %s18137_s11  ;;  %v5921_v37 = vsel %vm5911_vm9, %v5896_v17, %v5898_v54  ;;  %v5920_v5 = vsel %vm5911_vm9, %v5894_v55, %v5896_v17 }
 0x1ba   :  { %6260 = vmatprep.subr.mxu0 %v5921_v37  ;;  %v5902_v21 = vpop.permute.xlu1 %5901  ;;  %6365 = vmatprep.mubr.f32.mxu1 %v21554_v62 }
 0x1bb   :  { %6261 = vmatpush1.msra.mxu0 %v5920_v5  ;;  %v19176_v5 = vpop.f32.mrf.mxu1 }
 0x1bc   :  { %17823 = vmatmul.mubr.msk.f32.vlgmr.msra.gmra.mxu0 %vm136_vm1, %v19089_v63  ;;  %v5900_v12 = vpop.permute.xlu0 %5899  ;;  %21558 = vst [vmem:[#allocation21_spill] sm:$0xff] %v19176_v5 }
 0x1bd   :  { %7874 = vrot.lane.b32.xlu1 %v18768_v51, %s18137_s11  ;;  %7872 = vrot.lane.b32.xlu0 %v18770_v2, %s18137_s11  ;;  %v5923_v18 = vsel %vm5911_vm9, %v5900_v12, %v5902_v21  ;;  %v5922_v55 = vsel %vm5911_vm9, %v5898_v54, %v5900_v12  ;;  %v2715_v40 = vpop.f32.mrf.mxu0 }
 0x1be   :  { %6331 = vmatprep.subr.mxu1 %v5923_v18  ;;  %v5906_v17 = vpop.permute.xlu1 %5905  ;;  %6436 = vmatprep.mubr.f32.mxu0 %v21554_v62  ;;  %v19174_v37 = vadd.f32 %v2715_v40, %v19059_v28 }
 0x1bf   :  { %6332 = vmatpush1.msra.mxu1 %v5922_v55  ;;  %v19189_v40 = vpop.f32.mrf.mxu0 }
 0x1c0   :  { %17824 = vmatmul.mubr.msk.f32.vlgmr.msra.gmra.mxu1 %vm136_vm1, %v19089_v63  ;;  %v5904_v48 = vpop.permute.xlu0 %5903 }
 0x1c1   :  { %8497 = vrot.lane.b32.xlu1 %v18783_v57, %s18139_s13  ;;  %8495 = vrot.lane.b32.xlu0 %v18789_v58, %s18140_s14  ;;  %v5925_v54 = vsel %vm5911_vm9, %v5904_v48, %v5906_v17  ;;  %v5924_v12 = vsel %vm5911_vm9, %v5902_v21, %v5904_v48  ;;  %v2786_v28 = vpop.f32.mrf.mxu1 }
 0x1c2   :  { %6402 = vmatprep.subr.mxu0 %v5925_v54  ;;  %v5910_v18 = vpop.permute.xlu1 %5909  ;;  %6507 = vmatprep.mubr.f32.mxu1 %v21554_v62  ;;  %v19187_v55 = vadd.f32 %v2786_v28, %v19066_v56 }
 0x1c3   :  { %6403 = vmatpush1.msra.mxu0 %v5924_v12  ;;  %v19207_v24 = vpop.f32.mrf.mxu1 }
 0x1c4   :  { %17825 = vmatmul.mubr.msk.f32.vlgmr.msra.gmra.mxu0 %vm136_vm1, %v19089_v63  ;;  %v5908_v5 = vpop.permute.xlu0 %5907 }
 0x1c5   :  { %8501 = vrot.lane.b32.xlu1 %v18796_v10, %s18139_s13  ;;  %8499 = vrot.lane.b32.xlu0 %v18690_v20, %s18139_s13  ;;  %v5927_v21 = vsel %vm5911_vm9, %v5908_v5, %v5910_v18  ;;  %v5926_v48 = vsel %vm5911_vm9, %v5906_v17, %v5908_v5  ;;  %v2857_v54 = vpop.f32.mrf.mxu0  ;;  %vm16424_vm9 = vcmask 285696  }
 0x1c6   :  { %6473 = vmatprep.subr.mxu1 %v5927_v21  ;;  %v6533_v56 = vpop.permute.xlu1 %6532  ;;  %v19200_v12 = vadd.f32 %v2857_v54, %v19080_v4  ;;  %6665 = vmatprep.mubr.f32.mxu0 %v21554_v62 }
 0x1c7   :  { %6474 = vmatpush1.msra.mxu1 %v5926_v48 }
 0x1c8   :  { %17826 = vmatmul.mubr.msk.f32.vlgmr.msra.gmra.mxu1 %vm136_vm1, %v19089_v63  ;;  %v19205_v28 = vpop.permute.xlu0 %6530  ;;  %v19217_v63 = vpop.f32.mrf.mxu0 }
 0x1c9   :  { %8505 = vrot.lane.b32.xlu1 %v18696_v1, %s18139_s13  ;;  %8503 = vrot.lane.b32.xlu0 %v18698_v22, %s18139_s13  ;;  %21559 = vst [vmem:[#allocation22_spill] sm:$0xff] %v19217_v63 }
 0x1ca   :  { %v6537_v20 = vpop.permute.xlu1 %6536  ;;  %v2928_v4 = vpop.f32.mrf.mxu1  ;;  %6736 = vmatprep.mubr.f32.mxu1 %v21554_v62 }
 0x1cb   :  { %v19215_v17 = vadd.f32 %v2928_v4, %v19097_v44 }
 0x1cc   :  { %v6535_v5 = vpop.permute.xlu0 %6534  ;;  %v19230_v54 = vpop.f32.mrf.mxu1 }
 0x1cd   :  { %8509 = vrot.lane.b32.xlu1 %v18709_v25, %s18139_s13  ;;  %8507 = vrot.lane.b32.xlu0 %v18713_v27, %s18139_s13  ;;  %v6568_v1 = vsel %vm6566_vm10, %v6535_v5, %v6537_v20  ;;  %v6567_v22 = vsel %vm6566_vm10, %v6533_v56, %v6535_v5  ;;  %21560 = vst [vmem:[#allocation23_spill] sm:$0xff] %v19230_v54  ;;  %v19431_v54 = vld [vmem:[#allocation2 + $0x78] sm:$0xff] }
 0x1ce   :  { %6631 = vmatprep.subr.mxu0 %v6568_v1  ;;  %v6541_v18 = vpop.permute.xlu1 %6540  ;;  %v2999_v21 = vpop.f32.mrf.mxu0 }
 0x1cf   :  { %6632 = vmatpush1.msra.mxu0 %v6567_v22  ;;  %v19226_v44 = vadd.f32 %v2999_v21, %v19109_v6 }
 0x1d0   :  { %17827 = vmatmul.mubr.msk.f32.vlgmr.msra.gmra.mxu0 %vm136_vm1, %v19205_v28  ;;  %v6539_v48 = vpop.permute.xlu0 %6538 }
 0x1d1   :  { %8513 = vrot.lane.b32.xlu1 %v18723_v29, %s18139_s13  ;;  %8511 = vrot.lane.b32.xlu0 %v18725_v32, %s18139_s13  ;;  %v6570_v25 = vsel %vm6566_vm10, %v6539_v48, %v6541_v18  ;;  %v6569_v27 = vsel %vm6566_vm10, %v6537_v20, %v6539_v48  ;;  %v19248_v32 = vpop.f32.mrf.mxu0 }
 0x1d2   :  { %6702 = vmatprep.subr.mxu1 %v6570_v25  ;;  %v6545_v56 = vpop.permute.xlu1 %6544  ;;  %6807 = vmatprep.mubr.f32.mxu0 %v21554_v62  ;;  %v3070_v6 = vpop.f32.mrf.mxu1  ;;  %21562 = vst [vmem:[#allocation25_spill] sm:$0xff] %v19248_v32  ;;  %v19416_v32 = vld [vmem:[#allocation2 + $0x68] sm:$0xff] }
 0x1d3   :  { %6703 = vmatpush1.msra.mxu1 %v6569_v27  ;;  %v19240_v4 = vadd.f32 %v3070_v6, %v19123_v59 }
 0x1d4   :  { %17828 = vmatmul.mubr.msk.f32.vlgmr.msra.gmra.mxu1 %vm136_vm1, %v19205_v28  ;;  %v6543_v29 = vpop.permute.xlu0 %6542  ;;  %v19244_v5 = vpop.f32.mrf.mxu1 }
 0x1d5   :  { %21561 = vst [vmem:[#allocation24_spill] sm:$0xff] %v19244_v5  ;;  %8517 = vrot.lane.b32.xlu1 %v18732_v33, %s18139_s13  ;;  %8515 = vrot.lane.b32.xlu0 %v18734_v35, %s18139_s13  ;;  %v6572_v20 = vsel %vm6566_vm10, %v6543_v29, %v6545_v56  ;;  %v6571_v1 = vsel %vm6566_vm10, %v6541_v18, %v6543_v29  ;;  %v19412_v5 = vld [vmem:[#allocation2 + $0x70] sm:$0xff] }
 0x1d6   :  { %6773 = vmatprep.subr.mxu0 %v6572_v20  ;;  %v6549_v59 = vpop.permute.xlu1 %6548  ;;  %6878 = vmatprep.mubr.f32.mxu1 %v21554_v62  ;;  %v3212_v22 = vpop.f32.mrf.mxu1 }
 0x1d7   :  { %6774 = vmatpush1.msra.mxu0 %v6571_v1  ;;  %v3141_v21 = vpop.f32.mrf.mxu0  ;;  %v19256_v48 = vadd.f32 %v3212_v22, %v19150_v0 }
 0x1d8   :  { %17829 = vmatmul.mubr.msk.f32.vlgmr.msra.gmra.mxu0 %vm136_vm1, %v19205_v28  ;;  %v6547_v33 = vpop.permute.xlu0 %6546  ;;  %v19261_v35 = vadd.f32 %v3141_v21, %v19139_v31  ;;  %v19284_v20 = vpop.f32.mrf.mxu1 }
 0x1d9   :  { %8521 = vrot.lane.b32.xlu1 %v18742_v39, %s18139_s13  ;;  %8519 = vrot.lane.b32.xlu0 %v18744_v41, %s18139_s13  ;;  %v6574_v18 = vsel %vm6566_vm10, %v6547_v33, %v6549_v59  ;;  %v6573_v25 = vsel %vm6566_vm10, %v6545_v56, %v6547_v33  ;;  %v19272_v27 = vpop.f32.mrf.mxu0  ;;  %21564 = vst [vmem:[#allocation27_spill] sm:$0xff] %v19284_v20  ;;  %v19378_v20 = vld [vmem:[#allocation2 + $0x50] sm:$0xff] }
 0x1da   :  { %6844 = vmatprep.subr.mxu1 %v6574_v18  ;;  %v6553_v0 = vpop.permute.xlu1 %6552  ;;  %6949 = vmatprep.mubr.f32.mxu0 %v21554_v62  ;;  %21563 = vst [vmem:[#allocation26_spill] sm:$0xff] %v19272_v27 }
 0x1db   :  { %6845 = vmatpush1.msra.mxu1 %v6573_v25 }
 0x1dc   :  { %17830 = vmatmul.mubr.msk.f32.vlgmr.msra.gmra.mxu1 %vm136_vm1, %v19205_v28  ;;  %v6551_v31 = vpop.permute.xlu0 %6550 }
 0x1dd   :  { %8525 = vrot.lane.b32.xlu1 %v18755_v45, %s18139_s13  ;;  %8523 = vrot.lane.b32.xlu0 %v18757_v47, %s18139_s13  ;;  %v6576_v39 = vsel %vm6566_vm10, %v6551_v31, %v6553_v0  ;;  %v6575_v41 = vsel %vm6566_vm10, %v6549_v59, %v6551_v31 }
 0x1de   :  { %6915 = vmatprep.subr.mxu0 %v6576_v39  ;;  %v6557_v56 = vpop.permute.xlu1 %6556  ;;  %7020 = vmatprep.mubr.f32.mxu1 %v21554_v62  ;;  %v3367_v6 = vpop.f32.mrf.mxu0 }
 0x1df   :  { %6916 = vmatpush1.msra.mxu0 %v6575_v41  ;;  %v19282_v29 = vadd.f32 %v3367_v6, %v19174_v37 }
 0x1e0   :  { %17831 = vmatmul.mubr.msk.f32.vlgmr.msra.gmra.mxu0 %vm136_vm1, %v19205_v28  ;;  %v6555_v45 = vpop.permute.xlu0 %6554  ;;  %v19300_v21 = vpop.f32.mrf.mxu0 }
 0x1e1   :  { %8529 = vrot.lane.b32.xlu1 %v18768_v51, %s18139_s13  ;;  %8527 = vrot.lane.b32.xlu0 %v18770_v2, %s18139_s13  ;;  %v6578_v47 = vsel %vm6566_vm10, %v6555_v45, %v6557_v56  ;;  %v6577_v1 = vsel %vm6566_vm10, %v6553_v0, %v6555_v45  ;;  %v19302_v2 = vld [vmem:[#allocation2 + $0x8] sm:$0xff] }
 0x1e2   :  { %6986 = vmatprep.subr.mxu1 %v6578_v47  ;;  %v6561_v59 = vpop.permute.xlu1 %6560  ;;  %7091 = vmatprep.mubr.f32.mxu0 %v21554_v62  ;;  %v3438_v37 = vpop.f32.mrf.mxu1 }
 0x1e3   :  { %6987 = vmatpush1.msra.mxu1 %v6577_v1  ;;  %v19296_v22 = vadd.f32 %v3438_v37, %v19187_v55 }
 0x1e4   :  { %17832 = vmatmul.mubr.msk.f32.vlgmr.msra.gmra.mxu1 %vm136_vm1, %v19205_v28  ;;  %v6559_v51 = vpop.permute.xlu0 %6558  ;;  %v19316_v39 = vpop.f32.mrf.mxu1 }
 0x1e5   :  { %9154 = vrot.lane.b32.xlu1 %v19302_v2, %s18141_s15  ;;  %9150 = vrot.lane.b32.xlu0 %v18789_v58, %s18141_s15  ;;  %v6580_v33 = vsel %vm6566_vm10, %v6559_v51, %v6561_v59  ;;  %v6579_v55 = vsel %vm6566_vm10, %v6557_v56, %v6559_v51  ;;  %21565 = vst [vmem:[#allocation28_spill] sm:$0xff] %v19316_v39  ;;  %v19318_v58 = vld [vmem:[#allocation2 + $0x18] sm:$0xff]  ;;  %v19346_v51 = vld [vmem:[#allocation2 + $0x30] sm:$0xff] }
 0x1e6   :  { %7057 = vmatprep.subr.mxu0 %v6580_v33  ;;  %v6565_v18 = vpop.permute.xlu1 %6564  ;;  %7162 = vmatprep.mubr.f32.mxu1 %v21554_v62  ;;  %v3509_v25 = vpop.f32.mrf.mxu0 }
 0x1e7   :  { %7058 = vmatpush1.msra.mxu0 %v6579_v55  ;;  %v19312_v0 = vadd.f32 %v3509_v25, %v19200_v12 }
 0x1e8   :  { %17833 = vmatmul.mubr.msk.f32.vlgmr.msra.gmra.mxu0 %vm136_vm1, %v19205_v28  ;;  %v6563_v31 = vpop.permute.xlu0 %6562  ;;  %v19334_v1 = vpop.f32.mrf.mxu0 }
 0x1e9   :  { %9158 = vrot.lane.b32.xlu1 %v19318_v58, %s18141_s15  ;;  %9156 = vrot.lane.b32.xlu0 %v18796_v10, %s18141_s15  ;;  %v6582_v41 = vsel %vm6566_vm10, %v6563_v31, %v6565_v18  ;;  %v6581_v56 = vsel %vm6566_vm10, %v6561_v59, %v6563_v31  ;;  %21566 = vst [vmem:[#allocation29_spill] sm:$0xff] %v19334_v1  ;;  %v19338_v10 = vld [vmem:[#allocation2 + $0x20] sm:$0xff]  ;;  %vm17079_vm10 = vcmask 277504  }
 0x1ea   :  { %7128 = vmatprep.subr.mxu1 %v6582_v41  ;;  %v7188_v12 = vpop.permute.xlu1 %7187  ;;  %v3580_v6 = vpop.f32.mrf.mxu1  ;;  %7320 = vmatprep.mubr.f32.mxu0 %v21554_v62  ;;  %v19360_v31 = vld [vmem:[#allocation2 + $0x40] sm:$0xff]  ;;  %v19364_v41 = vld [vmem:[#allocation2 + $0x38] sm:$0xff] }
 0x1eb   :  { %7129 = vmatpush1.msra.mxu1 %v6581_v56  ;;  %v19328_v45 = vadd.f32 %v3580_v6, %v19215_v17 }
 0x1ec   :  { %17834 = vmatmul.mubr.msk.f32.vlgmr.msra.gmra.mxu1 %vm136_vm1, %v19205_v28  ;;  %v19332_v47 = vpop.permute.xlu0 %7185  ;;  %v19356_v25 = vpop.f32.mrf.mxu1 }
 0x1ed   :  { %9152 = vrot.lane.b32.xlu1 %v18783_v57, %s18141_s15  ;;  %9160 = vrot.lane.b32.xlu0 %v19338_v10, %s18141_s15  ;;  %v19350_v57 = vld [vmem:[#allocation2 + $0x28] sm:$0xff]  ;;  %21567 = vst [vmem:[#allocation30_spill] sm:$0xff] %v19356_v25  ;;  %v19396_v25 = vld [vmem:[#allocation2 + $0x60] sm:$0xff] }
 0x1ee   :  { %v7192_v59 = vpop.permute.xlu1 %7191  ;;  %v3651_v37 = vpop.f32.mrf.mxu0  ;;  %7391 = vmatprep.mubr.f32.mxu1 %v21554_v62 }
 0x1ef   :  { %v19344_v17 = vadd.f32 %v3651_v37, %v19226_v44 }
 0x1f0   :  { %v7190_v28 = vpop.permute.xlu0 %7189 }
 0x1f1   :  { %9164 = vrot.lane.b32.xlu1 %v19346_v51, %s18141_s15  ;;  %9162 = vrot.lane.b32.xlu0 %v19350_v57, %s18141_s15  ;;  %v7223_v33 = vsel %vm7221_vm11, %v7190_v28, %v7192_v59  ;;  %v7222_v55 = vsel %vm7221_vm11, %v7188_v12, %v7190_v28 }
 0x1f2   :  { %7286 = vmatprep.subr.mxu0 %v7223_v33  ;;  %v7196_v18 = vpop.permute.xlu1 %7195  ;;  %v19374_v33 = vpop.f32.mrf.mxu0 }
 0x1f3   :  { %7287 = vmatpush1.msra.mxu0 %v7222_v55  ;;  %21568 = vst [vmem:[#allocation31_spill] sm:$0xff] %v19374_v33 }
 0x1f4   :  { %17835 = vmatmul.mubr.msk.f32.vlgmr.msra.gmra.mxu0 %vm136_vm1, %v19332_v47  ;;  %v7194_v44 = vpop.permute.xlu0 %7193 }
 0x1f5   :  { %9168 = vrot.lane.b32.xlu1 %v19360_v31, %s18141_s15  ;;  %9166 = vrot.lane.b32.xlu0 %v19364_v41, %s18141_s15  ;;  %v7225_v56 = vsel %vm7221_vm11, %v7194_v44, %v7196_v18  ;;  %v7224_v12 = vsel %vm7221_vm11, %v7192_v59, %v7194_v44  ;;  %v3722_v6 = vpop.f32.mrf.mxu1  ;;  %v19382_v59 = vld [vmem:[#allocation2 + $0x48] sm:$0xff] }
 0x1f6   :  { %7357 = vmatprep.subr.mxu1 %v7225_v56  ;;  %v7200_v37 = vpop.permute.xlu1 %7199  ;;  %v19371_v28 = vadd.f32 %v3722_v6, %v19240_v4  ;;  %7462 = vmatprep.mubr.f32.mxu0 %v21554_v62 }
 0x1f7   :  { %7358 = vmatpush1.msra.mxu1 %v7224_v12  ;;  %v19389_v6 = vpop.f32.mrf.mxu1 }
 0x1f8   :  { %17836 = vmatmul.mubr.msk.f32.vlgmr.msra.gmra.mxu1 %vm136_vm1, %v19332_v47  ;;  %v7198_v55 = vpop.permute.xlu0 %7197  ;;  %21569 = vst [vmem:[#allocation32_spill] sm:$0xff] %v19389_v6 }
 0x1f9   :  { %9172 = vrot.lane.b32.xlu1 %v19378_v20, %s18141_s15  ;;  %9170 = vrot.lane.b32.xlu0 %v19382_v59, %s18141_s15  ;;  %v7227_v4 = vsel %vm7221_vm11, %v7198_v55, %v7200_v37  ;;  %v7226_v44 = vsel %vm7221_vm11, %v7196_v18, %v7198_v55  ;;  %v19400_v18 = vld [vmem:[#allocation2 + $0x58] sm:$0xff] }
 0x1fa   :  { %7428 = vmatprep.subr.mxu0 %v7227_v4  ;;  %v7204_v56 = vpop.permute.xlu1 %7203  ;;  %v3793_v12 = vpop.f32.mrf.mxu0  ;;  %7533 = vmatprep.mubr.f32.mxu1 %v21554_v62 }
 0x1fb   :  { %7429 = vmatpush1.msra.mxu0 %v7226_v44  ;;  %v19392_v27 = vadd.f32 %v3793_v12, %v19261_v35 }
 0x1fc   :  { %17837 = vmatmul.mubr.msk.f32.vlgmr.msra.gmra.mxu0 %vm136_vm1, %v19332_v47  ;;  %v7202_v33 = vpop.permute.xlu0 %7201 }
 0x1fd   :  { %9176 = vrot.lane.b32.xlu1 %v19396_v25, %s18141_s15  ;;  %9174 = vrot.lane.b32.xlu0 %v19400_v18, %s18141_s15  ;;  %v7229_v55 = vsel %vm7221_vm11, %v7202_v33, %v7204_v56  ;;  %v3864_v4 = vpop.f32.mrf.mxu1  ;;  %v7228_v35 = vsel %vm7221_vm11, %v7200_v37, %v7202_v33 }
 0x1fe   :  { %7499 = vmatprep.subr.mxu1 %v7229_v55  ;;  %v19407_v44 = vadd.f32 %v3864_v4, %v19256_v48  ;;  %v7208_v12 = vpop.permute.xlu1 %7207  ;;  %7604 = vmatprep.mubr.f32.mxu0 %v21554_v62  ;;  %v19425_v4 = vpop.f32.mrf.mxu0 }
 0x1ff   :  { %7500 = vmatpush1.msra.mxu1 %v7228_v35  ;;  %21570 = vst [vmem:[#allocation33_spill] sm:$0xff] %v19425_v4  ;;  %v19427_v35 = vld [vmem:[#allocation2 + $0x80] sm:$0xff]  ;;  %v19443_v63 = vpop.f32.mrf.mxu1 }
 0x200   :  { %17838 = vmatmul.mubr.msk.f32.vlgmr.msra.gmra.mxu1 %vm136_vm1, %v19332_v47  ;;  %v7206_v6 = vpop.permute.xlu0 %7205  ;;  %21571 = vst [vmem:[#allocation34_spill] sm:$0xff] %v19443_v63 }
 0x201   :  { %9180 = vrot.lane.b32.xlu1 %v19412_v5, %s18141_s15  ;;  %9178 = vrot.lane.b32.xlu0 %v19416_v32, %s18141_s15  ;;  %v7231_v48 = vsel %vm7221_vm11, %v7206_v6, %v7208_v12  ;;  %v7230_v37 = vsel %vm7221_vm11, %v7204_v56, %v7206_v6 }
 0x202   :  { %7570 = vmatprep.subr.mxu0 %v7231_v48  ;;  %v7212_v33 = vpop.permute.xlu1 %7211  ;;  %7675 = vmatprep.mubr.f32.mxu1 %v21554_v62 }
 0x203   :  { %7571 = vmatpush1.msra.mxu0 %v7230_v37 }
 0x204   :  { %17839 = vmatmul.mubr.msk.f32.vlgmr.msra.gmra.mxu0 %vm136_vm1, %v19332_v47  ;;  %v7210_v55 = vpop.permute.xlu0 %7209 }
 0x205   :  { %9184 = vrot.lane.b32.xlu1 %v19427_v35, %s18141_s15  ;;  %9182 = vrot.lane.b32.xlu0 %v19431_v54, %s18141_s15  ;;  %v7233_v56 = vsel %vm7221_vm11, %v7210_v55, %v7212_v33  ;;  %v7232_v6 = vsel %vm7221_vm11, %v7208_v12, %v7210_v55 }
 0x206   :  { %7641 = vmatprep.subr.mxu1 %v7233_v56  ;;  %v7216_v48 = vpop.permute.xlu1 %7215  ;;  %7746 = vmatprep.mubr.f32.mxu0 %v21554_v62 }
 0x207   :  { %7642 = vmatpush1.msra.mxu1 %v7232_v6  ;;  %v4019_v37 = vpop.f32.mrf.mxu0 }
 0x208   :  { %v19439_v4 = vadd.f32 %v4019_v37, %v19282_v29  ;;  %17840 = vmatmul.mubr.msk.f32.vlgmr.msra.gmra.mxu1 %vm136_vm1, %v19332_v47  ;;  %v7214_v1 = vpop.permute.xlu0 %7213 }
 0x209   :  { %9811 = vrot.lane.b32.xlu1 %v19445_v49, %s18142_s16  ;;  %9809 = vrot.lane.b32.xlu0 %v19302_v2, %s18142_s16  ;;  %v7235_v12 = vsel %vm7221_vm11, %v7214_v1, %v7216_v48  ;;  %v7234_v29 = vsel %vm7221_vm11, %v7212_v33, %v7214_v1  ;;  %v19459_v63 = vpop.f32.mrf.mxu0 }
 0x20a   :  { %7712 = vmatprep.subr.mxu0 %v7235_v12  ;;  %v7220_v55 = vpop.permute.xlu1 %7219  ;;  %7817 = vmatprep.mubr.f32.mxu1 %v21554_v62  ;;  %21572 = vst [vmem:[#allocation35_spill] sm:$0xff] %v19459_v63  ;;  %v18025_v63 = vld [vmem:[#allocation5] sm:$0xff] }
 0x20b   :  { %7713 = vmatpush1.msra.mxu0 %v7234_v29  ;;  %v4090_v56 = vpop.f32.mrf.mxu1 }
 0x20c   :  { %v19455_v6 = vadd.f32 %v4090_v56, %v19296_v22  ;;  %17841 = vmatmul.mubr.msk.f32.vlgmr.msra.gmra.mxu0 %vm136_vm1, %v19332_v47  ;;  %v7218_v37 = vpop.permute.xlu0 %7217 }
 0x20d   :  { %9815 = vrot.lane.b32.xlu1 %v19338_v10, %s18142_s16  ;;  %9813 = vrot.lane.b32.xlu0 %v19318_v58, %s18142_s16  ;;  %v7237_v1 = vsel %vm7221_vm11, %v7218_v37, %v7220_v55  ;;  %v7236_v33 = vsel %vm7221_vm11, %v7216_v48, %v7218_v37  ;;  %v19475_v30 = vpop.f32.mrf.mxu1  ;;  %v19478_v48 = vld [vmem:[#allocation2] sm:$0xff] }
 0x20e   :  { %7783 = vmatprep.subr.mxu1 %v7237_v1  ;;  %v7843_v12 = vpop.permute.xlu1 %7842  ;;  %7975 = vmatprep.mubr.f32.mxu0 %v21554_v62  ;;  %21573 = vst [vmem:[#allocation36_spill] sm:$0xff] %v19475_v30 }
 0x20f   :  { %7784 = vmatpush1.msra.mxu1 %v7236_v33  ;;  %v4161_v22 = vpop.f32.mrf.mxu0 }
 0x210   :  { %v19469_v29 = vadd.f32 %v4161_v22, %v19312_v0  ;;  %17842 = vmatmul.mubr.msk.f32.vlgmr.msra.gmra.mxu1 %vm136_vm1, %v19332_v47  ;;  %v19473_v56 = vpop.permute.xlu0 %7840 }
 0x211   :  { %9805 = vrot.lane.b32.xlu1 %v18025_v63, %s18142_s16  ;;  %9807 = vrot.lane.b32.xlu0 %v19478_v48, %s18142_s16  ;;  %v19486_v1 = vpop.f32.mrf.mxu0 }
 0x212   :  { %8046 = vmatprep.mubr.f32.mxu1 %v21554_v62  ;;  %21574 = vst [vmem:[#allocation37_spill] sm:$0xff] %v19486_v1 }
 0x213   :  { %v7847_v0 = vpop.permute.xlu1 %7846  ;;  %v4232_v55 = vpop.f32.mrf.mxu1 }
 0x214   :  { %v19484_v37 = vadd.f32 %v4232_v55, %v19328_v45  ;;  %v7845_v47 = vpop.permute.xlu0 %7844 }
 0x215   :  { %9819 = vrot.lane.b32.xlu1 %v19346_v51, %s18142_s16  ;;  %9817 = vrot.lane.b32.xlu0 %v19350_v57, %s18142_s16  ;;  %v7878_v63 = vsel %vm7876_vm12, %v7845_v47, %v7847_v0  ;;  %v7877_v33 = vsel %vm7876_vm12, %v7843_v12, %v7845_v47  ;;  %v19499_v1 = vpop.f32.mrf.mxu1 }
 0x216   :  { %7941 = vmatprep.subr.mxu0 %v7878_v63  ;;  %21575 = vst [vmem:[#allocation38_spill] sm:$0xff] %v19499_v1 }
 0x217   :  { %7942 = vmatpush1.msra.mxu0 %v7877_v33  ;;  %v7851_v22 = vpop.permute.xlu1 %7850  ;;  %v4303_v30 = vpop.f32.mrf.mxu0 }
 0x218   :  { %v19495_v45 = vadd.f32 %v4303_v30, %v19344_v17  ;;  %17843 = vmatmul.mubr.msk.f32.vlgmr.msra.gmra.mxu0 %vm136_vm1, %v19473_v56  ;;  %v7849_v55 = vpop.permute.xlu0 %7848 }
 0x219   :  { %9823 = vrot.lane.b32.xlu1 %v19360_v31, %s18142_s16  ;;  %9821 = vrot.lane.b32.xlu0 %v19364_v41, %s18142_s16  ;;  %v7880_v12 = vsel %vm7876_vm12, %v7849_v55, %v7851_v22  ;;  %v7879_v47 = vsel %vm7876_vm12, %v7847_v0, %v7849_v55  ;;  %v19513_v1 = vpop.f32.mrf.mxu0 }
 0x21a   :  { %8012 = vmatprep.subr.mxu1 %v7880_v12  ;;  %8117 = vmatprep.mubr.f32.mxu0 %v21554_v62  ;;  %21576 = vst [vmem:[#allocation39_spill] sm:$0xff] %v19513_v1 }
 0x21b   :  { %8013 = vmatpush1.msra.mxu1 %v7879_v47  ;;  %v7855_v30 = vpop.permute.xlu1 %7854  ;;  %v4374_v17 = vpop.f32.mrf.mxu1 }
 0x21c   :  { %v19509_v63 = vadd.f32 %v4374_v17, %v19371_v28  ;;  %17844 = vmatmul.mubr.msk.f32.vlgmr.msra.gmra.mxu1 %vm136_vm1, %v19473_v56  ;;  %v7853_v33 = vpop.permute.xlu0 %7852 }
 0x21d   :  { %9827 = vrot.lane.b32.xlu1 %v19378_v20, %s18142_s16  ;;  %v19517_v11 = vpop.f32.mrf.mxu1  ;;  %9825 = vrot.lane.b32.xlu0 %v19382_v59, %s18142_s16  ;;  %v7882_v0 = vsel %vm7876_vm12, %v7853_v33, %v7855_v30  ;;  %v7881_v55 = vsel %vm7876_vm12, %v7851_v22, %v7853_v33 }
 0x21e   :  { %21577 = vst [vmem:[#allocation40_spill] sm:$0xff] %v19517_v11  ;;  %8083 = vmatprep.subr.mxu0 %v7882_v0  ;;  %8188 = vmatprep.mubr.f32.mxu1 %v21554_v62 }
 0x21f   :  { %8084 = vmatpush1.msra.mxu0 %v7881_v55  ;;  %v7859_v28 = vpop.permute.xlu1 %7858  ;;  %v4445_v12 = vpop.f32.mrf.mxu0 }
 0x220   :  { %v19525_v47 = vadd.f32 %v4445_v12, %v19392_v27  ;;  %v4516_v17 = vpop.f32.mrf.mxu1  ;;  %17845 = vmatmul.mubr.msk.f32.vlgmr.msra.gmra.mxu0 %vm136_vm1, %v19473_v56  ;;  %v7857_v11 = vpop.permute.xlu0 %7856 }
 0x221   :  { %v19530_v1 = vadd.f32 %v4516_v17, %v19407_v44  ;;  %9831 = vrot.lane.b32.xlu1 %v19396_v25, %s18142_s16  ;;  %9829 = vrot.lane.b32.xlu0 %v19400_v18, %s18142_s16  ;;  %v7884_v22 = vsel %vm7876_vm12, %v7857_v11, %v7859_v28  ;;  %v7883_v33 = vsel %vm7876_vm12, %v7855_v30, %v7857_v11  ;;  %v19541_v0 = vpop.f32.mrf.mxu0 }
 0x222   :  { %8154 = vmatprep.subr.mxu1 %v7884_v22  ;;  %8259 = vmatprep.mubr.f32.mxu0 %v21554_v62  ;;  %21578 = vst [vmem:[#allocation41_spill] sm:$0xff] %v19541_v0 }
 0x223   :  { %8155 = vmatpush1.msra.mxu1 %v7883_v33  ;;  %v7863_v27 = vpop.permute.xlu1 %7862  ;;  %v19555_v33 = vpop.f32.mrf.mxu1 }
 0x224   :  { %17846 = vmatmul.mubr.msk.f32.vlgmr.msra.gmra.mxu1 %vm136_vm1, %v19473_v56  ;;  %v7861_v44 = vpop.permute.xlu0 %7860  ;;  %21579 = vst [vmem:[#allocation42_spill] sm:$0xff] %v19555_v33 }
 0x225   :  { %9835 = vrot.lane.b32.xlu1 %v19412_v5, %s18142_s16  ;;  %9833 = vrot.lane.b32.xlu0 %v19416_v32, %s18142_s16  ;;  %v7886_v55 = vsel %vm7876_vm12, %v7861_v44, %v7863_v27  ;;  %v7885_v11 = vsel %vm7876_vm12, %v7859_v28, %v7861_v44 }
 0x226   :  { %8225 = vmatprep.subr.mxu0 %v7886_v55  ;;  %8330 = vmatprep.mubr.f32.mxu1 %v21554_v62 }
 0x227   :  { %8226 = vmatpush1.msra.mxu0 %v7885_v11  ;;  %v7867_v30 = vpop.permute.xlu1 %7866  ;;  %v4671_v12 = vpop.f32.mrf.mxu0 }
 0x228   :  { %v19551_v17 = vadd.f32 %v4671_v12, %v19439_v4  ;;  %17847 = vmatmul.mubr.msk.f32.vlgmr.msra.gmra.mxu0 %vm136_vm1, %v19473_v56  ;;  %v7865_v22 = vpop.permute.xlu0 %7864 }
 0x229   :  { %9839 = vrot.lane.b32.xlu1 %v19427_v35, %s18142_s16  ;;  %9837 = vrot.lane.b32.xlu0 %v19431_v54, %s18142_s16  ;;  %v7888_v28 = vsel %vm7876_vm12, %v7865_v22, %v7867_v30  ;;  %v7887_v44 = vsel %vm7876_vm12, %v7863_v27, %v7865_v22  ;;  %v19569_v33 = vpop.f32.mrf.mxu0 }
 0x22a   :  { %8296 = vmatprep.subr.mxu1 %v7888_v28  ;;  %8401 = vmatprep.mubr.f32.mxu0 %v21554_v62  ;;  %21580 = vst [vmem:[#allocation43_spill] sm:$0xff] %v19569_v33 }
 0x22b   :  { %8297 = vmatpush1.msra.mxu1 %v7887_v44  ;;  %v7871_v4 = vpop.permute.xlu1 %7870  ;;  %v4742_v55 = vpop.f32.mrf.mxu1 }
 0x22c   :  { %v19565_v11 = vadd.f32 %v4742_v55, %v19455_v6  ;;  %17848 = vmatmul.mubr.msk.f32.vlgmr.msra.gmra.mxu1 %vm136_vm1, %v19473_v56  ;;  %v7869_v12 = vpop.permute.xlu0 %7868 }
 0x22d   :  { %10464 = vrot.lane.b32.xlu1 %v19445_v49, %s18143_s17  ;;  %10462 = vrot.lane.b32.xlu0 %v19302_v2, %s18143_s17  ;;  %v7890_v27 = vsel %vm7876_vm12, %v7869_v12, %v7871_v4  ;;  %v7889_v22 = vsel %vm7876_vm12, %v7867_v30, %v7869_v12  ;;  %v19583_v0 = vpop.f32.mrf.mxu1 }
 0x22e   :  { %8367 = vmatprep.subr.mxu0 %v7890_v27  ;;  %8472 = vmatprep.mubr.f32.mxu1 %v21554_v62  ;;  %21581 = vst [vmem:[#allocation44_spill] sm:$0xff] %v19583_v0 }
 0x22f   :  { %8368 = vmatpush1.msra.mxu0 %v7889_v22  ;;  %v7875_v6 = vpop.permute.xlu1 %7874  ;;  %v4813_v28 = vpop.f32.mrf.mxu0 }
 0x230   :  { %v19579_v44 = vadd.f32 %v4813_v28, %v19469_v29  ;;  %17849 = vmatmul.mubr.msk.f32.vlgmr.msra.gmra.mxu0 %vm136_vm1, %v19473_v56  ;;  %v7873_v55 = vpop.permute.xlu0 %7872 }
 0x231   :  { %10468 = vrot.lane.b32.xlu1 %v19338_v10, %s18143_s17  ;;  %10466 = vrot.lane.b32.xlu0 %v19318_v58, %s18143_s17  ;;  %v7892_v30 = vsel %vm7876_vm12, %v7873_v55, %v7875_v6  ;;  %v7891_v12 = vsel %vm7876_vm12, %v7871_v4, %v7873_v55  ;;  %v19599_v0 = vpop.f32.mrf.mxu0 }
 0x232   :  { %8438 = vmatprep.subr.mxu1 %v7892_v30  ;;  %8630 = vmatprep.mubr.f32.mxu0 %v21554_v62  ;;  %21582 = vst [vmem:[#allocation45_spill] sm:$0xff] %v19599_v0 }
 0x233   :  { %8439 = vmatpush1.msra.mxu1 %v7891_v12  ;;  %v8498_v29 = vpop.permute.xlu1 %8497  ;;  %v4884_v27 = vpop.f32.mrf.mxu1 }
 0x234   :  { %v19593_v22 = vadd.f32 %v4884_v27, %v19484_v37  ;;  %17850 = vmatmul.mubr.msk.f32.vlgmr.msra.gmra.mxu1 %vm136_vm1, %v19473_v56  ;;  %v19597_v28 = vpop.permute.xlu0 %8495 }
 0x235   :  { %10470 = vrot.lane.b32.xlu1 %v19350_v57, %s18143_s17  ;;  %10460 = vrot.lane.b32.xlu0 %v19478_v48, %s18143_s17  ;;  %v19609_v56 = vpop.f32.mrf.mxu1 }
 0x236   :  { %8701 = vmatprep.mubr.f32.mxu1 %v21554_v62  ;;  %21583 = vst [vmem:[#allocation46_spill] sm:$0xff] %v19609_v56 }
 0x237   :  { %v8502_v4 = vpop.permute.xlu1 %8501  ;;  %v4955_v6 = vpop.f32.mrf.mxu0 }
 0x238   :  { %v19607_v37 = vadd.f32 %v4955_v6, %v19495_v45  ;;  %v8500_v55 = vpop.permute.xlu0 %8499 }
 0x239   :  { %10474 = vrot.lane.b32.xlu1 %v19364_v41, %s18143_s17  ;;  %10472 = vrot.lane.b32.xlu0 %v19346_v51, %s18143_s17  ;;  %v8533_v30 = vsel %vm8531_vm13, %v8500_v55, %v8502_v4  ;;  %v8532_v12 = vsel %vm8531_vm13, %v8498_v29, %v8500_v55  ;;  %v19622_v56 = vpop.f32.mrf.mxu0 }
 0x23a   :  { %8596 = vmatprep.subr.mxu0 %v8533_v30  ;;  %21584 = vst [vmem:[#allocation47_spill] sm:$0xff] %v19622_v56 }
 0x23b   :  { %8597 = vmatpush1.msra.mxu0 %v8532_v12  ;;  %v8506_v27 = vpop.permute.xlu1 %8505  ;;  %v5026_v0 = vpop.f32.mrf.mxu1 }
 0x23c   :  { %v19618_v45 = vadd.f32 %v5026_v0, %v19509_v63  ;;  %17851 = vmatmul.mubr.msk.f32.vlgmr.msra.gmra.mxu0 %vm136_vm1, %v19597_v28  ;;  %v8504_v6 = vpop.permute.xlu0 %8503 }
 0x23d   :  { %10478 = vrot.lane.b32.xlu1 %v19382_v59, %s18143_s17  ;;  %10476 = vrot.lane.b32.xlu0 %v19360_v31, %s18143_s17  ;;  %v8535_v29 = vsel %vm8531_vm13, %v8504_v6, %v8506_v27  ;;  %v8534_v55 = vsel %vm8531_vm13, %v8502_v4, %v8504_v6  ;;  %v19631_v30 = vpop.f32.mrf.mxu1 }
 0x23e   :  { %8667 = vmatprep.subr.mxu1 %v8535_v29  ;;  %8772 = vmatprep.mubr.f32.mxu0 %v21554_v62  ;;  %21585 = vst [vmem:[#allocation48_spill] sm:$0xff] %v19631_v30 }
 0x23f   :  { %8668 = vmatpush1.msra.mxu1 %v8534_v55  ;;  %v8510_v63 = vpop.permute.xlu1 %8509  ;;  %v5097_v0 = vpop.f32.mrf.mxu0 }
 0x240   :  { %v19634_v12 = vadd.f32 %v5097_v0, %v19525_v47  ;;  %17852 = vmatmul.mubr.msk.f32.vlgmr.msra.gmra.mxu1 %vm136_vm1, %v19597_v28  ;;  %v8508_v56 = vpop.permute.xlu0 %8507 }
 0x241   :  { %10482 = vrot.lane.b32.xlu1 %v19400_v18, %s18143_s17  ;;  %10480 = vrot.lane.b32.xlu0 %v19378_v20, %s18143_s17  ;;  %v8537_v4 = vsel %vm8531_vm13, %v8508_v56, %v8510_v63  ;;  %v8536_v6 = vsel %vm8531_vm13, %v8506_v27, %v8508_v56 }
 0x242   :  { %8738 = vmatprep.subr.mxu0 %v8537_v4  ;;  %v5168_v29 = vpop.f32.mrf.mxu1  ;;  %8843 = vmatprep.mubr.f32.mxu1 %v21554_v62 }
 0x243   :  { %v19646_v47 = vadd.f32 %v5168_v29, %v19530_v1  ;;  %8739 = vmatpush1.msra.mxu0 %v8536_v6  ;;  %v8514_v55 = vpop.permute.xlu1 %8513  ;;  %v19659_v6 = vpop.f32.mrf.mxu0 }
 0x244   :  { %17853 = vmatmul.mubr.msk.f32.vlgmr.msra.gmra.mxu0 %vm136_vm1, %v19597_v28  ;;  %v8512_v0 = vpop.permute.xlu0 %8511  ;;  %21586 = vst [vmem:[#allocation49_spill] sm:$0xff] %v19659_v6  ;;  %v19673_v30 = vpop.f32.mrf.mxu1 }
 0x245   :  { %10486 = vrot.lane.b32.xlu1 %v19416_v32, %s18143_s17  ;;  %10484 = vrot.lane.b32.xlu0 %v19396_v25, %s18143_s17  ;;  %v8539_v56 = vsel %vm8531_vm13, %v8512_v0, %v8514_v55  ;;  %v8538_v27 = vsel %vm8531_vm13, %v8510_v63, %v8512_v0  ;;  %21587 = vst [vmem:[#allocation50_spill] sm:$0xff] %v19673_v30 }
 0x246   :  { %8809 = vmatprep.subr.mxu1 %v8539_v56  ;;  %8914 = vmatprep.mubr.f32.mxu0 %v21554_v62 }
 0x247   :  { %8810 = vmatpush1.msra.mxu1 %v8538_v27  ;;  %v8518_v1 = vpop.permute.xlu1 %8517 }
 0x248   :  { %17854 = vmatmul.mubr.msk.f32.vlgmr.msra.gmra.mxu1 %vm136_vm1, %v19597_v28  ;;  %v8516_v4 = vpop.permute.xlu0 %8515 }
 0x249   :  { %10490 = vrot.lane.b32.xlu1 %v19431_v54, %s18143_s17  ;;  %10488 = vrot.lane.b32.xlu0 %v19412_v5, %s18143_s17  ;;  %v8541_v29 = vsel %vm8531_vm13, %v8516_v4, %v8518_v1  ;;  %v8540_v63 = vsel %vm8531_vm13, %v8514_v55, %v8516_v4 }
 0x24a   :  { %8880 = vmatprep.subr.mxu0 %v8541_v29  ;;  %8985 = vmatprep.mubr.f32.mxu1 %v21554_v62 }
 0x24b   :  { %8881 = vmatpush1.msra.mxu0 %v8540_v63  ;;  %v8522_v0 = vpop.permute.xlu1 %8521  ;;  %v5323_v56 = vpop.f32.mrf.mxu0 }
 0x24c   :  { %v19669_v27 = vadd.f32 %v5323_v56, %v19551_v17  ;;  %17855 = vmatmul.mubr.msk.f32.vlgmr.msra.gmra.mxu0 %vm136_vm1, %v19597_v28  ;;  %v8520_v6 = vpop.permute.xlu0 %8519 }
 0x24d   :  { %11118 = vrot.lane.b32.xlu1 %v19302_v2, %s18144_s18  ;;  %10492 = vrot.lane.b32.xlu0 %v19427_v35, %s18143_s17  ;;  %v8543_v55 = vsel %vm8531_vm13, %v8520_v6, %v8522_v0  ;;  %v8542_v4 = vsel %vm8531_vm13, %v8518_v1, %v8520_v6  ;;  %v19687_v56 = vpop.f32.mrf.mxu0 }
 0x24e   :  { %8951 = vmatprep.subr.mxu1 %v8543_v55  ;;  %9056 = vmatprep.mubr.f32.mxu0 %v21554_v62  ;;  %21588 = vst [vmem:[#allocation51_spill] sm:$0xff] %v19687_v56 }
 0x24f   :  { %8952 = vmatpush1.msra.mxu1 %v8542_v4  ;;  %v8526_v17 = vpop.permute.xlu1 %8525  ;;  %v5394_v29 = vpop.f32.mrf.mxu1 }
 0x250   :  { %v19683_v63 = vadd.f32 %v5394_v29, %v19565_v11  ;;  %17856 = vmatmul.mubr.msk.f32.vlgmr.msra.gmra.mxu1 %vm136_vm1, %v19597_v28  ;;  %v8524_v2 = vpop.permute.xlu0 %8523 }
 0x251   :  { %11122 = vrot.lane.b32.xlu1 %v19318_v58, %s18144_s18  ;;  %11120 = vrot.lane.b32.xlu0 %v19445_v49, %s18144_s18  ;;  %v8545_v1 = vsel %vm8531_vm13, %v8524_v2, %v8526_v17  ;;  %v8544_v6 = vsel %vm8531_vm13, %v8522_v0, %v8524_v2  ;;  %v19701_v29 = vpop.f32.mrf.mxu1  ;;  %v19709_v2 = vld [vmem:[#allocation5 + $0x8] sm:$0xff] }
 0x252   :  { %9022 = vmatprep.subr.mxu0 %v8545_v1  ;;  %9127 = vmatprep.mubr.f32.mxu1 %v21554_v62  ;;  %21589 = vst [vmem:[#allocation52_spill] sm:$0xff] %v19701_v29 }
 0x253   :  { %9023 = vmatpush1.msra.mxu0 %v8544_v6  ;;  %v8530_v11 = vpop.permute.xlu1 %8529  ;;  %v5465_v55 = vpop.f32.mrf.mxu0 }
 0x254   :  { %v19697_v4 = vadd.f32 %v5465_v55, %v19579_v44  ;;  %17857 = vmatmul.mubr.msk.f32.vlgmr.msra.gmra.mxu0 %vm136_vm1, %v19597_v28  ;;  %v8528_v58 = vpop.permute.xlu0 %8527 }
 0x255   :  { %11116 = vrot.lane.b32.xlu1 %v19478_v48, %s18144_s18  ;;  %11124 = vrot.lane.b32.xlu0 %v19338_v10, %s18144_s18  ;;  %v8547_v49 = vsel %vm8531_vm13, %v8528_v58, %v8530_v11  ;;  %v8546_v0 = vsel %vm8531_vm13, %v8526_v17, %v8528_v58  ;;  %v19723_v10 = vpop.f32.mrf.mxu0 }
 0x256   :  { %9093 = vmatprep.subr.mxu1 %v8547_v49  ;;  %9285 = vmatprep.mubr.f32.mxu0 %v21554_v62  ;;  %21590 = vst [vmem:[#allocation53_spill] sm:$0xff] %v19723_v10  ;;  %v19912_v10 = vld [vmem:[#allocation2 + $0x68] sm:$0xff] }
 0x257   :  { %9094 = vmatpush1.msra.mxu1 %v8546_v0  ;;  %v9155_v44 = vpop.permute.xlu1 %9154  ;;  %v5536_v1 = vpop.f32.mrf.mxu1 }
 0x258   :  { %v19713_v6 = vadd.f32 %v5536_v1, %v19593_v22  ;;  %17858 = vmatmul.mubr.msk.f32.vlgmr.msra.gmra.mxu1 %vm136_vm1, %v19597_v28  ;;  %v19717_v48 = vpop.permute.xlu0 %9150 }
 0x259   :  { %11126 = vrot.lane.b32.xlu1 %v19350_v57, %s18144_s18  ;;  %11114 = vrot.lane.b32.xlu0 %v19709_v2, %s18115_s0  ;;  %v19734_v28 = vpop.f32.mrf.mxu1  ;;  %s18145_s0 = smov 55  }
 0x25a   :  { %9356 = vmatprep.mubr.f32.mxu1 %v21554_v62  ;;  %21591 = vst [vmem:[#allocation54_spill] sm:$0xff] %v19734_v28 }
 0x25b   :  { %v9159_v17 = vpop.permute.xlu1 %9158 }
 0x25c   :  { %v5607_v11 = vpop.f32.mrf.mxu0  ;;  %v9157_v22 = vpop.permute.xlu0 %9156 }
 0x25d   :  { %v19727_v55 = vadd.f32 %v5607_v11, %v19607_v37  ;;  %11130 = vrot.lane.b32.xlu1 %v19364_v41, %s18144_s18  ;;  %11128 = vrot.lane.b32.xlu0 %v19346_v51, %s18144_s18  ;;  %v9188_v57 = vsel %vm9186_vm14, %v9155_v44, %v9157_v22 }
 0x25e   :  { %9251 = vmatprep.subr.mxu0 %v9188_v57  ;;  %v19745_v41 = vpop.f32.mrf.mxu0 }
 0x25f   :  { %v9153_v58 = vpop.permute.xlu1 %9152  ;;  %21592 = vst [vmem:[#allocation55_spill] sm:$0xff] %v19745_v41 }
 0x260   :  { %v9187_v49 = vsel %vm9186_vm14, %v9153_v58, %v9155_v44  ;;  %v5678_v0 = vpop.f32.mrf.mxu1  ;;  %v9161_v1 = vpop.permute.xlu0 %9160  ;;  %v9189_v44 = vsel %vm9186_vm14, %v9157_v22, %v9159_v17 }
 0x261   :  { %v19738_v30 = vadd.f32 %v5678_v0, %v19618_v45  ;;  %11134 = vrot.lane.b32.xlu1 %v19382_v59, %s18144_s18  ;;  %11132 = vrot.lane.b32.xlu0 %v19360_v31, %s18144_s18  ;;  %v9190_v51 = vsel %vm9186_vm14, %v9159_v17, %v9161_v1 }
 0x262   :  { %v19747_v37 = vpop.f32.mrf.mxu1  ;;  %9252 = vmatpush1.msra.mxu0 %v9187_v49  ;;  %9322 = vmatprep.subr.mxu1 %v9190_v51 }
 0x263   :  { %21593 = vst [vmem:[#allocation56_spill] sm:$0xff] %v19747_v37  ;;  %17859 = vmatmul.mubr.msk.f32.vlgmr.msra.gmra.mxu0 %vm136_vm1, %v19717_v48  ;;  %9323 = vmatpush1.msra.mxu1 %v9189_v44  ;;  %v9165_v45 = vpop.permute.xlu1 %9164  ;;  %v19875_v37 = vld [vmem:[#allocation2 + $0x50] sm:$0xff] }
 0x264   :  { %v5749_v11 = vpop.f32.mrf.mxu0  ;;  %v5820_v59 = vpop.f32.mrf.mxu1  ;;  %17860 = vmatmul.mubr.msk.f32.vlgmr.msra.gmra.mxu1 %vm136_vm1, %v19717_v48  ;;  %9427 = vmatprep.mubr.f32.mxu0 %v21554_v62 }
 0x265   :  { %v19756_v31 = vadd.f32 %v5749_v11, %v19634_v12  ;;  %v19759_v57 = vadd.f32 %v5820_v59, %v19646_v47  ;;  %v9163_v58 = vpop.permute.xlu0 %9162  ;;  %11138 = vrot.lane.b32.xlu1 %v19400_v18, %s18144_s18  ;;  %11136 = vrot.lane.b32.xlu0 %v19378_v20, %s18144_s18  ;;  %v19792_v11 = vld [vmem:[#allocation2 + $0x10] sm:$0xff] }
 0x266   :  { %v9192_v17 = vsel %vm9186_vm14, %v9163_v58, %v9165_v45  ;;  %v9191_v22 = vsel %vm9186_vm14, %v9161_v1, %v9163_v58  ;;  %9498 = vmatprep.mubr.f32.mxu1 %v21554_v62  ;;  %v19772_v18 = vpop.f32.mrf.mxu0 }
 0x267   :  { %9393 = vmatprep.subr.mxu0 %v9192_v17  ;;  %v9169_v49 = vpop.permute.xlu1 %9168  ;;  %21594 = vst [vmem:[#allocation57_spill] sm:$0xff] %v19772_v18 }
 0x268   :  { %9394 = vmatpush1.msra.mxu0 %v9191_v22 }
 0x269   :  { %17861 = vmatmul.mubr.msk.f32.vlgmr.msra.gmra.mxu0 %vm136_vm1, %v19717_v48  ;;  %v9167_v12 = vpop.permute.xlu0 %9166  ;;  %11142 = vrot.lane.b32.xlu1 %v19416_v32, %s18144_s18 }
 0x26a   :  { %11140 = vrot.lane.b32.xlu0 %v19396_v25, %s18144_s18  ;;  %v9194_v20 = vsel %vm9186_vm14, %v9167_v12, %v9169_v49  ;;  %v9193_v47 = vsel %vm9186_vm14, %v9165_v45, %v9167_v12  ;;  %9569 = vmatprep.mubr.f32.mxu0 %v21554_v62  ;;  %v19786_v25 = vpop.f32.mrf.mxu1  ;;  %v19811_v12 = vld [vmem:[#allocation2 + $0x18] sm:$0xff] }
 0x26b   :  { %9464 = vmatprep.subr.mxu1 %v9194_v20  ;;  %v9173_v0 = vpop.permute.xlu1 %9172  ;;  %21595 = vst [vmem:[#allocation58_spill] sm:$0xff] %v19786_v25 }
 0x26c   :  { %9465 = vmatpush1.msra.mxu1 %v9193_v47  ;;  %v6012_v1 = vpop.f32.mrf.mxu0 }
 0x26d   :  { %v19780_v51 = vadd.f32 %v6012_v1, %v19669_v27  ;;  %17862 = vmatmul.mubr.msk.f32.vlgmr.msra.gmra.mxu1 %vm136_vm1, %v19717_v48  ;;  %v9171_v32 = vpop.permute.xlu0 %9170  ;;  %11146 = vrot.lane.b32.xlu1 %v19431_v54, %s18144_s18 }
 0x26e   :  { %11144 = vrot.lane.b32.xlu0 %v19412_v5, %s18144_s18  ;;  %v9196_v44 = vsel %vm9186_vm14, %v9171_v32, %v9173_v0  ;;  %v9195_v45 = vsel %vm9186_vm14, %v9169_v49, %v9171_v32  ;;  %9640 = vmatprep.mubr.f32.mxu1 %v21554_v62  ;;  %v19802_v5 = vpop.f32.mrf.mxu0  ;;  %v19808_v49 = vld [vmem:[#allocation2 + $0x20] sm:$0xff] }
 0x26f   :  { %9535 = vmatprep.subr.mxu0 %v9196_v44  ;;  %v9177_v27 = vpop.permute.xlu1 %9176  ;;  %21596 = vst [vmem:[#allocation59_spill] sm:$0xff] %v19802_v5  ;;  %v19826_v44 = vld [vmem:[#allocation2 + $0x8] sm:$0xff] }
 0x270   :  { %9536 = vmatpush1.msra.mxu0 %v9195_v45  ;;  %v6083_v59 = vpop.f32.mrf.mxu1  ;;  %v19829_v45 = vld [vmem:[#allocation2 + $0x28] sm:$0xff] }
 0x271   :  { %v19796_v58 = vadd.f32 %v6083_v59, %v19683_v63  ;;  %17863 = vmatmul.mubr.msk.f32.vlgmr.msra.gmra.mxu0 %vm136_vm1, %v19717_v48  ;;  %v9175_v54 = vpop.permute.xlu0 %9174  ;;  %11807 = vrot.lane.b32.xlu1 %v19792_v11, %s18132_s6 }
 0x272   :  { %11148 = vrot.lane.b32.xlu0 %v19427_v35, %s18144_s18  ;;  %v9198_v17 = vsel %vm9186_vm14, %v9175_v54, %v9177_v27  ;;  %v9197_v22 = vsel %vm9186_vm14, %v9173_v0, %v9175_v54  ;;  %9711 = vmatprep.mubr.f32.mxu0 %v21554_v62  ;;  %v19820_v0 = vpop.f32.mrf.mxu1 }
 0x273   :  { %9606 = vmatprep.subr.mxu1 %v9198_v17  ;;  %v9181_v63 = vpop.permute.xlu1 %9180  ;;  %21597 = vst [vmem:[#allocation60_spill] sm:$0xff] %v19820_v0  ;;  %v19927_v0 = vld [vmem:[#allocation2 + $0x78] sm:$0xff] }
 0x274   :  { %9607 = vmatpush1.msra.mxu1 %v9197_v22  ;;  %v6154_v20 = vpop.f32.mrf.mxu0 }
 0x275   :  { %v19814_v47 = vadd.f32 %v6154_v20, %v19697_v4  ;;  %17864 = vmatmul.mubr.msk.f32.vlgmr.msra.gmra.mxu1 %vm136_vm1, %v19717_v48  ;;  %v9179_v35 = vpop.permute.xlu0 %9178  ;;  %11811 = vrot.lane.b32.xlu1 %v19808_v49, %s18132_s6 }
 0x276   :  { %11809 = vrot.lane.b32.xlu0 %v19811_v12, %s18132_s6  ;;  %v9200_v1 = vsel %vm9186_vm14, %v9179_v35, %v9181_v63  ;;  %v9199_v32 = vsel %vm9186_vm14, %v9177_v27, %v9179_v35  ;;  %9782 = vmatprep.mubr.f32.mxu1 %v21554_v62  ;;  %v19838_v27 = vpop.f32.mrf.mxu0  ;;  %v19844_v35 = vld [vmem:[#allocation2 + $0x30] sm:$0xff] }
 0x277   :  { %9677 = vmatprep.subr.mxu0 %v9200_v1  ;;  %v9185_v4 = vpop.permute.xlu1 %9184  ;;  %21598 = vst [vmem:[#allocation61_spill] sm:$0xff] %v19838_v27 }
 0x278   :  { %9678 = vmatpush1.msra.mxu0 %v9199_v32  ;;  %v6225_v59 = vpop.f32.mrf.mxu1 }
 0x279   :  { %v19832_v54 = vadd.f32 %v6225_v59, %v19713_v6  ;;  %17865 = vmatmul.mubr.msk.f32.vlgmr.msra.gmra.mxu0 %vm136_vm1, %v19717_v48  ;;  %v9183_v17 = vpop.permute.xlu0 %9182  ;;  %11805 = vrot.lane.b32.xlu1 %v19826_v44, %s18132_s6 }
 0x27a   :  { %11813 = vrot.lane.b32.xlu0 %v19829_v45, %s18132_s6  ;;  %v9202_v22 = vsel %vm9186_vm14, %v9183_v17, %v9185_v4  ;;  %v9201_v20 = vsel %vm9186_vm14, %v9181_v63, %v9183_v17  ;;  %9939 = vmatprep.mubr.f32.mxu0 %v21554_v62  ;;  %v19854_v4 = vpop.f32.mrf.mxu1  ;;  %v19859_v17 = vld [vmem:[#allocation2 + $0x40] sm:$0xff] }
 0x27b   :  { %9748 = vmatprep.subr.mxu1 %v9202_v22  ;;  %v9812_v6 = vpop.permute.xlu1 %9811  ;;  %21599 = vst [vmem:[#allocation62_spill] sm:$0xff] %v19854_v4  ;;  %v19862_v22 = vld [vmem:[#allocation2 + $0x38] sm:$0xff] }
 0x27c   :  { %9749 = vmatpush1.msra.mxu1 %v9201_v20  ;;  %v6296_v1 = vpop.f32.mrf.mxu0 }
 0x27d   :  { %v19848_v32 = vadd.f32 %v6296_v1, %v19727_v55  ;;  %17866 = vmatmul.mubr.msk.f32.vlgmr.msra.gmra.mxu1 %vm136_vm1, %v19717_v48  ;;  %v9810_v59 = vpop.permute.xlu0 %9809  ;;  %11815 = vrot.lane.b32.xlu1 %v19844_v35, %s18132_s6 }
 0x27e   :  { %11786 = vrot.lane.b32.xlu0 %v19709_v2, %s18117_s1  ;;  %v9842_v63 = vsel %vm136_vm1, %v9810_v59, %v9812_v6  ;;  %10010 = vmatprep.mubr.f32.mxu1 %v21554_v62  ;;  %v19869_v25 = vpop.f32.mrf.mxu0  ;;  %s18147_s1 = smov 46  }
 0x27f   :  { %9905 = vmatprep.subr.mxu0 %v9842_v63  ;;  %v9816_v55 = vpop.permute.xlu1 %9815  ;;  %21600 = vst [vmem:[#allocation63_spill] sm:$0xff] %v19869_v25 }
 0x280   :  { %v6367_v48 = vpop.f32.mrf.mxu1 }
 0x281   :  { %v19865_v20 = vadd.f32 %v6367_v48, %v19738_v30  ;;  %v9814_v1 = vpop.permute.xlu0 %9813  ;;  %11819 = vrot.lane.b32.xlu1 %v19859_v17, %s18132_s6  ;;  %v19879_v30 = vld [vmem:[#allocation2 + $0x48] sm:$0xff] }
 0x282   :  { %11817 = vrot.lane.b32.xlu0 %v19862_v22, %s18132_s6  ;;  %v9844_v18 = vsel %vm136_vm1, %v9814_v1, %v9816_v55  ;;  %v9843_v63 = vsel %vm136_vm1, %v9812_v6, %v9814_v1  ;;  %v19888_v6 = vpop.f32.mrf.mxu1  ;;  %v19893_v1 = vld [vmem:[#allocation2 + $0x60] sm:$0xff] }
 0x283   :  { %9976 = vmatprep.subr.mxu1 %v9844_v18  ;;  %v19877_v41 = vpop.permute.xlu1 %9805  ;;  %21601 = vst [vmem:[#allocation64_spill] sm:$0xff] %v19888_v6 }
 0x284   :  { %9977 = vmatpush1.msra.mxu1 %v9843_v63  ;;  %v6438_v48 = vpop.f32.mrf.mxu0  ;;  %v19896_v63 = vld [vmem:[#allocation2 + $0x58] sm:$0xff] }
 0x285   :  { %v19882_v4 = vadd.f32 %v6438_v48, %v19756_v31  ;;  %v9808_v25 = vpop.permute.xlu0 %9807  ;;  %17868 = vmatmul.mubr.msk.f32.vlgmr.msra.gmra.mxu1 %vm136_vm1, %v19877_v41  ;;  %11823 = vrot.lane.b32.xlu1 %v19875_v37, %s18132_s6 }
 0x286   :  { %v9841_v18 = vsel %vm136_vm1, %v9808_v25, %v9810_v59  ;;  %11821 = vrot.lane.b32.xlu0 %v19879_v30, %s18132_s6  ;;  %10152 = vmatprep.mubr.f32.mxu1 %v21554_v62 }
 0x287   :  { %9906 = vmatpush1.msra.mxu0 %v9841_v18  ;;  %v9820_v31 = vpop.permute.xlu1 %9819  ;;  %v19910_v18 = vld [vmem:[#allocation2 + $0x70] sm:$0xff] }
 0x288   :  { %17867 = vmatmul.mubr.msk.f32.vlgmr.msra.gmra.mxu0 %vm136_vm1, %v19877_v41  ;;  %v6509_v48 = vpop.f32.mrf.mxu1 }
 0x289   :  { %v19901_v28 = vadd.f32 %v6509_v48, %v19759_v57  ;;  %v9818_v6 = vpop.permute.xlu0 %9817  ;;  %11827 = vrot.lane.b32.xlu1 %v19893_v1, %s18132_s6  ;;  %10081 = vmatprep.mubr.f32.mxu0 %v21554_v62  ;;  %v19918_v48 = vpop.f32.mrf.mxu0 }
 0x28a   :  { %11825 = vrot.lane.b32.xlu0 %v19896_v63, %s18132_s6  ;;  %v9846_v25 = vsel %vm136_vm1, %v9818_v6, %v9820_v31  ;;  %v9845_v59 = vsel %vm136_vm1, %v9816_v55, %v9818_v6  ;;  %21602 = vst [vmem:[#allocation65_spill] sm:$0xff] %v19918_v48 }
 0x28b   :  { %10047 = vmatprep.subr.mxu0 %v9846_v25  ;;  %v9824_v27 = vpop.permute.xlu1 %9823  ;;  %v19924_v25 = vld [vmem:[#allocation2 + $0x80] sm:$0xff] }
 0x28c   :  { %10048 = vmatpush1.msra.mxu0 %v9845_v59 }
 0x28d   :  { %17869 = vmatmul.mubr.msk.f32.vlgmr.msra.gmra.mxu0 %vm136_vm1, %v19877_v41  ;;  %v9822_v57 = vpop.permute.xlu0 %9821  ;;  %11831 = vrot.lane.b32.xlu1 %v19910_v18, %s18132_s6 }
 0x28e   :  { %11829 = vrot.lane.b32.xlu0 %v19912_v10, %s18132_s6  ;;  %v9848_v55 = vsel %vm136_vm1, %v9822_v57, %v9824_v27  ;;  %v9847_v6 = vsel %vm136_vm1, %v9820_v31, %v9822_v57  ;;  %10223 = vmatprep.mubr.f32.mxu0 %v21554_v62  ;;  %v19936_v31 = vpop.f32.mrf.mxu1 }
 0x28f   :  { %10118 = vmatprep.subr.mxu1 %v9848_v55  ;;  %v9828_v59 = vpop.permute.xlu1 %9827  ;;  %21603 = vst [vmem:[#allocation66_spill] sm:$0xff] %v19936_v31 }
 0x290   :  { %10119 = vmatpush1.msra.mxu1 %v9847_v6  ;;  %v6667_v5 = vpop.f32.mrf.mxu0 }
 0x291   :  { %v19930_v29 = vadd.f32 %v6667_v5, %v19780_v51  ;;  %17870 = vmatmul.mubr.msk.f32.vlgmr.msra.gmra.mxu1 %vm136_vm1, %v19877_v41  ;;  %v9826_v48 = vpop.permute.xlu0 %9825  ;;  %11835 = vrot.lane.b32.xlu1 %v19924_v25, %s18132_s6  ;;  %v19943_v5 = vld [vmem:[#allocation2 + $0x88] sm:$0xff] }
 0x292   :  { %11833 = vrot.lane.b32.xlu0 %v19927_v0, %s18132_s6  ;;  %v9850_v57 = vsel %vm136_vm1, %v9826_v48, %v9828_v59  ;;  %v9849_v55 = vsel %vm136_vm1, %v9824_v27, %v9826_v48  ;;  %10294 = vmatprep.mubr.f32.mxu1 %v21554_v62  ;;  %v19952_v27 = vpop.f32.mrf.mxu0 }
 0x293   :  { %10189 = vmatprep.subr.mxu0 %v9850_v57  ;;  %v9832_v51 = vpop.permute.xlu1 %9831  ;;  %21604 = vst [vmem:[#allocation67_spill] sm:$0xff] %v19952_v27 }
 0x294   :  { %10190 = vmatpush1.msra.mxu0 %v9849_v55  ;;  %v6738_v6 = vpop.f32.mrf.mxu1 }
 0x295   :  { %v19946_v56 = vadd.f32 %v6738_v6, %v19796_v58  ;;  %17871 = vmatmul.mubr.msk.f32.vlgmr.msra.gmra.mxu0 %vm136_vm1, %v19877_v41  ;;  %v9830_v31 = vpop.permute.xlu0 %9829  ;;  %12462 = vrot.lane.b32.xlu1 %v19792_v11, %s18145_s0 }
 0x296   :  { %11837 = vrot.lane.b32.xlu0 %v19943_v5, %s18132_s6  ;;  %v9852_v48 = vsel %vm136_vm1, %v9830_v31, %v9832_v51  ;;  %v9851_v57 = vsel %vm136_vm1, %v9828_v59, %v9830_v31  ;;  %10365 = vmatprep.mubr.f32.mxu0 %v21554_v62  ;;  %v19966_v33 = vpop.f32.mrf.mxu1 }
 0x297   :  { %10260 = vmatprep.subr.mxu1 %v9852_v48  ;;  %v9836_v58 = vpop.permute.xlu1 %9835  ;;  %21605 = vst [vmem:[#allocation68_spill] sm:$0xff] %v19966_v33 }
 0x298   :  { %10261 = vmatpush1.msra.mxu1 %v9851_v57  ;;  %v6809_v55 = vpop.f32.mrf.mxu0 }
 0x299   :  { %v19960_v6 = vadd.f32 %v6809_v55, %v19814_v47  ;;  %17872 = vmatmul.mubr.msk.f32.vlgmr.msra.gmra.mxu1 %vm136_vm1, %v19877_v41  ;;  %v9834_v27 = vpop.permute.xlu0 %9833  ;;  %12466 = vrot.lane.b32.xlu1 %v19808_v49, %s18145_s0 }
 0x29a   :  { %12464 = vrot.lane.b32.xlu0 %v19811_v12, %s18145_s0  ;;  %v9854_v59 = vsel %vm136_vm1, %v9834_v27, %v9836_v58  ;;  %v9853_v31 = vsel %vm136_vm1, %v9832_v51, %v9834_v27  ;;  %10436 = vmatprep.mubr.f32.mxu1 %v21554_v62  ;;  %v19980_v33 = vpop.f32.mrf.mxu0 }
 0x29b   :  { %10331 = vmatprep.subr.mxu0 %v9854_v59  ;;  %v9840_v47 = vpop.permute.xlu1 %9839  ;;  %21606 = vst [vmem:[#allocation69_spill] sm:$0xff] %v19980_v33 }
 0x29c   :  { %10332 = vmatpush1.msra.mxu0 %v9853_v31  ;;  %v6880_v48 = vpop.f32.mrf.mxu1 }
 0x29d   :  { %v19974_v57 = vadd.f32 %v6880_v48, %v19832_v54  ;;  %17873 = vmatmul.mubr.msk.f32.vlgmr.msra.gmra.mxu0 %vm136_vm1, %v19877_v41  ;;  %v9838_v55 = vpop.permute.xlu0 %9837  ;;  %12460 = vrot.lane.b32.xlu1 %v19826_v44, %s18145_s0 }
 0x29e   :  { %12468 = vrot.lane.b32.xlu0 %v19829_v45, %s18145_s0  ;;  %v9856_v51 = vsel %vm136_vm1, %v9838_v55, %v9840_v47  ;;  %v9855_v27 = vsel %vm136_vm1, %v9836_v58, %v9838_v55  ;;  %10594 = vmatprep.mubr.f32.mxu0 %v21554_v62  ;;  %v19994_v47 = vpop.f32.mrf.mxu1 }
 0x29f   :  { %10402 = vmatprep.subr.mxu1 %v9856_v51  ;;  %v10465_v54 = vpop.permute.xlu1 %10464  ;;  %21607 = vst [vmem:[#allocation70_spill] sm:$0xff] %v19994_v47 }
 0x2a0   :  { %10403 = vmatpush1.msra.mxu1 %v9855_v27  ;;  %v6951_v59 = vpop.f32.mrf.mxu0 }
 0x2a1   :  { %v19988_v31 = vadd.f32 %v6951_v59, %v19848_v32  ;;  %17874 = vmatmul.mubr.msk.f32.vlgmr.msra.gmra.mxu1 %vm136_vm1, %v19877_v41  ;;  %v10463_v48 = vpop.permute.xlu0 %10462  ;;  %12470 = vrot.lane.b32.xlu1 %v19844_v35, %s18145_s0 }
 0x2a2   :  { %12458 = vrot.lane.b32.xlu0 %v19709_v2, %s18120_s22  ;;  %v10496_v58 = vsel %vm10494_vm15, %v10463_v48, %v10465_v54  ;;  %10665 = vmatprep.mubr.f32.mxu1 %v21554_v62  ;;  %v20005_v27 = vpop.f32.mrf.mxu0  ;;  %s18150_s22 = smov 36  }
 0x2a3   :  { %10560 = vmatprep.subr.mxu0 %v10496_v58  ;;  %v10469_v55 = vpop.permute.xlu1 %10468  ;;  %21608 = vst [vmem:[#allocation71_spill] sm:$0xff] %v20005_v27 }
 0x2a4   :  { %v7022_v32 = vpop.f32.mrf.mxu1 }
 0x2a5   :  { %v20001_v51 = vadd.f32 %v7022_v32, %v19865_v20  ;;  %v10467_v41 = vpop.permute.xlu0 %10466  ;;  %12474 = vrot.lane.b32.xlu1 %v19859_v17, %s18145_s0 }
 0x2a6   :  { %12472 = vrot.lane.b32.xlu0 %v19862_v22, %s18145_s0  ;;  %v10498_v59 = vsel %vm10494_vm15, %v10467_v41, %v10469_v55  ;;  %v10497_v47 = vsel %vm10494_vm15, %v10465_v54, %v10467_v41  ;;  %v20018_v27 = vpop.f32.mrf.mxu1 }
 0x2a7   :  { %10631 = vmatprep.subr.mxu1 %v10498_v59  ;;  %v10471_v58 = vpop.permute.xlu1 %10470  ;;  %21609 = vst [vmem:[#allocation72_spill] sm:$0xff] %v20018_v27 }
 0x2a8   :  { %10632 = vmatpush1.msra.mxu1 %v10497_v47  ;;  %v7093_v33 = vpop.f32.mrf.mxu0 }
 0x2a9   :  { %v20012_v20 = vadd.f32 %v7093_v33, %v19882_v4  ;;  %17876 = vmatmul.mubr.msk.f32.vlgmr.msra.gmra.mxu1 %vm136_vm1, %v19709_v2  ;;  %v10461_v32 = vpop.permute.xlu0 %10460  ;;  %12478 = vrot.lane.b32.xlu1 %v19875_v37, %s18145_s0 }
 0x2aa   :  { %v10495_v16 = vsel %vm10494_vm15, %v10461_v32, %v10463_v48  ;;  %12476 = vrot.lane.b32.xlu0 %v19879_v30, %s18145_s0  ;;  %10807 = vmatprep.mubr.f32.mxu1 %v21554_v62  ;;  %v20040_v59 = vpop.f32.mrf.mxu0 }
 0x2ab   :  { %10561 = vmatpush1.msra.mxu0 %v10495_v16  ;;  %v10475_v54 = vpop.permute.xlu1 %10474  ;;  %v10499_v16 = vsel %vm10494_vm15, %v10469_v55, %v10471_v58  ;;  %21610 = vst [vmem:[#allocation73_spill] sm:$0xff] %v20040_v59 }
 0x2ac   :  { %17875 = vmatmul.mubr.msk.f32.vlgmr.msra.gmra.mxu0 %vm136_vm1, %v19709_v2  ;;  %v7164_v33 = vpop.f32.mrf.mxu1 }
 0x2ad   :  { %v20027_v4 = vadd.f32 %v7164_v33, %v19901_v28  ;;  %v10473_v47 = vpop.permute.xlu0 %10472  ;;  %12482 = vrot.lane.b32.xlu1 %v19893_v1, %s18145_s0  ;;  %10736 = vmatprep.mubr.f32.mxu0 %v21554_v62 }
 0x2ae   :  { %12480 = vrot.lane.b32.xlu0 %v19896_v63, %s18145_s0  ;;  %v10500_v48 = vsel %vm10494_vm15, %v10471_v58, %v10473_v47  ;;  %v10501_v55 = vsel %vm10494_vm15, %v10473_v47, %v10475_v54  ;;  %v20054_v59 = vpop.f32.mrf.mxu1 }
 0x2af   :  { %10702 = vmatprep.subr.mxu0 %v10500_v48  ;;  %v10479_v41 = vpop.permute.xlu1 %10478  ;;  %21611 = vst [vmem:[#allocation74_spill] sm:$0xff] %v20054_v59 }
 0x2b0   :  { %10703 = vmatpush1.msra.mxu0 %v10499_v16 }
 0x2b1   :  { %17877 = vmatmul.mubr.msk.f32.vlgmr.msra.gmra.mxu0 %vm136_vm1, %v19709_v2  ;;  %v10477_v28 = vpop.permute.xlu0 %10476  ;;  %12486 = vrot.lane.b32.xlu1 %v19910_v18, %s18145_s0 }
 0x2b2   :  { %12484 = vrot.lane.b32.xlu0 %v19912_v10, %s18145_s0  ;;  %v10502_v32 = vsel %vm10494_vm15, %v10475_v54, %v10477_v28  ;;  %10878 = vmatprep.mubr.f32.mxu0 %v21554_v62 }
 0x2b3   :  { %10773 = vmatprep.subr.mxu1 %v10502_v32  ;;  %v10483_v58 = vpop.permute.xlu1 %10482 }
 0x2b4   :  { %10774 = vmatpush1.msra.mxu1 %v10501_v55  ;;  %v7322_v33 = vpop.f32.mrf.mxu0 }
 0x2b5   :  { %v20048_v48 = vadd.f32 %v7322_v33, %v19930_v29  ;;  %17878 = vmatmul.mubr.msk.f32.vlgmr.msra.gmra.mxu1 %vm136_vm1, %v19709_v2  ;;  %v10481_v16 = vpop.permute.xlu0 %10480  ;;  %12490 = vrot.lane.b32.xlu1 %v19924_v25, %s18145_s0  ;;  %v10503_v29 = vsel %vm10494_vm15, %v10477_v28, %v10479_v41 }
 0x2b6   :  { %12488 = vrot.lane.b32.xlu0 %v19927_v0, %s18145_s0  ;;  %v10504_v54 = vsel %vm10494_vm15, %v10479_v41, %v10481_v16  ;;  %10949 = vmatprep.mubr.f32.mxu1 %v21554_v62  ;;  %v20068_v59 = vpop.f32.mrf.mxu0 }
 0x2b7   :  { %10844 = vmatprep.subr.mxu0 %v10504_v54  ;;  %v10487_v47 = vpop.permute.xlu1 %10486  ;;  %21612 = vst [vmem:[#allocation75_spill] sm:$0xff] %v20068_v59 }
 0x2b8   :  { %10845 = vmatpush1.msra.mxu0 %v10503_v29  ;;  %v7393_v32 = vpop.f32.mrf.mxu1 }
 0x2b9   :  { %v20062_v55 = vadd.f32 %v7393_v32, %v19946_v56  ;;  %17879 = vmatmul.mubr.msk.f32.vlgmr.msra.gmra.mxu0 %vm136_vm1, %v19709_v2  ;;  %v10485_v33 = vpop.permute.xlu0 %10484  ;;  %13117 = vrot.lane.b32.xlu1 %v19792_v11, %s18146_s19  ;;  %v10505_v56 = vsel %vm10494_vm15, %v10481_v16, %v10483_v58 }
 0x2ba   :  { %12492 = vrot.lane.b32.xlu0 %v19943_v5, %s18145_s0  ;;  %v10506_v41 = vsel %vm10494_vm15, %v10483_v58, %v10485_v33  ;;  %11020 = vmatprep.mubr.f32.mxu0 %v21554_v62  ;;  %v20082_v27 = vpop.f32.mrf.mxu1 }
 0x2bb   :  { %10915 = vmatprep.subr.mxu1 %v10506_v41  ;;  %v10491_v28 = vpop.permute.xlu1 %10490  ;;  %21613 = vst [vmem:[#allocation76_spill] sm:$0xff] %v20082_v27 }
 0x2bc   :  { %10916 = vmatpush1.msra.mxu1 %v10505_v56  ;;  %v7464_v54 = vpop.f32.mrf.mxu0 }
 0x2bd   :  { %v20076_v29 = vadd.f32 %v7464_v54, %v19960_v6  ;;  %17880 = vmatmul.mubr.msk.f32.vlgmr.msra.gmra.mxu1 %vm136_vm1, %v19709_v2  ;;  %v10489_v32 = vpop.permute.xlu0 %10488  ;;  %13121 = vrot.lane.b32.xlu1 %v19808_v49, %s18146_s19  ;;  %v10507_v6 = vsel %vm10494_vm15, %v10485_v33, %v10487_v47 }
 0x2be   :  { %13119 = vrot.lane.b32.xlu0 %v19811_v12, %s18146_s19  ;;  %v10508_v58 = vsel %vm10494_vm15, %v10487_v47, %v10489_v32  ;;  %11091 = vmatprep.mubr.f32.mxu1 %v21554_v62  ;;  %v20096_v27 = vpop.f32.mrf.mxu0 }
 0x2bf   :  { %10986 = vmatprep.subr.mxu0 %v10508_v58  ;;  %v11119_v16 = vpop.permute.xlu1 %11118  ;;  %21614 = vst [vmem:[#allocation77_spill] sm:$0xff] %v20096_v27 }
 0x2c0   :  { %10987 = vmatpush1.msra.mxu0 %v10507_v6  ;;  %v7535_v41 = vpop.f32.mrf.mxu1 }
 0x2c1   :  { %v20090_v56 = vadd.f32 %v7535_v41, %v19974_v57  ;;  %17881 = vmatmul.mubr.msk.f32.vlgmr.msra.gmra.mxu0 %vm136_vm1, %v19709_v2  ;;  %v10493_v54 = vpop.permute.xlu0 %10492  ;;  %13115 = vrot.lane.b32.xlu1 %v19826_v44, %s18146_s19  ;;  %v10509_v57 = vsel %vm10494_vm15, %v10489_v32, %v10491_v28 }
 0x2c2   :  { %13123 = vrot.lane.b32.xlu0 %v19829_v45, %s18146_s19  ;;  %v10510_v47 = vsel %vm10494_vm15, %v10491_v28, %v10493_v54  ;;  %11249 = vmatprep.mubr.f32.mxu0 %v21554_v62  ;;  %v20110_v54 = vpop.f32.mrf.mxu1 }
 0x2c3   :  { %11057 = vmatprep.subr.mxu1 %v10510_v47  ;;  %v11123_v33 = vpop.permute.xlu1 %11122  ;;  %21615 = vst [vmem:[#allocation78_spill] sm:$0xff] %v20110_v54 }
 0x2c4   :  { %11058 = vmatpush1.msra.mxu1 %v10509_v57  ;;  %v7606_v58 = vpop.f32.mrf.mxu0 }
 0x2c5   :  { %v20104_v6 = vadd.f32 %v7606_v58, %v19988_v31  ;;  %17882 = vmatmul.mubr.msk.f32.vlgmr.msra.gmra.mxu1 %vm136_vm1, %v19709_v2  ;;  %v11121_v41 = vpop.permute.xlu0 %11120  ;;  %13125 = vrot.lane.b32.xlu1 %v19844_v35, %s18146_s19 }
 0x2c6   :  { %13113 = vrot.lane.b32.xlu0 %v19709_v2, %s18121_s23  ;;  %v11152_v28 = vsel %vm11150_vm0, %v11119_v16, %v11121_v41  ;;  %11320 = vmatprep.mubr.f32.mxu1 %v21554_v62  ;;  %v20122_v54 = vpop.f32.mrf.mxu0  ;;  %s18151_s23 = smov 35  }
 0x2c7   :  { %11215 = vmatprep.subr.mxu0 %v11152_v28  ;;  %v11117_v32 = vpop.permute.xlu1 %11116  ;;  %21616 = vst [vmem:[#allocation79_spill] sm:$0xff] %v20122_v54  ;;  %v11153_v28 = vsel %vm11150_vm0, %v11121_v41, %v11123_v33 }
 0x2c8   :  { %v11151_v31 = vsel %vm11150_vm0, %v11117_v32, %v11119_v16  ;;  %v7677_v47 = vpop.f32.mrf.mxu1 }
 0x2c9   :  { %v20118_v57 = vadd.f32 %v7677_v47, %v20001_v51  ;;  %v11125_v58 = vpop.permute.xlu0 %11124  ;;  %13129 = vrot.lane.b32.xlu1 %v19859_v17, %s18146_s19  ;;  %11216 = vmatpush1.msra.mxu0 %v11151_v31 }
 0x2ca   :  { %13127 = vrot.lane.b32.xlu0 %v19862_v22, %s18146_s19  ;;  %v11154_v27 = vsel %vm11150_vm0, %v11123_v33, %v11125_v58  ;;  %v20135_v31 = vpop.f32.mrf.mxu1 }
 0x2cb   :  { %11286 = vmatprep.subr.mxu1 %v11154_v27  ;;  %v11127_v16 = vpop.permute.xlu1 %11126  ;;  %21617 = vst [vmem:[#allocation80_spill] sm:$0xff] %v20135_v31 }
 0x2cc   :  { %11287 = vmatpush1.msra.mxu1 %v11153_v28  ;;  %v7748_v32 = vpop.f32.mrf.mxu0 }
 0x2cd   :  { %v20129_v51 = vadd.f32 %v7748_v32, %v20012_v20  ;;  %v20131_v47 = vpop.permute.xlu0 %11114  ;;  %13133 = vrot.lane.b32.xlu1 %v19875_v37, %s18146_s19  ;;  %v11155_v32 = vsel %vm11150_vm0, %v11125_v58, %v11127_v16 }
 0x2ce   :  { %17883 = vmatmul.mubr.msk.f32.vlgmr.msra.gmra.mxu0 %vm136_vm1, %v20131_v47  ;;  %17884 = vmatmul.mubr.msk.f32.vlgmr.msra.gmra.mxu1 %vm136_vm1, %v20131_v47 }
 0x2cf   :  { %13131 = vrot.lane.b32.xlu0 %v19879_v30, %s18146_s19  ;;  %v11131_v27 = vpop.permute.xlu1 %11130  ;;  %11391 = vmatprep.mubr.f32.mxu0 %v21554_v62 }
 0x2d0   :  { %v7819_v20 = vpop.f32.mrf.mxu1  ;;  %11462 = vmatprep.mubr.f32.mxu1 %v21554_v62 }
 0x2d1   :  { %v20146_v33 = vadd.f32 %v7819_v20, %v20027_v4  ;;  %v11129_v41 = vpop.permute.xlu0 %11128  ;;  %13137 = vrot.lane.b32.xlu1 %v19893_v1, %s18146_s19  ;;  %v20158_v4 = vpop.f32.mrf.mxu0 }
 0x2d2   :  { %v11156_v28 = vsel %vm11150_vm0, %v11127_v16, %v11129_v41  ;;  %21618 = vst [vmem:[#allocation81_spill] sm:$0xff] %v20158_v4  ;;  %v11157_v58 = vsel %vm11150_vm0, %v11129_v41, %v11131_v27  ;;  %v20172_v59 = vpop.f32.mrf.mxu1 }
 0x2d3   :  { %13135 = vrot.lane.b32.xlu0 %v19896_v63, %s18146_s19  ;;  %11357 = vmatprep.subr.mxu0 %v11156_v28  ;;  %v11135_v31 = vpop.permute.xlu1 %11134  ;;  %21619 = vst [vmem:[#allocation82_spill] sm:$0xff] %v20172_v59 }
 0x2d4   :  { %11358 = vmatpush1.msra.mxu0 %v11155_v32 }
 0x2d5   :  { %17885 = vmatmul.mubr.msk.f32.vlgmr.msra.gmra.mxu0 %vm136_vm1, %v20131_v47  ;;  %v11133_v54 = vpop.permute.xlu0 %11132  ;;  %13141 = vrot.lane.b32.xlu1 %v19910_v18, %s18146_s19 }
 0x2d6   :  { %v11158_v20 = vsel %vm11150_vm0, %v11131_v27, %v11133_v54  ;;  %11533 = vmatprep.mubr.f32.mxu0 %v21554_v62 }
 0x2d7   :  { %13139 = vrot.lane.b32.xlu0 %v19912_v10, %s18146_s19  ;;  %11428 = vmatprep.subr.mxu1 %v11158_v20  ;;  %v11139_v16 = vpop.permute.xlu1 %11138 }
 0x2d8   :  { %11429 = vmatpush1.msra.mxu1 %v11157_v58  ;;  %v7977_v28 = vpop.f32.mrf.mxu0 }
 0x2d9   :  { %v20166_v32 = vadd.f32 %v7977_v28, %v20048_v48  ;;  %17886 = vmatmul.mubr.msk.f32.vlgmr.msra.gmra.mxu1 %vm136_vm1, %v20131_v47  ;;  %v11137_v4 = vpop.permute.xlu0 %11136  ;;  %13145 = vrot.lane.b32.xlu1 %v19924_v25, %s18146_s19  ;;  %v11159_v48 = vsel %vm11150_vm0, %v11133_v54, %v11135_v31 }
 0x2da   :  { %v11160_v39 = vsel %vm11150_vm0, %v11135_v31, %v11137_v4  ;;  %11604 = vmatprep.mubr.f32.mxu1 %v21554_v62  ;;  %v20186_v28 = vpop.f32.mrf.mxu0 }
 0x2db   :  { %13143 = vrot.lane.b32.xlu0 %v19927_v0, %s18146_s19  ;;  %11499 = vmatprep.subr.mxu0 %v11160_v39  ;;  %v11143_v27 = vpop.permute.xlu1 %11142  ;;  %21620 = vst [vmem:[#allocation83_spill] sm:$0xff] %v20186_v28 }
 0x2dc   :  { %11500 = vmatpush1.msra.mxu0 %v11159_v48  ;;  %v8048_v41 = vpop.f32.mrf.mxu1 }
 0x2dd   :  { %v20180_v20 = vadd.f32 %v8048_v41, %v20062_v55  ;;  %17887 = vmatmul.mubr.msk.f32.vlgmr.msra.gmra.mxu0 %vm136_vm1, %v20131_v47  ;;  %v11141_v58 = vpop.permute.xlu0 %11140  ;;  %13772 = vrot.lane.b32.xlu1 %v19792_v11, %s18147_s1  ;;  %v11161_v55 = vsel %vm11150_vm0, %v11137_v4, %v11139_v16 }
 0x2de   :  { %v11162_v39 = vsel %vm11150_vm0, %v11139_v16, %v11141_v58  ;;  %11675 = vmatprep.mubr.f32.mxu0 %v21554_v62  ;;  %v20200_v59 = vpop.f32.mrf.mxu1 }
 0x2df   :  { %13147 = vrot.lane.b32.xlu0 %v19943_v5, %s18146_s19  ;;  %11570 = vmatprep.subr.mxu1 %v11162_v39  ;;  %v11147_v54 = vpop.permute.xlu1 %11146  ;;  %21621 = vst [vmem:[#allocation84_spill] sm:$0xff] %v20200_v59 }
 0x2e0   :  { %11571 = vmatpush1.msra.mxu1 %v11161_v55  ;;  %v8119_v31 = vpop.f32.mrf.mxu0 }
 0x2e1   :  { %v20194_v48 = vadd.f32 %v8119_v31, %v20076_v29  ;;  %17888 = vmatmul.mubr.msk.f32.vlgmr.msra.gmra.mxu1 %vm136_vm1, %v20131_v47  ;;  %v11145_v41 = vpop.permute.xlu0 %11144  ;;  %13776 = vrot.lane.b32.xlu1 %v19808_v49, %s18147_s1  ;;  %v11163_v29 = vsel %vm11150_vm0, %v11141_v58, %v11143_v27 }
 0x2e2   :  { %v11164_v28 = vsel %vm11150_vm0, %v11143_v27, %v11145_v41  ;;  %11746 = vmatprep.mubr.f32.mxu1 %v21554_v62  ;;  %v20214_v31 = vpop.f32.mrf.mxu0 }
 0x2e3   :  { %13774 = vrot.lane.b32.xlu0 %v19811_v12, %s18147_s1  ;;  %11641 = vmatprep.subr.mxu0 %v11164_v28  ;;  %v11808_v4 = vpop.permute.xlu1 %11807 }
 0x2e4   :  { %11642 = vmatpush1.msra.mxu0 %v11163_v29  ;;  %v8190_v16 = vpop.f32.mrf.mxu1 }
 0x2e5   :  { %v20208_v39 = vadd.f32 %v8190_v16, %v20090_v56  ;;  %17889 = vmatmul.mubr.msk.f32.vlgmr.msra.gmra.mxu0 %vm136_vm1, %v20131_v47  ;;  %v11149_v55 = vpop.permute.xlu0 %11148  ;;  %13770 = vrot.lane.b32.xlu1 %v19826_v44, %s18147_s1  ;;  %v11165_v56 = vsel %vm11150_vm0, %v11145_v41, %v11147_v54 }
 0x2e6   :  { %v11166_v59 = vsel %vm11150_vm0, %v11147_v54, %v11149_v55  ;;  %11938 = vmatprep.mubr.f32.mxu0 %v21554_v62  ;;  %v20228_v16 = vpop.f32.mrf.mxu1 }
 0x2e7   :  { %13778 = vrot.lane.b32.xlu0 %v19829_v45, %s18147_s1  ;;  %11712 = vmatprep.subr.mxu1 %v11166_v59  ;;  %v11812_v27 = vpop.permute.xlu1 %11811  ;;  %21622 = vst [vmem:[#allocation85_spill] sm:$0xff] %v20228_v16 }
 0x2e8   :  { %11713 = vmatpush1.msra.mxu1 %v11165_v56  ;;  %v8261_v58 = vpop.f32.mrf.mxu0 }
 0x2e9   :  { %v20222_v28 = vadd.f32 %v8261_v58, %v20104_v6  ;;  %17890 = vmatmul.mubr.msk.f32.vlgmr.msra.gmra.mxu1 %vm136_vm1, %v20131_v47  ;;  %v11810_v29 = vpop.permute.xlu0 %11809  ;;  %13780 = vrot.lane.b32.xlu1 %v19844_v35, %s18147_s1 }
 0x2ea   :  { %v11841_v59 = vsel %vm11839_vm2, %v11808_v4, %v11810_v29  ;;  %12009 = vmatprep.mubr.f32.mxu1 %v21554_v62  ;;  %v20240_v56 = vpop.f32.mrf.mxu0 }
 0x2eb   :  { %13768 = vrot.lane.b32.xlu0 %v19709_v2, %s18124_s26  ;;  %11904 = vmatprep.subr.mxu0 %v11841_v59  ;;  %v11806_v54 = vpop.permute.xlu1 %11805  ;;  %21623 = vst [vmem:[#allocation86_spill] sm:$0xff] %v20240_v56  ;;  %v11842_v2 = vsel %vm11839_vm2, %v11810_v29, %v11812_v27  ;;  %s17737_s26 = sshll.u32 %s18153_s25, 4  ;;  %s17738_s26 = int_to_ptr.vmem [resolvable:$true] %s17737_s26 }
 0x2ec   :  { %v11840_v6 = vsel %vm11839_vm2, %v11806_v54, %v11808_v4  ;;  %v8332_v41 = vpop.f32.mrf.mxu1  ;;  %p18091_p11 = scmp.lt.s32.totalorder %s17738_s26, %s17738_s26 }
 0x2ed   :  { %v20236_v47 = vadd.f32 %v8332_v41, %v20118_v57  ;;  %v11814_v55 = vpop.permute.xlu0 %11813  ;;  %13784 = vrot.lane.b32.xlu1 %v19859_v17, %s18147_s1  ;;  %11905 = vmatpush1.msra.mxu0 %v11840_v6 }
 0x2ee   :  { %v11843_v58 = vsel %vm11839_vm2, %v11812_v27, %v11814_v55  ;;  %v20253_v6 = vpop.f32.mrf.mxu1 }
 0x2ef   :  { %13782 = vrot.lane.b32.xlu0 %v19862_v22, %s18147_s1  ;;  %11975 = vmatprep.subr.mxu1 %v11843_v58  ;;  %v11816_v4 = vpop.permute.xlu1 %11815  ;;  %21624 = vst [vmem:[#allocation87_spill] sm:$0xff] %v20253_v6 }
 0x2f0   :  { %11976 = vmatpush1.msra.mxu1 %v11842_v2  ;;  %v8403_v59 = vpop.f32.mrf.mxu0  ;;  %v11844_v2 = vsel %vm11839_vm2, %v11814_v55, %v11816_v4 }
 0x2f1   :  { %v20247_v57 = vadd.f32 %v8403_v59, %v20129_v51  ;;  %v20249_v54 = vpop.permute.xlu0 %11786  ;;  %13788 = vrot.lane.b32.xlu1 %v19875_v37, %s18147_s1 }
 0x2f2   :  { %17891 = vmatmul.mubr.msk.f32.vlgmr.msra.gmra.mxu0 %vm136_vm1, %v20249_v54  ;;  %17892 = vmatmul.mubr.msk.f32.vlgmr.msra.gmra.mxu1 %vm136_vm1, %v20249_v54 }
 0x2f3   :  { %13786 = vrot.lane.b32.xlu0 %v19879_v30, %s18147_s1  ;;  %v11820_v27 = vpop.permute.xlu1 %11819  ;;  %12080 = vmatprep.mubr.f32.mxu0 %v21554_v62 }
 0x2f4   :  { %v8474_v51 = vpop.f32.mrf.mxu1  ;;  %12151 = vmatprep.mubr.f32.mxu1 %v21554_v62 }
 0x2f5   :  { %v20264_v29 = vadd.f32 %v8474_v51, %v20146_v33  ;;  %v11818_v41 = vpop.permute.xlu0 %11817  ;;  %13792 = vrot.lane.b32.xlu1 %v19893_v1, %s18147_s1  ;;  %v20276_v33 = vpop.f32.mrf.mxu0 }
 0x2f6   :  { %v11845_v58 = vsel %vm11839_vm2, %v11816_v4, %v11818_v41  ;;  %21625 = vst [vmem:[#allocation88_spill] sm:$0xff] %v20276_v33  ;;  %v11846_v55 = vsel %vm11839_vm2, %v11818_v41, %v11820_v27  ;;  %v20290_v56 = vpop.f32.mrf.mxu1 }
 0x2f7   :  { %13790 = vrot.lane.b32.xlu0 %v19896_v63, %s18147_s1  ;;  %12046 = vmatprep.subr.mxu0 %v11845_v58  ;;  %v11824_v59 = vpop.permute.xlu1 %11823 }
 0x2f8   :  { %12047 = vmatpush1.msra.mxu0 %v11844_v2 }
 0x2f9   :  { %17893 = vmatmul.mubr.msk.f32.vlgmr.msra.gmra.mxu0 %vm136_vm1, %v20249_v54  ;;  %v11822_v6 = vpop.permute.xlu0 %11821  ;;  %13796 = vrot.lane.b32.xlu1 %v19910_v18, %s18147_s1 }
 0x2fa   :  { %v11847_v51 = vsel %vm11839_vm2, %v11820_v27, %v11822_v6  ;;  %12222 = vmatprep.mubr.f32.mxu0 %v21554_v62 }
 0x2fb   :  { %13794 = vrot.lane.b32.xlu0 %v19912_v10, %s18147_s1  ;;  %12117 = vmatprep.subr.mxu1 %v11847_v51  ;;  %v11828_v4 = vpop.permute.xlu1 %11827 }
 0x2fc   :  { %12118 = vmatpush1.msra.mxu1 %v11846_v55  ;;  %v8632_v58 = vpop.f32.mrf.mxu0 }
 0x2fd   :  { %v20284_v2 = vadd.f32 %v8632_v58, %v20166_v32  ;;  %17894 = vmatmul.mubr.msk.f32.vlgmr.msra.gmra.mxu1 %vm136_vm1, %v20249_v54  ;;  %v11826_v33 = vpop.permute.xlu0 %11825  ;;  %13800 = vrot.lane.b32.xlu1 %v19924_v25, %s18147_s1  ;;  %v11848_v32 = vsel %vm11839_vm2, %v11822_v6, %v11824_v59 }
 0x2fe   :  { %v11849_v16 = vsel %vm11839_vm2, %v11824_v59, %v11826_v33  ;;  %12293 = vmatprep.mubr.f32.mxu1 %v21554_v62  ;;  %v20304_v58 = vpop.f32.mrf.mxu0 }
 0x2ff   :  { %13798 = vrot.lane.b32.xlu0 %v19927_v0, %s18147_s1  ;;  %12188 = vmatprep.subr.mxu0 %v11849_v16  ;;  %v11832_v27 = vpop.permute.xlu1 %11831 }
 0x300   :  { %12189 = vmatpush1.msra.mxu0 %v11848_v32  ;;  %v8703_v41 = vpop.f32.mrf.mxu1 }
 0x301   :  { %v20298_v51 = vadd.f32 %v8703_v41, %v20180_v20  ;;  %17895 = vmatmul.mubr.msk.f32.vlgmr.msra.gmra.mxu0 %vm136_vm1, %v20249_v54  ;;  %v11830_v55 = vpop.permute.xlu0 %11829  ;;  %14427 = vrot.lane.b32.xlu1 %v19792_v11, %s18148_s20  ;;  %v11850_v20 = vsel %vm11839_vm2, %v11826_v33, %v11828_v4 }
 0x302   :  { %v11851_v16 = vsel %vm11839_vm2, %v11828_v4, %v11830_v55  ;;  %12364 = vmatprep.mubr.f32.mxu0 %v21554_v62  ;;  %v20318_v41 = vpop.f32.mrf.mxu1 }
 0x303   :  { %13802 = vrot.lane.b32.xlu0 %v19943_v5, %s18147_s1  ;;  %12259 = vmatprep.subr.mxu1 %v11851_v16  ;;  %v11836_v6 = vpop.permute.xlu1 %11835 }
 0x304   :  { %12260 = vmatpush1.msra.mxu1 %v11850_v20  ;;  %v8774_v59 = vpop.f32.mrf.mxu0 }
 0x305   :  { %v20312_v32 = vadd.f32 %v8774_v59, %v20194_v48  ;;  %17896 = vmatmul.mubr.msk.f32.vlgmr.msra.gmra.mxu1 %vm136_vm1, %v20249_v54  ;;  %v11834_v11 = vpop.permute.xlu0 %11833  ;;  %14431 = vrot.lane.b32.xlu1 %v19808_v49, %s18148_s20  ;;  %v11852_v48 = vsel %vm11839_vm2, %v11830_v55, %v11832_v27  ;;  %v778_v55 = vadd.f32 %v18901_v9, %v18819_v13  ;;  %v20356_v9 = vld [vmem:[#allocation5 + $0x8] sm:$0xff] }
 0x306   :  { %v11853_v5 = vsel %vm11839_vm2, %v11832_v27, %v11834_v11  ;;  %12435 = vmatprep.mubr.f32.mxu1 %v21554_v62  ;;  %v20332_v20 = vpop.f32.mrf.mxu0 }
 0x307   :  { %14429 = vrot.lane.b32.xlu0 %v19811_v12, %s18148_s20  ;;  %12330 = vmatprep.subr.mxu0 %v11853_v5  ;;  %v12463_v33 = vpop.permute.xlu1 %12462 }
 0x308   :  { %12331 = vmatpush1.msra.mxu0 %v11852_v48  ;;  %v8845_v4 = vpop.f32.mrf.mxu1 }
 0x309   :  { %v20326_v16 = vadd.f32 %v8845_v4, %v20208_v39  ;;  %17897 = vmatmul.mubr.msk.f32.vlgmr.msra.gmra.mxu0 %vm136_vm1, %v20249_v54  ;;  %v11838_v49 = vpop.permute.xlu0 %11837  ;;  %14425 = vrot.lane.b32.xlu1 %v19826_v44, %s18148_s20  ;;  %v11854_v39 = vsel %vm11839_vm2, %v11834_v11, %v11836_v6  ;;  %v849_v44 = vadd.f32 %v18918_v23, %v18835_v15 }
 0x30a   :  { %v11855_v12 = vsel %vm11839_vm2, %v11836_v6, %v11838_v49  ;;  %12593 = vmatprep.mubr.f32.mxu0 %v21554_v62  ;;  %v1914_v6 = vadd.f32 %v18980_v3, %v778_v55  ;;  %v20351_v11 = vpop.f32.mrf.mxu1 }
 0x30b   :  { %14433 = vrot.lane.b32.xlu0 %v19829_v45, %s18148_s20  ;;  %12401 = vmatprep.subr.mxu1 %v11855_v12  ;;  %v12467_v27 = vpop.permute.xlu1 %12466  ;;  %v1916_v15 = vadd.f32 %v18992_v38, %v849_v44  ;;  %v920_v38 = vadd.f32 %v18922_v19, %v18843_v26  ;;  %v1062_v26 = vadd.f32 %v18943_v46, %v18864_v43  ;;  %v21632_v44 = vld [vmem:[#allocation36_spill] sm:$0xff] }
 0x30c   :  { %12402 = vmatpush1.msra.mxu1 %v11854_v39  ;;  %v8916_v59 = vpop.f32.mrf.mxu0  ;;  %v1133_v19 = vadd.f32 %v18959_v60, %v18875_v50  ;;  %v21627_v50 = vld [vmem:[#allocation11_spill] sm:$0xff]  ;;  %v21628_v60 = vld [vmem:[#allocation16_spill] sm:$0xff] }
 0x30d   :  { %v20344_v5 = vadd.f32 %v8916_v59, %v20222_v28  ;;  %17898 = vmatmul.mubr.msk.f32.vlgmr.msra.gmra.mxu1 %vm136_vm1, %v20249_v54  ;;  %v12465_v45 = vpop.permute.xlu0 %12464  ;;  %14435 = vrot.lane.b32.xlu1 %v19844_v35, %s18148_s20  ;;  %v2566_v28 = vadd.f32 %v19068_v8, %v1914_v6  ;;  %v2568_v54 = vadd.f32 %v19083_v36, %v1916_v15  ;;  %v21633_v6 = vld [vmem:[#allocation14_spill] sm:$0xff]  ;;  %v21634_v15 = vld [vmem:[#allocation15_spill] sm:$0xff] }
 0x30e   :  { %v12496_v13 = vsel %vm12494_vm3, %v12463_v33, %v12465_v45  ;;  %12664 = vmatprep.mubr.f32.mxu1 %v21554_v62  ;;  %v20371_v12 = vpop.f32.mrf.mxu0  ;;  %v991_v36 = vadd.f32 %v18933_v42, %v18853_v34  ;;  %v1204_v42 = vadd.f32 %v18964_v61, %v18879_v53 }
 0x30f   :  { %14423 = vrot.lane.b32.xlu0 %v20356_v9, %s18125_s27  ;;  %12559 = vmatprep.subr.mxu0 %v12496_v13  ;;  %v12461_v23 = vpop.permute.xlu1 %12460  ;;  %v3218_v49 = vadd.f32 %v19189_v40, %v2566_v28  ;;  %v1918_v40 = vadd.f32 %v18998_v52, %v920_v38  ;;  %v21635_v28 = vld [vmem:[#allocation22_spill] sm:$0xff]  ;;  %s18086_s27 = scalar_lea.vmem %s17738_s26, 2048 }
 0x310   :  { %v12495_v35 = vsel %vm12494_vm3, %v12461_v23, %v12463_v33  ;;  %v8987_v3 = vpop.f32.mrf.mxu1  ;;  %v1920_v46 = vadd.f32 %v21627_v50, %v991_v36  ;;  %v1926_v13 = vadd.f32 %v21633_v6, %v1204_v42  ;;  %v21638_v36 = vld [vmem:[#allocation18_spill] sm:$0xff]  ;;  %v21643_v50 = vld [vmem:[#allocation20_spill] sm:$0xff]  ;;  %v21649_v6 = vld [vmem:[#allocation25_spill] sm:$0xff]  ;;  %p18087_p10 = scmp.ne.s32.totalorder %s17738_s26, %s18086_s27  ;;  %p18092_p12 = scmp.lt.s32.totalorder %s18086_s27, %s18086_s27 }
 0x311   :  { %v20364_v48 = vadd.f32 %v8987_v3, %v20236_v47  ;;  %v12469_v4 = vpop.permute.xlu0 %12468  ;;  %14439 = vrot.lane.b32.xlu1 %v19859_v17, %s18148_s20  ;;  %12560 = vmatpush1.msra.mxu0 %v12495_v35  ;;  %v3220_v47 = vadd.f32 %v19207_v24, %v2568_v54  ;;  %v12497_v17 = vsel %vm12494_vm3, %v12465_v45, %v12467_v27  ;;  %v21636_v3 = vld [vmem:[#allocation43_spill] sm:$0xff] }
 0x312   :  { %v12498_v8 = vsel %vm12494_vm3, %v12467_v27, %v12469_v4  ;;  %v3870_v39 = vadd.f32 %v19300_v21, %v3218_v49  ;;  %v1275_v24 = vadd.f32 %v18974_v14, %v18895_v7  ;;  %v2570_v52 = vadd.f32 %v21628_v60, %v1918_v40  ;;  %v21629_v21 = vld [vmem:[#allocation35_spill] sm:$0xff]  ;;  %v20401_v53 = vpop.f32.mrf.mxu1  ;;  %v21630_v7 = vld [vmem:[#allocation12_spill] sm:$0xff]  ;;  %v21631_v14 = vld [vmem:[#allocation13_spill] sm:$0xff]  ;;  %p18093_p13 = por %p18092_p12, %p18091_p11 }
 0x313   :  { %14437 = vrot.lane.b32.xlu0 %v19862_v22, %s18148_s20  ;;  %12630 = vmatprep.subr.mxu1 %v12498_v8  ;;  %v12471_v33 = vpop.permute.xlu1 %12470  ;;  %v21626_v22 = vld [vmem:[#allocation28_spill] sm:$0xff]  ;;  %v1922_v61 = vadd.f32 %v21630_v7, %v1062_v26  ;;  %v21637_v49 = vld [vmem:[#allocation17_spill] sm:$0xff]  ;;  %v21640_v40 = vld [vmem:[#allocation19_spill] sm:$0xff] }
 0x314   :  { %12631 = vmatpush1.msra.mxu1 %v12497_v17  ;;  %v9058_v34 = vpop.f32.mrf.mxu0  ;;  %v3872_v27 = vadd.f32 %v21626_v22, %v3220_v47  ;;  %v4522_v59 = vadd.f32 %v21629_v21, %v3870_v39  ;;  %v1928_v23 = vadd.f32 %v21634_v15, %v1275_v24  ;;  %v3222_v35 = vadd.f32 %v21635_v28, %v2570_v52  ;;  %v21639_v17 = vld [vmem:[#allocation44_spill] sm:$0xff]  ;;  %v21642_v24 = vld [vmem:[#allocation51_spill] sm:$0xff]  ;;  %p18094_p0 = pnand %p18093_p13, %p18087_p10 }
 0x315   :  { %v20392_v55 = vadd.f32 %v9058_v34, %v20247_v57  ;;  %v20394_v43 = vpop.permute.xlu0 %12458  ;;  %14443 = vrot.lane.b32.xlu1 %v19875_v37, %s18148_s20  ;;  %v1924_v57 = vadd.f32 %v21631_v14, %v1133_v19  ;;  %v2572_v8 = vadd.f32 %v21637_v49, %v1920_v46  ;;  %v2574_v47 = vadd.f32 %v21638_v36, %v1922_v61  ;;  %v21641_v34 = vld [vmem:[#allocation29_spill] sm:$0xff]  ;;  %v21644_v60 = vld [vmem:[#allocation52_spill] sm:$0xff]  ;;  %v21646_v7 = vld [vmem:[#allocation23_spill] sm:$0xff] }
 0x316   :  { %17899 = vmatmul.mubr.msk.f32.vlgmr.msra.gmra.mxu0 %vm136_vm1, %v20394_v43  ;;  %17900 = vmatmul.mubr.msk.f32.vlgmr.msra.gmra.mxu1 %vm136_vm1, %v20394_v43  ;;  %v4524_v37 = vadd.f32 %v21632_v44, %v3872_v27  ;;  %v5174_v54 = vadd.f32 %v21636_v3, %v4522_v59  ;;  %v3874_v42 = vadd.f32 %v21641_v34, %v3222_v35  ;;  %v21647_v14 = vld [vmem:[#allocation37_spill] sm:$0xff]  ;;  %v21648_v44 = vld [vmem:[#allocation59_spill] sm:$0xff]  ;;  %v21650_v15 = vld [vmem:[#allocation24_spill] sm:$0xff] }
 0x317   :  { %14441 = vrot.lane.b32.xlu0 %v19879_v30, %s18148_s20  ;;  %v12475_v45 = vpop.permute.xlu1 %12474  ;;  %12735 = vmatprep.mubr.f32.mxu0 %v21554_v62  ;;  %v2576_v39 = vadd.f32 %v21640_v40, %v1924_v57  ;;  %v2578_v46 = vadd.f32 %v21643_v50, %v1926_v13  ;;  %v3224_v61 = vadd.f32 %v21646_v7, %v2572_v8  ;;  %v21651_v35 = vld [vmem:[#allocation60_spill] sm:$0xff]  ;;  %v21653_v3 = vld [vmem:[#allocation45_spill] sm:$0xff]  ;;  %v21655_v36 = vld [vmem:[#allocation31_spill] sm:$0xff] }
 0x318   :  { %v9129_v38 = vpop.f32.mrf.mxu1  ;;  %12806 = vmatprep.mubr.f32.mxu1 %v21554_v62  ;;  %v5176_v30 = vadd.f32 %v21639_v17, %v4524_v37  ;;  %v5826_v22 = vadd.f32 %v21642_v24, %v5174_v54  ;;  %v4526_v57 = vadd.f32 %v21647_v14, %v3874_v42  ;;  %v3226_v13 = vadd.f32 %v21649_v6, %v2574_v47  ;;  %v21656_v17 = vld [vmem:[#allocation68_spill] sm:$0xff]  ;;  %v21658_v42 = vld [vmem:[#allocation38_spill] sm:$0xff]  ;;  %v21660_v50 = vld [vmem:[#allocation75_spill] sm:$0xff] }
 0x319   :  { %v20422_v26 = vadd.f32 %v9129_v38, %v20264_v29  ;;  %v12473_v19 = vpop.permute.xlu0 %12472  ;;  %14447 = vrot.lane.b32.xlu1 %v19893_v1, %s18148_s20  ;;  %v12499_v29 = vsel %vm12494_vm3, %v12469_v4, %v12471_v33  ;;  %v21645_v1 = vld [vmem:[#allocation21_spill] sm:$0xff]  ;;  %v3228_v28 = vadd.f32 %v21650_v15, %v2576_v39  ;;  %v21654_v38 = vld [vmem:[#allocation67_spill] sm:$0xff]  ;;  %v21657_v39 = vld [vmem:[#allocation26_spill] sm:$0xff] }
 0x31a   :  { %v12500_v27 = vsel %vm12494_vm3, %v12471_v33, %v12473_v19  ;;  %v5828_v52 = vadd.f32 %v21644_v60, %v5176_v30  ;;  %v20436_v59 = vadd.f32 %v21645_v1, %v1928_v23  ;;  %v6515_v37 = vadd.f32 %v21648_v44, %v5826_v22  ;;  %v21652_v33 = vld [vmem:[#allocation30_spill] sm:$0xff]  ;;  %v21659_v22 = vld [vmem:[#allocation53_spill] sm:$0xff]  ;;  %v21662_v1 = vld [vmem:[#allocation39_spill] sm:$0xff] }
 0x31b   :  { %14445 = vrot.lane.b32.xlu0 %v19896_v63, %s18148_s20  ;;  %12701 = vmatprep.subr.mxu0 %v12500_v27  ;;  %v12479_v21 = vpop.permute.xlu1 %12478  ;;  %v3876_v23 = vadd.f32 %v21652_v33, %v3224_v61  ;;  %v5178_v54 = vadd.f32 %v21653_v3, %v4526_v57  ;;  %v3878_v47 = vadd.f32 %v21655_v36, %v3226_v13  ;;  %v21663_v61 = vld [vmem:[#allocation76_spill] sm:$0xff]  ;;  %v21665_v57 = vld [vmem:[#allocation61_spill] sm:$0xff]  ;;  %v20474_v13 = vpop.f32.mrf.mxu1 }
 0x31c   :  { %12702 = vmatpush1.msra.mxu0 %v12499_v29  ;;  %v6517_v63 = vadd.f32 %v21651_v35, %v5828_v52  ;;  %v7170_v49 = vadd.f32 %v21654_v38, %v6515_v37  ;;  %v3230_v34 = vadd.f32 %v21657_v39, %v2578_v46  ;;  %v21661_v52 = vld [vmem:[#allocation32_spill] sm:$0xff]  ;;  %v21666_v37 = vld [vmem:[#allocation83_spill] sm:$0xff] }
 0x31d   :  { %17901 = vmatmul.mubr.msk.f32.vlgmr.msra.gmra.mxu0 %vm136_vm1, %v20394_v43  ;;  %v12477_v4 = vpop.permute.xlu0 %12476  ;;  %14451 = vrot.lane.b32.xlu1 %v19910_v18, %s18148_s20  ;;  %v12501_v18 = vsel %vm12494_vm3, %v12473_v19, %v12475_v45  ;;  %v4528_v24 = vadd.f32 %v21658_v42, %v3876_v23  ;;  %v5830_v27 = vadd.f32 %v21659_v22, %v5178_v54  ;;  %v21664_v19 = vld [vmem:[#allocation46_spill] sm:$0xff]  ;;  %v20496_v42 = vld [vmem:[#allocation2 + $0x10] sm:$0xff] }
 0x31e   :  { %v12502_v8 = vsel %vm12494_vm3, %v12475_v45, %v12477_v4  ;;  %12877 = vmatprep.mubr.f32.mxu0 %v21554_v62  ;;  %v7172_v30 = vadd.f32 %v21656_v17, %v6517_v63  ;;  %v7825_v60 = vadd.f32 %v21660_v50, %v7170_v49  ;;  %v3880_v29 = vadd.f32 %v21661_v52, %v3228_v28  ;;  %v21667_v28 = vld [vmem:[#allocation40_spill] sm:$0xff]  ;;  %v21669_v54 = vld [vmem:[#allocation54_spill] sm:$0xff]  ;;  %v21670_v49 = vld [vmem:[#allocation69_spill] sm:$0xff] }
 0x31f   :  { %14449 = vrot.lane.b32.xlu0 %v19912_v10, %s18148_s20  ;;  %12772 = vmatprep.subr.mxu1 %v12502_v8  ;;  %v12483_v40 = vpop.permute.xlu1 %12482  ;;  %v4530_v7 = vadd.f32 %v21662_v1, %v3878_v47  ;;  %v20465_v10 = vpop.f32.mrf.mxu0  ;;  %v5180_v46 = vadd.f32 %v21664_v19, %v4528_v24  ;;  %v6519_v44 = vadd.f32 %v21665_v57, %v5830_v27  ;;  %v21668_v63 = vld [vmem:[#allocation84_spill] sm:$0xff]  ;;  %v21673_v24 = vld [vmem:[#allocation77_spill] sm:$0xff]  ;;  %v21674_v50 = vld [vmem:[#allocation55_spill] sm:$0xff] }
 0x320   :  { %12773 = vmatpush1.msra.mxu1 %v12501_v18  ;;  %v7827_v14 = vadd.f32 %v21663_v61, %v7172_v30  ;;  %v8480_v6 = vadd.f32 %v21666_v37, %v7825_v60  ;;  %v4532_v35 = vadd.f32 %v21667_v28, %v3880_v29  ;;  %v12503_v23 = vsel %vm12494_vm3, %v12477_v4, %v12479_v21  ;;  %v21671_v30 = vld [vmem:[#allocation47_spill] sm:$0xff]  ;;  %v20509_v29 = vld [vmem:[#allocation2 + $0x88] sm:$0xff]  ;;  %v21676_v19 = vld [vmem:[#allocation70_spill] sm:$0xff] }
 0x321   :  { %17902 = vmatmul.mubr.msk.f32.vlgmr.msra.gmra.mxu1 %vm136_vm1, %v20394_v43  ;;  %v12481_v45 = vpop.permute.xlu0 %12480  ;;  %14455 = vrot.lane.b32.xlu1 %v19924_v25, %s18148_s20  ;;  %v5832_v38 = vadd.f32 %v21669_v54, %v5180_v46  ;;  %v7174_v8 = vadd.f32 %v21670_v49, %v6519_v44  ;;  %v5182_v18 = vadd.f32 %v21671_v30, %v4530_v7  ;;  %v21675_v61 = vld [vmem:[#allocation27_spill] sm:$0xff]  ;;  %v21677_v44 = vld [vmem:[#allocation33_spill] sm:$0xff] }
 0x322   :  { %v12504_v15 = vsel %vm12494_vm3, %v12479_v21, %v12481_v45  ;;  %12948 = vmatprep.mubr.f32.mxu1 %v21554_v62  ;;  %v8482_v33 = vadd.f32 %v21668_v63, %v7827_v14  ;;  %v9135_v36 = vadd.f32 %v20304_v58, %v8480_v6  ;;  %v12505_v1 = vsel %vm12494_vm3, %v12481_v45, %v12483_v40  ;;  %v21678_v6 = vld [vmem:[#allocation48_spill] sm:$0xff]  ;;  %v21679_v28 = vld [vmem:[#allocation63_spill] sm:$0xff] }
 0x323   :  { %14453 = vrot.lane.b32.xlu0 %v19927_v0, %s18148_s20  ;;  %12843 = vmatprep.subr.mxu0 %v12504_v15  ;;  %v9287_v25 = vpop.f32.mrf.mxu0  ;;  %v12487_v3 = vpop.permute.xlu1 %12486  ;;  %v7829_v22 = vadd.f32 %v21673_v24, %v7174_v8  ;;  %v5834_v60 = vadd.f32 %v21674_v50, %v5182_v18  ;;  %v3232_v14 = vadd.f32 %v21675_v61, %v20436_v59  ;;  %v20523_v45 = vld [vmem:[#allocation2 + $0x20] sm:$0xff]  ;;  %v21680_v59 = vld [vmem:[#allocation78_spill] sm:$0xff]  ;;  %v21684_v18 = vld [vmem:[#allocation85_spill] sm:$0xff] }
 0x324   :  { %v20487_v47 = vadd.f32 %v9287_v25, %v20284_v2  ;;  %12844 = vmatpush1.msra.mxu0 %v12503_v23  ;;  %v9358_v17 = vpop.f32.mrf.mxu1  ;;  %v9137_v0 = vadd.f32 %v20318_v41, %v8482_v33  ;;  %v21672_v2 = vld [vmem:[#allocation62_spill] sm:$0xff]  ;;  %v3882_v37 = vadd.f32 %v21677_v44, %v3230_v34  ;;  %v5184_v15 = vadd.f32 %v21678_v6, %v4532_v35  ;;  %v21681_v23 = vld [vmem:[#allocation41_spill] sm:$0xff] }
 0x325   :  { %v20492_v39 = vadd.f32 %v9358_v17, %v20298_v51  ;;  %17903 = vmatmul.mubr.msk.f32.vlgmr.msra.gmra.mxu0 %vm136_vm1, %v20394_v43  ;;  %v12485_v21 = vpop.permute.xlu0 %12484  ;;  %v9289_v4 = vpop.f32.mrf.mxu0  ;;  %15082 = vrot.lane.b32.xlu1 %v20496_v42, %s18149_s21  ;;  %v6521_v58 = vadd.f32 %v21672_v2, %v5832_v38  ;;  %v8484_v57 = vadd.f32 %v20214_v31, %v7829_v22  ;;  %v21682_v38 = vld [vmem:[#allocation56_spill] sm:$0xff]  ;;  %v21685_v2 = vld [vmem:[#allocation34_spill] sm:$0xff]  ;;  %v21686_v24 = vld [vmem:[#allocation49_spill] sm:$0xff] }
 0x326   :  { %v20502_v27 = vadd.f32 %v9289_v4, %v9135_v36  ;;  %v9360_v41 = vpop.f32.mrf.mxu1  ;;  %v12506_v51 = vsel %vm12494_vm3, %v12483_v40, %v12485_v21  ;;  %13019 = vmatprep.mubr.f32.mxu0 %v21554_v62  ;;  %v6523_v63 = vadd.f32 %v21679_v28, %v5834_v60  ;;  %v4534_v54 = vadd.f32 %v21681_v23, %v3882_v37  ;;  %v20536_v36 = vld [vmem:[#allocation2 + $0x18] sm:$0xff]  ;;  %v21690_v44 = vld [vmem:[#allocation57_spill] sm:$0xff] }
 0x327   :  { %v20507_v52 = vadd.f32 %v9360_v41, %v9137_v0  ;;  %14457 = vrot.lane.b32.xlu0 %v20509_v29, %s18148_s20  ;;  %12914 = vmatprep.subr.mxu1 %v12506_v51  ;;  %v12491_v7 = vpop.permute.xlu1 %12490  ;;  %v7176_v46 = vadd.f32 %v21676_v19, %v6521_v58  ;;  %v9139_v31 = vadd.f32 %v20332_v20, %v8484_v57  ;;  %v21687_v41 = vld [vmem:[#allocation64_spill] sm:$0xff]  ;;  %v21694_v23 = vld [vmem:[#allocation65_spill] sm:$0xff] }
 0x328   :  { %12915 = vmatpush1.msra.mxu1 %v12505_v1  ;;  %v5836_v49 = vadd.f32 %v21682_v38, %v5184_v15  ;;  %v12507_v20 = vsel %vm12494_vm3, %v12485_v21, %v12487_v3  ;;  %v3884_v58 = vadd.f32 %v21685_v2, %v3232_v14  ;;  %v5186_v22 = vadd.f32 %v21686_v24, %v4534_v54  ;;  %v21688_v21 = vld [vmem:[#allocation79_spill] sm:$0xff]  ;;  %v20563_v15 = vld [vmem:[#allocation2 + $0x28] sm:$0xff] }
 0x329   :  { %v9429_v33 = vpop.f32.mrf.mxu0  ;;  %17904 = vmatmul.mubr.msk.f32.vlgmr.msra.gmra.mxu1 %vm136_vm1, %v20394_v43  ;;  %v12489_v40 = vpop.permute.xlu0 %12488  ;;  %15086 = vrot.lane.b32.xlu1 %v20523_v45, %s18149_s21  ;;  %v7831_v25 = vadd.f32 %v21680_v59, %v7176_v46  ;;  %v21689_v46 = vld [vmem:[#allocation42_spill] sm:$0xff] }
 0x32a   :  { %v20530_v34 = vadd.f32 %v9429_v33, %v20312_v32  ;;  %v12508_v35 = vsel %vm12494_vm3, %v12487_v3, %v12489_v40  ;;  %13090 = vmatprep.mubr.f32.mxu1 %v21554_v62  ;;  %v21683_v32 = vld [vmem:[#allocation71_spill] sm:$0xff]  ;;  %v6525_v51 = vadd.f32 %v21687_v41, %v5836_v49  ;;  %v20550_v3 = vld [vmem:[#allocation2 + $0x8] sm:$0xff]  ;;  %v4536_v57 = vadd.f32 %v21689_v46, %v3884_v58  ;;  %v21692_v33 = vld [vmem:[#allocation86_spill] sm:$0xff] }
 0x32b   :  { %v9431_v8 = vpop.f32.mrf.mxu0  ;;  %15084 = vrot.lane.b32.xlu0 %v20536_v36, %s18149_s21  ;;  %12985 = vmatprep.subr.mxu0 %v12508_v35  ;;  %v13118_v17 = vpop.permute.xlu1 %13117  ;;  %v7178_v30 = vadd.f32 %v21683_v32, %v6523_v63  ;;  %v8486_v0 = vadd.f32 %v21684_v18, %v7831_v25  ;;  %v5838_v37 = vadd.f32 %v21690_v44, %v5186_v22  ;;  %v21696_v18 = vld [vmem:[#allocation58_spill] sm:$0xff]  ;;  %v21697_v58 = vld [vmem:[#allocation73_spill] sm:$0xff]  ;;  %v21698_v22 = vld [vmem:[#allocation87_spill] sm:$0xff] }
 0x32c   :  { %v20543_v4 = vadd.f32 %v9431_v8, %v9139_v31  ;;  %12986 = vmatpush1.msra.mxu0 %v12507_v20  ;;  %v21693_v31 = vld [vmem:[#allocation50_spill] sm:$0xff]  ;;  %v20576_v8 = vld [vmem:[#allocation2 + $0x30] sm:$0xff] }
 0x32d   :  { %v9500_v50 = vpop.f32.mrf.mxu1  ;;  %17905 = vmatmul.mubr.msk.f32.vlgmr.msra.gmra.mxu0 %vm136_vm1, %v20394_v43  ;;  %v12493_v60 = vpop.permute.xlu0 %12492  ;;  %15080 = vrot.lane.b32.xlu1 %v20550_v3, %s18149_s21  ;;  %v7833_v1 = vadd.f32 %v21688_v21, %v7178_v30  ;;  %v9141_v61 = vadd.f32 %v20351_v11, %v8486_v0  ;;  %v12509_v11 = vsel %vm12494_vm3, %v12489_v40, %v12491_v7 }
 0x32e   :  { %v20557_v14 = vadd.f32 %v9500_v50, %v20326_v16  ;;  %v12510_v19 = vsel %vm12494_vm3, %v12491_v7, %v12493_v60  ;;  %13248 = vmatprep.mubr.f32.mxu0 %v21554_v62  ;;  %v21691_v16 = vld [vmem:[#allocation72_spill] sm:$0xff]  ;;  %v5188_v35 = vadd.f32 %v21693_v31, %v4536_v57  ;;  %v6527_v54 = vadd.f32 %v21694_v23, %v5838_v37  ;;  %v20606_v37 = vld [vmem:[#allocation2 + $0x38] sm:$0xff] }
 0x32f   :  { %v9502_v6 = vpop.f32.mrf.mxu1  ;;  %15088 = vrot.lane.b32.xlu0 %v20563_v15, %s18149_s21  ;;  %13056 = vmatprep.subr.mxu1 %v12510_v19  ;;  %v13122_v28 = vpop.permute.xlu1 %13121  ;;  %v7180_v63 = vadd.f32 %v21691_v16, %v6525_v51  ;;  %v8488_v59 = vadd.f32 %v21692_v33, %v7833_v1  ;;  %v21695_v7 = vld [vmem:[#allocation80_spill] sm:$0xff]  ;;  %v21699_v51 = vld [vmem:[#allocation66_spill] sm:$0xff]  ;;  %v20596_v1 = vld [vmem:[#allocation2 + $0x40] sm:$0xff] }
 0x330   :  { %v20570_v25 = vadd.f32 %v9502_v6, %v9141_v61  ;;  %13057 = vmatpush1.msra.mxu1 %v12509_v11  ;;  %v5840_v0 = vadd.f32 %v21696_v18, %v5188_v35  ;;  %v7182_v24 = vadd.f32 %v21697_v58, %v6527_v54  ;;  %v21700_v61 = vld [vmem:[#allocation81_spill] sm:$0xff]  ;;  %v21701_v16 = vld [vmem:[#allocation74_spill] sm:$0xff]  ;;  %v21702_v33 = vld [vmem:[#allocation88_spill] sm:$0xff] }
 0x331   :  { %v9571_v38 = vpop.f32.mrf.mxu0  ;;  %17906 = vmatmul.mubr.msk.f32.vlgmr.msra.gmra.mxu1 %vm136_vm1, %v20394_v43  ;;  %v13120_v49 = vpop.permute.xlu0 %13119  ;;  %15090 = vrot.lane.b32.xlu1 %v20576_v8, %s18149_s21  ;;  %v7835_v40 = vadd.f32 %v21695_v7, %v7180_v63  ;;  %v9143_v20 = vadd.f32 %v20371_v12, %v8488_v59  ;;  %v20617_v35 = vld [vmem:[#allocation2 + $0x50] sm:$0xff]  ;;  %v21703_v23 = vld [vmem:[#allocation82_spill] sm:$0xff]  ;;  %v20630_v7 = vld [vmem:[#allocation2 + $0x48] sm:$0xff] }
 0x332   :  { %v20583_v32 = vadd.f32 %v9571_v38, %v20344_v5  ;;  %v13151_v30 = vsel %vm13149_vm4, %v13118_v17, %v13120_v49  ;;  %13319 = vmatprep.mubr.f32.mxu1 %v21554_v62  ;;  %v6529_v50 = vadd.f32 %v21699_v51, %v5840_v0  ;;  %v7837_v19 = vadd.f32 %v21700_v61, %v7182_v24  ;;  %v20639_v18 = vld [vmem:[#allocation2 + $0x60] sm:$0xff]  ;;  %v20663_v51 = vld [vmem:[#allocation2 + $0x68] sm:$0xff] }
 0x333   :  { %v9573_v43 = vpop.f32.mrf.mxu0  ;;  %15078 = vrot.lane.b32.xlu0 %v20356_v9, %s18128_s30  ;;  %13214 = vmatprep.subr.mxu0 %v13151_v30  ;;  %v13116_v2 = vpop.permute.xlu1 %13115  ;;  %v8490_v41 = vadd.f32 %v21698_v22, %v7835_v40  ;;  %v13152_v6 = vsel %vm13149_vm4, %v13120_v49, %v13122_v28 }
 0x334   :  { %v20592_v12 = vadd.f32 %v9573_v43, %v9143_v20  ;;  %v13150_v5 = vsel %vm13149_vm4, %v13116_v2, %v13118_v17  ;;  %v7184_v63 = vadd.f32 %v21701_v16, %v6529_v50  ;;  %v8492_v59 = vadd.f32 %v21702_v33, %v7837_v19  ;;  %v20670_v19 = vld [vmem:[#allocation2 + $0x80] sm:$0xff] }
 0x335   :  { %v9642_v60 = vpop.f32.mrf.mxu1  ;;  %v13124_v21 = vpop.permute.xlu0 %13123  ;;  %15094 = vrot.lane.b32.xlu1 %v20596_v1, %s18149_s21  ;;  %13215 = vmatpush1.msra.mxu0 %v13150_v5  ;;  %v9145_v46 = vadd.f32 %v20401_v53, %v8490_v41 }
 0x336   :  { %v20603_v57 = vadd.f32 %v9642_v60, %v20364_v48  ;;  %v13153_v44 = vsel %vm13149_vm4, %v13122_v28, %v13124_v21  ;;  %v7839_v54 = vadd.f32 %v21703_v23, %v7184_v63  ;;  %v9147_v28 = vadd.f32 %v20465_v10, %v8492_v59 }
 0x337   :  { %v9644_v17 = vpop.f32.mrf.mxu1  ;;  %15092 = vrot.lane.b32.xlu0 %v20606_v37, %s18149_s21  ;;  %13285 = vmatprep.subr.mxu1 %v13153_v44  ;;  %v13126_v11 = vpop.permute.xlu1 %13125 }
 0x338   :  { %v20613_v53 = vadd.f32 %v9644_v17, %v9145_v46  ;;  %13286 = vmatpush1.msra.mxu1 %v13152_v6  ;;  %v8494_v10 = vadd.f32 %v20290_v56, %v7839_v54  ;;  %v20648_v56 = vld [vmem:[#allocation2 + $0x58] sm:$0xff]  ;;  %v13154_v24 = vsel %vm13149_vm4, %v13124_v21, %v13126_v11 }
 0x339   :  { %v9713_v48 = vpop.f32.mrf.mxu0  ;;  %v20615_v31 = vpop.permute.xlu0 %13113  ;;  %15098 = vrot.lane.b32.xlu1 %v20617_v35, %s18149_s21  ;;  %v20679_v17 = vld [vmem:[#allocation2 + $0x78] sm:$0xff] }
 0x33a   :  { %v20624_v38 = vadd.f32 %v9713_v48, %v20392_v55  ;;  %17907 = vmatmul.mubr.msk.f32.vlgmr.msra.gmra.mxu0 %vm136_vm1, %v20615_v31  ;;  %17908 = vmatmul.mubr.msk.f32.vlgmr.msra.gmra.mxu1 %vm136_vm1, %v20615_v31  ;;  %v9149_v0 = vadd.f32 %v20474_v13, %v8494_v10  ;;  %v20657_v13 = vld [vmem:[#allocation2 + $0x70] sm:$0xff] }
 0x33b   :  { %v9715_v49 = vpop.f32.mrf.mxu0  ;;  %15096 = vrot.lane.b32.xlu0 %v20630_v7, %s18149_s21  ;;  %v13130_v40 = vpop.permute.xlu1 %13129  ;;  %13390 = vmatprep.mubr.f32.mxu0 %v21554_v62 }
 0x33c   :  { %v20636_v20 = vadd.f32 %v9715_v49, %v9147_v28  ;;  %13461 = vmatprep.mubr.f32.mxu1 %v21554_v62 }
 0x33d   :  { %v9784_v55 = vpop.f32.mrf.mxu1  ;;  %v13128_v30 = vpop.permute.xlu0 %13127  ;;  %15102 = vrot.lane.b32.xlu1 %v20639_v18, %s18149_s21 }
 0x33e   :  { %v20645_v43 = vadd.f32 %v9784_v55, %v20422_v26  ;;  %v13155_v2 = vsel %vm13149_vm4, %v13126_v11, %v13128_v30  ;;  %v13156_v50 = vsel %vm13149_vm4, %v13128_v30, %v13130_v40 }
 0x33f   :  { %v9786_v58 = vpop.f32.mrf.mxu1  ;;  %15100 = vrot.lane.b32.xlu0 %v20648_v56, %s18149_s21  ;;  %13356 = vmatprep.subr.mxu0 %v13155_v2  ;;  %v13134_v22 = vpop.permute.xlu1 %13133 }
 0x340   :  { %v20653_v41 = vadd.f32 %v9786_v58, %v9149_v0  ;;  %13357 = vmatpush1.msra.mxu0 %v13154_v24 }
 0x341   :  { %17909 = vmatmul.mubr.msk.f32.vlgmr.msra.gmra.mxu0 %vm136_vm1, %v20615_v31  ;;  %v13132_v26 = vpop.permute.xlu0 %13131  ;;  %15106 = vrot.lane.b32.xlu1 %v20657_v13, %s18149_s21 }
 0x342   :  { %v13157_v5 = vsel %vm13149_vm4, %v13130_v40, %v13132_v26  ;;  %13532 = vmatprep.mubr.f32.mxu0 %v21554_v62  ;;  %v13158_v11 = vsel %vm13149_vm4, %v13132_v26, %v13134_v22 }
 0x343   :  { %15104 = vrot.lane.b32.xlu0 %v20663_v51, %s18149_s21  ;;  %13427 = vmatprep.subr.mxu1 %v13157_v5  ;;  %v13138_v60 = vpop.permute.xlu1 %13137 }
 0x344   :  { %13428 = vmatpush1.msra.mxu1 %v13156_v50 }
 0x345   :  { %17910 = vmatmul.mubr.msk.f32.vlgmr.msra.gmra.mxu1 %vm136_vm1, %v20615_v31  ;;  %v13136_v21 = vpop.permute.xlu0 %13135  ;;  %v10012_v61 = vpop.f32.mrf.mxu1  ;;  %15110 = vrot.lane.b32.xlu1 %v20670_v19, %s18149_s21 }
 0x346   :  { %v20675_v46 = vadd.f32 %v10012_v61, %v20492_v39  ;;  %v13159_v44 = vsel %vm13149_vm4, %v13134_v22, %v13136_v21  ;;  %13603 = vmatprep.mubr.f32.mxu1 %v21554_v62 }
 0x347   :  { %15108 = vrot.lane.b32.xlu0 %v20679_v17, %s18149_s21  ;;  %13498 = vmatprep.subr.mxu0 %v13159_v44  ;;  %v10014_v6 = vpop.f32.mrf.mxu1  ;;  %v13142_v16 = vpop.permute.xlu1 %13141 }
 0x348   :  { %v9941_v63 = vpop.f32.mrf.mxu0  ;;  %v20685_v33 = vadd.f32 %v10014_v6, %v20507_v52  ;;  %13499 = vmatpush1.msra.mxu0 %v13158_v11 }
 0x349   :  { %v20688_v39 = vadd.f32 %v9941_v63, %v20487_v47  ;;  %17911 = vmatmul.mubr.msk.f32.vlgmr.msra.gmra.mxu0 %vm136_vm1, %v20615_v31  ;;  %v13140_v59 = vpop.permute.xlu0 %13139  ;;  %15737 = vrot.lane.b32.xlu1 %v20496_v42, %s18150_s22  ;;  %v13160_v47 = vsel %vm13149_vm4, %v13136_v21, %v13138_v60 }
 0x34a   :  { %v9943_v48 = vpop.f32.mrf.mxu0  ;;  %v13161_v23 = vsel %vm13149_vm4, %v13138_v60, %v13140_v59  ;;  %13674 = vmatprep.mubr.f32.mxu0 %v21554_v62  ;;  %v13162_v55 = vsel %vm13149_vm4, %v13140_v59, %v13142_v16 }
 0x34b   :  { %v20697_v52 = vadd.f32 %v9943_v48, %v20502_v27  ;;  %15112 = vrot.lane.b32.xlu0 %v20509_v29, %s18149_s21  ;;  %13569 = vmatprep.subr.mxu1 %v13161_v23  ;;  %v13146_v54 = vpop.permute.xlu1 %13145 }
 0x34c   :  { %13570 = vmatpush1.msra.mxu1 %v13160_v47 }
 0x34d   :  { %v10083_v28 = vpop.f32.mrf.mxu0  ;;  %17912 = vmatmul.mubr.msk.f32.vlgmr.msra.gmra.mxu1 %vm136_vm1, %v20615_v31  ;;  %v13144_v49 = vpop.permute.xlu0 %13143  ;;  %15741 = vrot.lane.b32.xlu1 %v20523_v45, %s18150_s22 }
 0x34e   :  { %v20707_v40 = vadd.f32 %v10083_v28, %v20530_v34  ;;  %v13163_v27 = vsel %vm13149_vm4, %v13142_v16, %v13144_v49  ;;  %13745 = vmatprep.mubr.f32.mxu1 %v21554_v62 }
 0x34f   :  { %v10085_v10 = vpop.f32.mrf.mxu0  ;;  %15739 = vrot.lane.b32.xlu0 %v20536_v36, %s18150_s22  ;;  %13640 = vmatprep.subr.mxu0 %v13163_v27  ;;  %v13773_v30 = vpop.permute.xlu1 %13772 }
 0x350   :  { %v20715_v0 = vadd.f32 %v10085_v10, %v20543_v4  ;;  %13641 = vmatpush1.msra.mxu0 %v13162_v55  ;;  %v13164_v4 = vsel %vm13149_vm4, %v13144_v49, %v13146_v54 }
 0x351   :  { %v10154_v2 = vpop.f32.mrf.mxu1  ;;  %17913 = vmatmul.mubr.msk.f32.vlgmr.msra.gmra.mxu0 %vm136_vm1, %v20615_v31  ;;  %v13148_v34 = vpop.permute.xlu0 %13147  ;;  %15735 = vrot.lane.b32.xlu1 %v20550_v3, %s18150_s22 }
 0x352   :  { %v20722_v58 = vadd.f32 %v10154_v2, %v20557_v14  ;;  %v13165_v24 = vsel %vm13149_vm4, %v13146_v54, %v13148_v34  ;;  %13903 = vmatprep.mubr.f32.mxu0 %v21554_v62 }
 0x353   :  { %v10156_v22 = vpop.f32.mrf.mxu1  ;;  %15743 = vrot.lane.b32.xlu0 %v20563_v15, %s18150_s22  ;;  %13711 = vmatprep.subr.mxu1 %v13165_v24  ;;  %v13777_v26 = vpop.permute.xlu1 %13776 }
 0x354   :  { %v20730_v5 = vadd.f32 %v10156_v22, %v20570_v25  ;;  %13712 = vmatpush1.msra.mxu1 %v13164_v4 }
 0x355   :  { %v10225_v50 = vpop.f32.mrf.mxu0  ;;  %17914 = vmatmul.mubr.msk.f32.vlgmr.msra.gmra.mxu1 %vm136_vm1, %v20615_v31  ;;  %v13775_v14 = vpop.permute.xlu0 %13774  ;;  %15745 = vrot.lane.b32.xlu1 %v20576_v8, %s18150_s22 }
 0x356   :  { %v20737_v60 = vadd.f32 %v10225_v50, %v20583_v32  ;;  %v13806_v21 = vsel %vm13804_vm5, %v13773_v30, %v13775_v14  ;;  %13974 = vmatprep.mubr.f32.mxu1 %v21554_v62 }
 0x357   :  { %v10227_v61 = vpop.f32.mrf.mxu0  ;;  %15733 = vrot.lane.b32.xlu0 %v20356_v9, %s18129_s3  ;;  %13869 = vmatprep.subr.mxu0 %v13806_v21  ;;  %v13771_v25 = vpop.permute.xlu1 %13770 }
 0x358   :  { %v20744_v44 = vadd.f32 %v10227_v61, %v20592_v12  ;;  %v13805_v31 = vsel %vm13804_vm5, %v13771_v25, %v13773_v30  ;;  %v13807_v12 = vsel %vm13804_vm5, %v13775_v14, %v13777_v26 }
 0x359   :  { %v10296_v6 = vpop.f32.mrf.mxu1  ;;  %v13779_v11 = vpop.permute.xlu0 %13778  ;;  %15749 = vrot.lane.b32.xlu1 %v20596_v1, %s18150_s22  ;;  %13870 = vmatpush1.msra.mxu0 %v13805_v31 }
 0x35a   :  { %v20750_v32 = vadd.f32 %v10296_v6, %v20603_v57  ;;  %v13808_v16 = vsel %vm13804_vm5, %v13777_v26, %v13779_v11 }
 0x35b   :  { %v10298_v63 = vpop.f32.mrf.mxu1  ;;  %15747 = vrot.lane.b32.xlu0 %v20606_v37, %s18150_s22  ;;  %13940 = vmatprep.subr.mxu1 %v13808_v16  ;;  %v13781_v59 = vpop.permute.xlu1 %13780 }
 0x35c   :  { %v20757_v48 = vadd.f32 %v10298_v63, %v20613_v53  ;;  %13941 = vmatpush1.msra.mxu1 %v13807_v12 }
 0x35d   :  { %v10367_v23 = vpop.f32.mrf.mxu0  ;;  %v20759_v47 = vpop.permute.xlu0 %13768  ;;  %15753 = vrot.lane.b32.xlu1 %v20617_v35, %s18150_s22 }
 0x35e   :  { %v20764_v57 = vadd.f32 %v10367_v23, %v20624_v38  ;;  %17915 = vmatmul.mubr.msk.f32.vlgmr.msra.gmra.mxu0 %vm136_vm1, %v20759_v47  ;;  %17916 = vmatmul.mubr.msk.f32.vlgmr.msra.gmra.mxu1 %vm136_vm1, %v20759_v47 }
 0x35f   :  { %v10369_v54 = vpop.f32.mrf.mxu0  ;;  %15751 = vrot.lane.b32.xlu0 %v20630_v7, %s18150_s22  ;;  %v13785_v53 = vpop.permute.xlu1 %13784  ;;  %14045 = vmatprep.mubr.f32.mxu0 %v21554_v62 }
 0x360   :  { %v20774_v28 = vadd.f32 %v10369_v54, %v20636_v20  ;;  %14116 = vmatprep.mubr.f32.mxu1 %v21554_v62  ;;  %v13809_v20 = vsel %vm13804_vm5, %v13779_v11, %v13781_v59 }
 0x361   :  { %v10438_v38 = vpop.f32.mrf.mxu1  ;;  %v13783_v49 = vpop.permute.xlu0 %13782  ;;  %15757 = vrot.lane.b32.xlu1 %v20639_v18, %s18150_s22 }
 0x362   :  { %v20780_v27 = vadd.f32 %v10438_v38, %v20645_v43  ;;  %v13810_v10 = vsel %vm13804_vm5, %v13781_v59, %v13783_v49  ;;  %v13811_v24 = vsel %vm13804_vm5, %v13783_v49, %v13785_v53 }
 0x363   :  { %v10440_v55 = vpop.f32.mrf.mxu1  ;;  %15755 = vrot.lane.b32.xlu0 %v20648_v56, %s18150_s22  ;;  %14011 = vmatprep.subr.mxu0 %v13810_v10  ;;  %v13789_v30 = vpop.permute.xlu1 %13788 }
 0x364   :  { %v20787_v2 = vadd.f32 %v10440_v55, %v20653_v41  ;;  %14012 = vmatpush1.msra.mxu0 %v13809_v20 }
 0x365   :  { %17917 = vmatmul.mubr.msk.f32.vlgmr.msra.gmra.mxu0 %vm136_vm1, %v20759_v47  ;;  %v13787_v34 = vpop.permute.xlu0 %13786  ;;  %15761 = vrot.lane.b32.xlu1 %v20657_v13, %s18150_s22 }
 0x366   :  { %v13812_v43 = vsel %vm13804_vm5, %v13785_v53, %v13787_v34  ;;  %14187 = vmatprep.mubr.f32.mxu0 %v21554_v62  ;;  %v13813_v21 = vsel %vm13804_vm5, %v13787_v34, %v13789_v30 }
 0x367   :  { %15759 = vrot.lane.b32.xlu0 %v20663_v51, %s18150_s22  ;;  %14082 = vmatprep.subr.mxu1 %v13812_v43  ;;  %v13793_v41 = vpop.permute.xlu1 %13792 }
 0x368   :  { %14083 = vmatpush1.msra.mxu1 %v13811_v24 }
 0x369   :  { %v10667_v22 = vpop.f32.mrf.mxu1  ;;  %17918 = vmatmul.mubr.msk.f32.vlgmr.msra.gmra.mxu1 %vm136_vm1, %v20759_v47  ;;  %v13791_v4 = vpop.permute.xlu0 %13790  ;;  %15765 = vrot.lane.b32.xlu1 %v20670_v19, %s18150_s22 }
 0x36a   :  { %v20803_v26 = vadd.f32 %v10667_v22, %v20675_v46  ;;  %v13814_v50 = vsel %vm13804_vm5, %v13789_v30, %v13791_v4  ;;  %14258 = vmatprep.mubr.f32.mxu1 %v21554_v62 }
 0x36b   :  { %v10669_v14 = vpop.f32.mrf.mxu1  ;;  %15763 = vrot.lane.b32.xlu0 %v20679_v17, %s18150_s22  ;;  %14153 = vmatprep.subr.mxu0 %v13814_v50  ;;  %v13797_v61 = vpop.permute.xlu1 %13796 }
 0x36c   :  { %v20811_v25 = vadd.f32 %v10669_v14, %v20685_v33  ;;  %v10596_v31 = vpop.f32.mrf.mxu0  ;;  %14154 = vmatpush1.msra.mxu0 %v13813_v21  ;;  %v13815_v33 = vsel %vm13804_vm5, %v13791_v4, %v13793_v41 }
 0x36d   :  { %v20814_v46 = vadd.f32 %v10596_v31, %v20688_v39  ;;  %17919 = vmatmul.mubr.msk.f32.vlgmr.msra.gmra.mxu0 %vm136_vm1, %v20759_v47  ;;  %v13795_v6 = vpop.permute.xlu0 %13794  ;;  %16392 = vrot.lane.b32.xlu1 %v20496_v42, %s18151_s23 }
 0x36e   :  { %v10598_v11 = vpop.f32.mrf.mxu0  ;;  %v13816_v16 = vsel %vm13804_vm5, %v13793_v41, %v13795_v6  ;;  %14329 = vmatprep.mubr.f32.mxu0 %v21554_v62  ;;  %v13817_v54 = vsel %vm13804_vm5, %v13795_v6, %v13797_v61 }
 0x36f   :  { %v20824_v63 = vadd.f32 %v10598_v11, %v20697_v52  ;;  %15767 = vrot.lane.b32.xlu0 %v20509_v29, %s18150_s22  ;;  %14224 = vmatprep.subr.mxu1 %v13816_v16  ;;  %v13801_v39 = vpop.permute.xlu1 %13800 }
 0x370   :  { %14225 = vmatpush1.msra.mxu1 %v13815_v33 }
 0x371   :  { %v10738_v12 = vpop.f32.mrf.mxu0  ;;  %17920 = vmatmul.mubr.msk.f32.vlgmr.msra.gmra.mxu1 %vm136_vm1, %v20759_v47  ;;  %v13799_v59 = vpop.permute.xlu0 %13798  ;;  %16396 = vrot.lane.b32.xlu1 %v20523_v45, %s18151_s23 }
 0x372   :  { %v20833_v23 = vadd.f32 %v10738_v12, %v20707_v40  ;;  %v13818_v52 = vsel %vm13804_vm5, %v13797_v61, %v13799_v59  ;;  %14400 = vmatprep.mubr.f32.mxu1 %v21554_v62  ;;  %v13819_v30 = vsel %vm13804_vm5, %v13799_v59, %v13801_v39 }
 0x373   :  { %v10740_v53 = vpop.f32.mrf.mxu0  ;;  %16394 = vrot.lane.b32.xlu0 %v20536_v36, %s18151_s23  ;;  %14295 = vmatprep.subr.mxu0 %v13818_v52  ;;  %v14428_v38 = vpop.permute.xlu1 %14427 }
 0x374   :  { %v20841_v49 = vadd.f32 %v10740_v53, %v20715_v0  ;;  %14296 = vmatpush1.msra.mxu0 %v13817_v54 }
 0x375   :  { %v10809_v10 = vpop.f32.mrf.mxu1  ;;  %17921 = vmatmul.mubr.msk.f32.vlgmr.msra.gmra.mxu0 %vm136_vm1, %v20759_v47  ;;  %v13803_v40 = vpop.permute.xlu0 %13802  ;;  %16390 = vrot.lane.b32.xlu1 %v20550_v3, %s18151_s23 }
 0x376   :  { %v20848_v55 = vadd.f32 %v10809_v10, %v20722_v58  ;;  %v13820_v20 = vsel %vm13804_vm5, %v13801_v39, %v13803_v40  ;;  %14558 = vmatprep.mubr.f32.mxu0 %v21554_v62 }
 0x377   :  { %v10811_v0 = vpop.f32.mrf.mxu1  ;;  %16398 = vrot.lane.b32.xlu0 %v20563_v15, %s18151_s23  ;;  %14366 = vmatprep.subr.mxu1 %v13820_v20  ;;  %v14432_v34 = vpop.permute.xlu1 %14431 }
 0x378   :  { %v20856_v43 = vadd.f32 %v10811_v0, %v20730_v5  ;;  %14367 = vmatpush1.msra.mxu1 %v13819_v30 }
 0x379   :  { %v10880_v24 = vpop.f32.mrf.mxu0  ;;  %17922 = vmatmul.mubr.msk.f32.vlgmr.msra.gmra.mxu1 %vm136_vm1, %v20759_v47  ;;  %v14430_v58 = vpop.permute.xlu0 %14429  ;;  %16400 = vrot.lane.b32.xlu1 %v20576_v8, %s18151_s23 }
 0x37a   :  { %v20863_v41 = vadd.f32 %v10880_v24, %v20737_v60  ;;  %v14461_v22 = vsel %vm14459_vm6, %v14428_v38, %v14430_v58  ;;  %14629 = vmatprep.mubr.f32.mxu1 %v21554_v62 }
 0x37b   :  { %v10882_v4 = vpop.f32.mrf.mxu0  ;;  %16388 = vrot.lane.b32.xlu0 %v20356_v9, %s18132_s6  ;;  %14524 = vmatprep.subr.mxu0 %v14461_v22  ;;  %v14426_v5 = vpop.permute.xlu1 %14425  ;;  %v14462_v9 = vsel %vm14459_vm6, %v14430_v58, %v14432_v34 }
 0x37c   :  { %v20870_v50 = vadd.f32 %v10882_v4, %v20744_v44  ;;  %v14460_v47 = vsel %vm14459_vm6, %v14426_v5, %v14428_v38 }
 0x37d   :  { %v10951_v14 = vpop.f32.mrf.mxu1  ;;  %v14434_v21 = vpop.permute.xlu0 %14433  ;;  %16404 = vrot.lane.b32.xlu1 %v20596_v1, %s18151_s23  ;;  %14525 = vmatpush1.msra.mxu0 %v14460_v47 }
 0x37e   :  { %v20876_v60 = vadd.f32 %v10951_v14, %v20750_v32  ;;  %v14463_v61 = vsel %vm14459_vm6, %v14432_v34, %v14434_v21 }
 0x37f   :  { %v10953_v31 = vpop.f32.mrf.mxu1  ;;  %16402 = vrot.lane.b32.xlu0 %v20606_v37, %s18151_s23  ;;  %14595 = vmatprep.subr.mxu1 %v14463_v61  ;;  %v14436_v44 = vpop.permute.xlu1 %14435 }
 0x380   :  { %v20883_v6 = vadd.f32 %v10953_v31, %v20757_v48  ;;  %14596 = vmatpush1.msra.mxu1 %v14462_v9  ;;  %v14464_v54 = vsel %vm14459_vm6, %v14434_v21, %v14436_v44 }
 0x381   :  { %v11022_v11 = vpop.f32.mrf.mxu0  ;;  %v20885_v16 = vpop.permute.xlu0 %14423  ;;  %16408 = vrot.lane.b32.xlu1 %v20617_v35, %s18151_s23 }
 0x382   :  { %v20890_v32 = vadd.f32 %v11022_v11, %v20764_v57  ;;  %17923 = vmatmul.mubr.msk.f32.vlgmr.msra.gmra.mxu0 %vm136_vm1, %v20885_v16  ;;  %17924 = vmatmul.mubr.msk.f32.vlgmr.msra.gmra.mxu1 %vm136_vm1, %v20885_v16 }
 0x383   :  { %v11024_v33 = vpop.f32.mrf.mxu0  ;;  %16406 = vrot.lane.b32.xlu0 %v20630_v7, %s18151_s23  ;;  %v14440_v48 = vpop.permute.xlu1 %14439  ;;  %14700 = vmatprep.mubr.f32.mxu0 %v21554_v62 }
 0x384   :  { %v20900_v39 = vadd.f32 %v11024_v33, %v20774_v28  ;;  %14771 = vmatprep.mubr.f32.mxu1 %v21554_v62 }
 0x385   :  { %v11093_v57 = vpop.f32.mrf.mxu1  ;;  %v14438_v12 = vpop.permute.xlu0 %14437  ;;  %16412 = vrot.lane.b32.xlu1 %v20639_v18, %s18151_s23 }
 0x386   :  { %v20906_v59 = vadd.f32 %v11093_v57, %v20780_v27  ;;  %v14465_v52 = vsel %vm14459_vm6, %v14436_v44, %v14438_v12  ;;  %v14466_v40 = vsel %vm14459_vm6, %v14438_v12, %v14440_v48 }
 0x387   :  { %v11095_v53 = vpop.f32.mrf.mxu1  ;;  %16410 = vrot.lane.b32.xlu0 %v20648_v56, %s18151_s23  ;;  %14666 = vmatprep.subr.mxu0 %v14465_v52  ;;  %v14444_v28 = vpop.permute.xlu1 %14443 }
 0x388   :  { %v20913_v38 = vadd.f32 %v11095_v53, %v20787_v2  ;;  %14667 = vmatpush1.msra.mxu0 %v14464_v54 }
 0x389   :  { %17925 = vmatmul.mubr.msk.f32.vlgmr.msra.gmra.mxu0 %vm136_vm1, %v20885_v16  ;;  %v14442_v10 = vpop.permute.xlu0 %14441  ;;  %16416 = vrot.lane.b32.xlu1 %v20657_v13, %s18151_s23 }
 0x38a   :  { %v14467_v27 = vsel %vm14459_vm6, %v14440_v48, %v14442_v10  ;;  %14842 = vmatprep.mubr.f32.mxu0 %v21554_v62  ;;  %v14468_v24 = vsel %vm14459_vm6, %v14442_v10, %v14444_v28  ;;  %v18045_v10 = vld [vmem:[#allocation5 + $0x8] sm:$0xff] }
 0x38b   :  { %16414 = vrot.lane.b32.xlu0 %v20663_v51, %s18151_s23  ;;  %14737 = vmatprep.subr.mxu1 %v14467_v27  ;;  %v14448_v2 = vpop.permute.xlu1 %14447 }
 0x38c   :  { %14738 = vmatpush1.msra.mxu1 %v14466_v40 }
 0x38d   :  { %17926 = vmatmul.mubr.msk.f32.vlgmr.msra.gmra.mxu1 %vm136_vm1, %v20885_v16  ;;  %v14446_v20 = vpop.permute.xlu0 %14445  ;;  %16420 = vrot.lane.b32.xlu1 %v20670_v19, %s18151_s23 }
 0x38e   :  { %v11251_v30 = vpop.f32.mrf.mxu0  ;;  %v11322_v0 = vpop.f32.mrf.mxu1  ;;  %v14469_v34 = vsel %vm14459_vm6, %v14444_v28, %v14446_v20  ;;  %14913 = vmatprep.mubr.f32.mxu1 %v21554_v62  ;;  %v14470_v61 = vsel %vm14459_vm6, %v14446_v20, %v14448_v2 }
 0x38f   :  { %v20932_v58 = vadd.f32 %v11251_v30, %v20814_v46  ;;  %v20935_v22 = vadd.f32 %v11322_v0, %v20803_v26  ;;  %16418 = vrot.lane.b32.xlu0 %v20679_v17, %s18151_s23  ;;  %14808 = vmatprep.subr.mxu0 %v14469_v34  ;;  %v14452_v4 = vpop.permute.xlu1 %14451 }
 0x390   :  { %v11253_v5 = vpop.f32.mrf.mxu0  ;;  %v11324_v47 = vpop.f32.mrf.mxu1  ;;  %14809 = vmatpush1.msra.mxu0 %v14468_v24 }
 0x391   :  { %v20940_v14 = vadd.f32 %v11253_v5, %v20824_v63  ;;  %v20943_v21 = vadd.f32 %v11324_v47, %v20811_v25  ;;  %17927 = vmatmul.mubr.msk.f32.vlgmr.msra.gmra.mxu0 %vm136_vm1, %v20885_v16  ;;  %v14450_v46 = vpop.permute.xlu0 %14449  ;;  %17047 = vrot.lane.b32.xlu1 %v20496_v42, %s18152_s24 }
 0x392   :  { %v14471_v26 = vsel %vm14459_vm6, %v14448_v2, %v14450_v46  ;;  %14984 = vmatprep.mubr.f32.mxu0 %v21554_v62  ;;  %v14472_v44 = vsel %vm14459_vm6, %v14450_v46, %v14452_v4 }
 0x393   :  { %16422 = vrot.lane.b32.xlu0 %v20509_v29, %s18151_s23  ;;  %14879 = vmatprep.subr.mxu1 %v14471_v26  ;;  %v14456_v25 = vpop.permute.xlu1 %14455 }
 0x394   :  { %14880 = vmatpush1.msra.mxu1 %v14470_v61 }
 0x395   :  { %v11393_v63 = vpop.f32.mrf.mxu0  ;;  %17928 = vmatmul.mubr.msk.f32.vlgmr.msra.gmra.mxu1 %vm136_vm1, %v20885_v16  ;;  %v14454_v9 = vpop.permute.xlu0 %14453  ;;  %17051 = vrot.lane.b32.xlu1 %v20523_v45, %s18152_s24 }
 0x396   :  { %v20959_v42 = vadd.f32 %v11393_v63, %v20833_v23  ;;  %v14473_v31 = vsel %vm14459_vm6, %v14452_v4, %v14454_v9  ;;  %15055 = vmatprep.mubr.f32.mxu1 %v21554_v62 }
 0x397   :  { %v11395_v11 = vpop.f32.mrf.mxu0  ;;  %17049 = vrot.lane.b32.xlu0 %v20536_v36, %s18152_s24  ;;  %14950 = vmatprep.subr.mxu0 %v14473_v31  ;;  %v15083_v33 = vpop.permute.xlu1 %15082  ;;  %v14474_v36 = vsel %vm14459_vm6, %v14454_v9, %v14456_v25 }
 0x398   :  { %v20967_v48 = vadd.f32 %v11395_v11, %v20841_v49  ;;  %14951 = vmatpush1.msra.mxu0 %v14472_v44 }
 0x399   :  { %v11464_v45 = vpop.f32.mrf.mxu1  ;;  %17929 = vmatmul.mubr.msk.f32.vlgmr.msra.gmra.mxu0 %vm136_vm1, %v20885_v16  ;;  %v14458_v23 = vpop.permute.xlu0 %14457  ;;  %17045 = vrot.lane.b32.xlu1 %v20550_v3, %s18152_s24 }
 0x39a   :  { %v20974_v57 = vadd.f32 %v11464_v45, %v20848_v55  ;;  %v14475_v12 = vsel %vm14459_vm6, %v14456_v25, %v14458_v23  ;;  %15213 = vmatprep.mubr.f32.mxu0 %v21554_v62 }
 0x39b   :  { %v11466_v49 = vpop.f32.mrf.mxu1  ;;  %17053 = vrot.lane.b32.xlu0 %v20563_v15, %s18152_s24  ;;  %15021 = vmatprep.subr.mxu1 %v14475_v12  ;;  %v15087_v52 = vpop.permute.xlu1 %15086 }
 0x39c   :  { %v20982_v54 = vadd.f32 %v11466_v49, %v20856_v43  ;;  %15022 = vmatpush1.msra.mxu1 %v14474_v36 }
 0x39d   :  { %v11535_v3 = vpop.f32.mrf.mxu0  ;;  %17930 = vmatmul.mubr.msk.f32.vlgmr.msra.gmra.mxu1 %vm136_vm1, %v20885_v16  ;;  %v15085_v55 = vpop.permute.xlu0 %15084  ;;  %17055 = vrot.lane.b32.xlu1 %v20576_v8, %s18152_s24 }
 0x39e   :  { %v20989_v53 = vadd.f32 %v11535_v3, %v20863_v41  ;;  %v15116_v15 = vsel %vm15114_vm7, %v15083_v33, %v15085_v55  ;;  %15284 = vmatprep.mubr.f32.mxu1 %v21554_v62  ;;  %v15117_v20 = vsel %vm15114_vm7, %v15085_v55, %v15087_v52 }
 0x39f   :  { %v11537_v28 = vpop.f32.mrf.mxu0  ;;  %17043 = vrot.lane.b32.xlu0 %v18045_v10, %s18134_s8  ;;  %15179 = vmatprep.subr.mxu0 %v15116_v15  ;;  %v15081_v43 = vpop.permute.xlu1 %15080 }
 0x3a0   :  { %v20995_v27 = vadd.f32 %v11537_v28, %v20870_v50  ;;  %v15115_v16 = vsel %vm15114_vm7, %v15081_v43, %v15083_v33 }
 0x3a1   :  { %v11606_v40 = vpop.f32.mrf.mxu1  ;;  %v15089_v8 = vpop.permute.xlu0 %15088  ;;  %17059 = vrot.lane.b32.xlu1 %v20596_v1, %s18152_s24  ;;  %15180 = vmatpush1.msra.mxu0 %v15115_v16 }
 0x3a2   :  { %v21001_v41 = vadd.f32 %v11606_v40, %v20876_v60  ;;  %v15118_v2 = vsel %vm15114_vm7, %v15087_v52, %v15089_v8 }
 0x3a3   :  { %v11608_v30 = vpop.f32.mrf.mxu1  ;;  %17057 = vrot.lane.b32.xlu0 %v20606_v37, %s18152_s24  ;;  %15250 = vmatprep.subr.mxu1 %v15118_v2  ;;  %v15091_v50 = vpop.permute.xlu1 %15090 }
 0x3a4   :  { %v21008_v0 = vadd.f32 %v11608_v30, %v20883_v6  ;;  %15251 = vmatpush1.msra.mxu1 %v15117_v20 }
 0x3a5   :  { %v11677_v34 = vpop.f32.mrf.mxu0  ;;  %v21010_v1 = vpop.permute.xlu0 %15078  ;;  %17063 = vrot.lane.b32.xlu1 %v20617_v35, %s18152_s24 }
 0x3a6   :  { %v21015_v60 = vadd.f32 %v11677_v34, %v20890_v32  ;;  %17931 = vmatmul.mubr.msk.f32.vlgmr.msra.gmra.mxu0 %vm136_vm1, %v21010_v1  ;;  %17932 = vmatmul.mubr.msk.f32.vlgmr.msra.gmra.mxu1 %vm136_vm1, %v21010_v1 }
 0x3a7   :  { %v11679_v37 = vpop.f32.mrf.mxu0  ;;  %17061 = vrot.lane.b32.xlu0 %v20630_v7, %s18152_s24  ;;  %v15095_v6 = vpop.permute.xlu1 %15094  ;;  %15355 = vmatprep.mubr.f32.mxu0 %v21554_v62  ;;  %v15119_v7 = vsel %vm15114_vm7, %v15089_v8, %v15091_v50 }
 0x3a8   :  { %v21025_v24 = vadd.f32 %v11679_v37, %v20900_v39  ;;  %15426 = vmatprep.mubr.f32.mxu1 %v21554_v62 }
 0x3a9   :  { %v11748_v35 = vpop.f32.mrf.mxu1  ;;  %v15093_v32 = vpop.permute.xlu0 %15092  ;;  %17067 = vrot.lane.b32.xlu1 %v20639_v18, %s18152_s24 }
 0x3aa   :  { %v21031_v4 = vadd.f32 %v11748_v35, %v20906_v59  ;;  %v15120_v5 = vsel %vm15114_vm7, %v15091_v50, %v15093_v32  ;;  %v15121_v26 = vsel %vm15114_vm7, %v15093_v32, %v15095_v6 }
 0x3ab   :  { %v11750_v47 = vpop.f32.mrf.mxu1  ;;  %17065 = vrot.lane.b32.xlu0 %v20648_v56, %s18152_s24  ;;  %15321 = vmatprep.subr.mxu0 %v15120_v5  ;;  %v15099_v39 = vpop.permute.xlu1 %15098 }
 0x3ac   :  { %v21038_v46 = vadd.f32 %v11750_v47, %v20913_v38  ;;  %15322 = vmatpush1.msra.mxu0 %v15119_v7 }
 0x3ad   :  { %17933 = vmatmul.mubr.msk.f32.vlgmr.msra.gmra.mxu0 %vm136_vm1, %v21010_v1  ;;  %v15097_v18 = vpop.permute.xlu0 %15096  ;;  %17071 = vrot.lane.b32.xlu1 %v20657_v13, %s18152_s24 }
 0x3ae   :  { %v15122_v59 = vsel %vm15114_vm7, %v15095_v6, %v15097_v18  ;;  %15497 = vmatprep.mubr.f32.mxu0 %v21554_v62  ;;  %v15123_v63 = vsel %vm15114_vm7, %v15097_v18, %v15099_v39 }
 0x3af   :  { %17069 = vrot.lane.b32.xlu0 %v20663_v51, %s18152_s24  ;;  %15392 = vmatprep.subr.mxu1 %v15122_v59  ;;  %v15103_v56 = vpop.permute.xlu1 %15102 }
 0x3b0   :  { %15393 = vmatpush1.msra.mxu1 %v15121_v26 }
 0x3b1   :  { %17934 = vmatmul.mubr.msk.f32.vlgmr.msra.gmra.mxu1 %vm136_vm1, %v21010_v1  ;;  %v15101_v38 = vpop.permute.xlu0 %15100  ;;  %17075 = vrot.lane.b32.xlu1 %v20670_v19, %s18152_s24 }
 0x3b2   :  { %v11940_v13 = vpop.f32.mrf.mxu0  ;;  %v12011_v61 = vpop.f32.mrf.mxu1  ;;  %v15124_v25 = vsel %vm15114_vm7, %v15099_v39, %v15101_v38  ;;  %15568 = vmatprep.mubr.f32.mxu1 %v21554_v62 }
 0x3b3   :  { %v21057_v51 = vadd.f32 %v11940_v13, %v20932_v58  ;;  %v21060_v9 = vadd.f32 %v12011_v61, %v20935_v22  ;;  %17073 = vrot.lane.b32.xlu0 %v20679_v17, %s18152_s24  ;;  %15463 = vmatprep.subr.mxu0 %v15124_v25  ;;  %v15107_v31 = vpop.permute.xlu1 %15106  ;;  %v15125_v17 = vsel %vm15114_vm7, %v15101_v38, %v15103_v56 }
 0x3b4   :  { %v11942_v19 = vpop.f32.mrf.mxu0  ;;  %v12013_v44 = vpop.f32.mrf.mxu1  ;;  %15464 = vmatpush1.msra.mxu0 %v15123_v63 }
 0x3b5   :  { %v21065_v11 = vadd.f32 %v11942_v19, %v20940_v14  ;;  %v21068_v33 = vadd.f32 %v12013_v44, %v20943_v21  ;;  %17935 = vmatmul.mubr.msk.f32.vlgmr.msra.gmra.mxu0 %vm136_vm1, %v21010_v1  ;;  %v15105_v58 = vpop.permute.xlu0 %15104 }
 0x3b6   :  { %v15126_v22 = vsel %vm15114_vm7, %v15103_v56, %v15105_v58  ;;  %15639 = vmatprep.mubr.f32.mxu0 %v21554_v62  ;;  %v15127_v36 = vsel %vm15114_vm7, %v15105_v58, %v15107_v31 }
 0x3b7   :  { %17077 = vrot.lane.b32.xlu0 %v20509_v29, %s18152_s24  ;;  %15534 = vmatprep.subr.mxu1 %v15126_v22  ;;  %v15111_v45 = vpop.permute.xlu1 %15110 }
 0x3b8   :  { %15535 = vmatpush1.msra.mxu1 %v15125_v17 }
 0x3b9   :  { %v12082_v14 = vpop.f32.mrf.mxu0  ;;  %17936 = vmatmul.mubr.msk.f32.vlgmr.msra.gmra.mxu1 %vm136_vm1, %v21010_v1  ;;  %v15109_v21 = vpop.permute.xlu0 %15108 }
 0x3ba   :  { %v21080_v23 = vadd.f32 %v12082_v14, %v20959_v42  ;;  %v15128_v12 = vsel %vm15114_vm7, %v15107_v31, %v15109_v21  ;;  %15710 = vmatprep.mubr.f32.mxu1 %v21554_v62  ;;  %v15129_v28 = vsel %vm15114_vm7, %v15109_v21, %v15111_v45 }
 0x3bb   :  { %v12084_v49 = vpop.f32.mrf.mxu0  ;;  %15605 = vmatprep.subr.mxu0 %v15128_v12  ;;  %v15738_v29 = vpop.permute.xlu1 %15737 }
 0x3bc   :  { %v21086_v52 = vadd.f32 %v12084_v49, %v20967_v48  ;;  %15606 = vmatpush1.msra.mxu0 %v15127_v36 }
 0x3bd   :  { %v12153_v3 = vpop.f32.mrf.mxu1  ;;  %17937 = vmatmul.mubr.msk.f32.vlgmr.msra.gmra.mxu0 %vm136_vm1, %v21010_v1  ;;  %v15113_v55 = vpop.permute.xlu0 %15112 }
 0x3be   :  { %v21091_v42 = vadd.f32 %v12153_v3, %v20974_v57  ;;  %v15130_v15 = vsel %vm15114_vm7, %v15111_v45, %v15113_v55  ;;  %15868 = vmatprep.mubr.f32.mxu0 %v21554_v62 }
 0x3bf   :  { %v12155_v10 = vpop.f32.mrf.mxu1  ;;  %15676 = vmatprep.subr.mxu1 %v15130_v15  ;;  %v15742_v43 = vpop.permute.xlu1 %15741 }
 0x3c0   :  { %v21097_v48 = vadd.f32 %v12155_v10, %v20982_v54  ;;  %15677 = vmatpush1.msra.mxu1 %v15129_v28 }
 0x3c1   :  { %v12224_v16 = vpop.f32.mrf.mxu0  ;;  %17938 = vmatmul.mubr.msk.f32.vlgmr.msra.gmra.mxu1 %vm136_vm1, %v21010_v1  ;;  %v15740_v57 = vpop.permute.xlu0 %15739 }
 0x3c2   :  { %v21102_v40 = vadd.f32 %v12224_v16, %v20989_v53  ;;  %v15771_v8 = vsel %vm15769_vm8, %v15738_v29, %v15740_v57  ;;  %15939 = vmatprep.mubr.f32.mxu1 %v21554_v62  ;;  %v15772_v37 = vsel %vm15769_vm8, %v15740_v57, %v15742_v43 }
 0x3c3   :  { %v12226_v2 = vpop.f32.mrf.mxu0  ;;  %15834 = vmatprep.subr.mxu0 %v15771_v8  ;;  %v15736_v20 = vpop.permute.xlu1 %15735 }
 0x3c4   :  { %v21107_v30 = vadd.f32 %v12226_v2, %v20995_v27  ;;  %v15770_v54 = vsel %vm15769_vm8, %v15736_v20, %v15738_v29 }
 0x3c5   :  { %v12295_v50 = vpop.f32.mrf.mxu1  ;;  %v15744_v34 = vpop.permute.xlu0 %15743  ;;  %15835 = vmatpush1.msra.mxu0 %v15770_v54 }
 0x3c6   :  { %v21111_v1 = vadd.f32 %v12295_v50, %v21001_v41  ;;  %v15773_v53 = vsel %vm15769_vm8, %v15742_v43, %v15744_v34 }
 0x3c7   :  { %v12297_v6 = vpop.f32.mrf.mxu1  ;;  %15905 = vmatprep.subr.mxu1 %v15773_v53  ;;  %v15746_v35 = vpop.permute.xlu1 %15745 }
 0x3c8   :  { %v21116_v32 = vadd.f32 %v12297_v6, %v21008_v0  ;;  %15906 = vmatpush1.msra.mxu1 %v15772_v37  ;;  %v15774_v26 = vsel %vm15769_vm8, %v15744_v34, %v15746_v35 }
 0x3c9   :  { %v12366_v27 = vpop.f32.mrf.mxu0  ;;  %v21118_v5 = vpop.permute.xlu0 %15733 }
 0x3ca   :  { %v21121_v7 = vadd.f32 %v12366_v27, %v21015_v60  ;;  %17939 = vmatmul.mubr.msk.f32.vlgmr.msra.gmra.mxu0 %vm136_vm1, %v21118_v5  ;;  %17940 = vmatmul.mubr.msk.f32.vlgmr.msra.gmra.mxu1 %vm136_vm1, %v21118_v5 }
 0x3cb   :  { %v12368_v41 = vpop.f32.mrf.mxu0  ;;  %v15750_v47 = vpop.permute.xlu1 %15749  ;;  %16010 = vmatprep.mubr.f32.mxu0 %v21554_v62  ;;  %16081 = vmatprep.mubr.f32.mxu1 %v21554_v62 }
 0x3cc   :  { %v21130_v0 = vadd.f32 %v12368_v41, %v21025_v24 }
 0x3cd   :  { %v12437_v39 = vpop.f32.mrf.mxu1  ;;  %v15748_v18 = vpop.permute.xlu0 %15747 }
 0x3ce   :  { %v21133_v60 = vadd.f32 %v12437_v39, %v21031_v4  ;;  %v15775_v59 = vsel %vm15769_vm8, %v15746_v35, %v15748_v18  ;;  %v15776_v4 = vsel %vm15769_vm8, %v15748_v18, %v15750_v47 }
 0x3cf   :  { %v12439_v56 = vpop.f32.mrf.mxu1  ;;  %15976 = vmatprep.subr.mxu0 %v15775_v59  ;;  %v15754_v38 = vpop.permute.xlu1 %15753 }
 0x3d0   :  { %v21138_v13 = vadd.f32 %v12439_v56, %v21038_v46  ;;  %15977 = vmatpush1.msra.mxu0 %v15774_v26 }
 0x3d1   :  { %17941 = vmatmul.mubr.msk.f32.vlgmr.msra.gmra.mxu0 %vm136_vm1, %v21118_v5  ;;  %v15752_v24 = vpop.permute.xlu0 %15751 }
 0x3d2   :  { %v15777_v61 = vsel %vm15769_vm8, %v15750_v47, %v15752_v24  ;;  %16152 = vmatprep.mubr.f32.mxu0 %v21554_v62  ;;  %v15778_v44 = vsel %vm15769_vm8, %v15752_v24, %v15754_v38 }
 0x3d3   :  { %16047 = vmatprep.subr.mxu1 %v15777_v61  ;;  %v15758_v25 = vpop.permute.xlu1 %15757 }
 0x3d4   :  { %16048 = vmatpush1.msra.mxu1 %v15776_v4 }
 0x3d5   :  { %17942 = vmatmul.mubr.msk.f32.vlgmr.msra.gmra.mxu1 %vm136_vm1, %v21118_v5  ;;  %v15756_v63 = vpop.permute.xlu0 %15755 }
 0x3d6   :  { %v12595_v46 = vpop.f32.mrf.mxu0  ;;  %v12666_v31 = vpop.f32.mrf.mxu1  ;;  %v15779_v19 = vsel %vm15769_vm8, %v15754_v38, %v15756_v63  ;;  %16223 = vmatprep.mubr.f32.mxu1 %v21554_v62 }
 0x3d7   :  { %v21151_v58 = vadd.f32 %v12595_v46, %v21057_v51  ;;  %v21154_v22 = vadd.f32 %v12666_v31, %v21060_v9  ;;  %16118 = vmatprep.subr.mxu0 %v15779_v19  ;;  %v15762_v17 = vpop.permute.xlu1 %15761  ;;  %v15780_v9 = vsel %vm15769_vm8, %v15756_v63, %v15758_v25 }
 0x3d8   :  { %v12597_v45 = vpop.f32.mrf.mxu0  ;;  %v12668_v14 = vpop.f32.mrf.mxu1  ;;  %16119 = vmatpush1.msra.mxu0 %v15778_v44 }
 0x3d9   :  { %v21157_v21 = vadd.f32 %v12597_v45, %v21065_v11  ;;  %v21160_v12 = vadd.f32 %v12668_v14, %v21068_v33  ;;  %17943 = vmatmul.mubr.msk.f32.vlgmr.msra.gmra.mxu0 %vm136_vm1, %v21118_v5  ;;  %v15760_v36 = vpop.permute.xlu0 %15759 }
 0x3da   :  { %v15781_v51 = vsel %vm15769_vm8, %v15758_v25, %v15760_v36  ;;  %16294 = vmatprep.mubr.f32.mxu0 %v21554_v62  ;;  %v15782_v55 = vsel %vm15769_vm8, %v15760_v36, %v15762_v17 }
 0x3db   :  { %16189 = vmatprep.subr.mxu1 %v15781_v51  ;;  %v15766_v49 = vpop.permute.xlu1 %15765 }
 0x3dc   :  { %16190 = vmatpush1.msra.mxu1 %v15780_v9 }
 0x3dd   :  { %v12737_v29 = vpop.f32.mrf.mxu0  ;;  %17944 = vmatmul.mubr.msk.f32.vlgmr.msra.gmra.mxu1 %vm136_vm1, %v21118_v5  ;;  %v15764_v11 = vpop.permute.xlu0 %15763 }
 0x3de   :  { %v21170_v33 = vadd.f32 %v12737_v29, %v21080_v23  ;;  %v15783_v3 = vsel %vm15769_vm8, %v15762_v17, %v15764_v11  ;;  %16365 = vmatprep.mubr.f32.mxu1 %v21554_v62  ;;  %v15784_v8 = vsel %vm15769_vm8, %v15764_v11, %v15766_v49 }
 0x3df   :  { %v12739_v15 = vpop.f32.mrf.mxu0  ;;  %16260 = vmatprep.subr.mxu0 %v15783_v3  ;;  %v16393_v28 = vpop.permute.xlu1 %16392 }
 0x3e0   :  { %v21176_v10 = vadd.f32 %v12739_v15, %v21086_v52  ;;  %16261 = vmatpush1.msra.mxu0 %v15782_v55 }
 0x3e1   :  { %v12808_v43 = vpop.f32.mrf.mxu1  ;;  %17945 = vmatmul.mubr.msk.f32.vlgmr.msra.gmra.mxu0 %vm136_vm1, %v21118_v5  ;;  %v15768_v16 = vpop.permute.xlu0 %15767 }
 0x3e2   :  { %v21181_v23 = vadd.f32 %v12808_v43, %v21091_v42  ;;  %v15785_v57 = vsel %vm15769_vm8, %v15766_v49, %v15768_v16  ;;  %16523 = vmatprep.mubr.f32.mxu0 %v21554_v62 }
 0x3e3   :  { %v12810_v2 = vpop.f32.mrf.mxu1  ;;  %16331 = vmatprep.subr.mxu1 %v15785_v57  ;;  %v16397_v20 = vpop.permute.xlu1 %16396 }
 0x3e4   :  { %v21187_v52 = vadd.f32 %v12810_v2, %v21097_v48  ;;  %16332 = vmatpush1.msra.mxu1 %v15784_v8 }
 0x3e5   :  { %v12879_v54 = vpop.f32.mrf.mxu0  ;;  %17946 = vmatmul.mubr.msk.f32.vlgmr.msra.gmra.mxu1 %vm136_vm1, %v21118_v5  ;;  %v16395_v42 = vpop.permute.xlu0 %16394 }
 0x3e6   :  { %v21192_v50 = vadd.f32 %v12879_v54, %v21102_v40  ;;  %v16426_v34 = vsel %vm16424_vm9, %v16393_v28, %v16395_v42  ;;  %16594 = vmatprep.mubr.f32.mxu1 %v21554_v62  ;;  %v16427_v41 = vsel %vm16424_vm9, %v16395_v42, %v16397_v20 }
 0x3e7   :  { %v12881_v53 = vpop.f32.mrf.mxu0  ;;  %16489 = vmatprep.subr.mxu0 %v16426_v34  ;;  %v16391_v37 = vpop.permute.xlu1 %16390 }
 0x3e8   :  { %v21197_v6 = vadd.f32 %v12881_v53, %v21107_v30  ;;  %v16425_v48 = vsel %vm16424_vm9, %v16391_v37, %v16393_v28 }
 0x3e9   :  { %v12950_v35 = vpop.f32.mrf.mxu1  ;;  %v16399_v27 = vpop.permute.xlu0 %16398  ;;  %16490 = vmatpush1.msra.mxu0 %v16425_v48 }
 0x3ea   :  { %v21201_v5 = vadd.f32 %v12950_v35, %v21111_v1  ;;  %v16428_v40 = vsel %vm16424_vm9, %v16397_v20, %v16399_v27 }
 0x3eb   :  { %v12952_v47 = vpop.f32.mrf.mxu1  ;;  %16560 = vmatprep.subr.mxu1 %v16428_v40  ;;  %v16401_v39 = vpop.permute.xlu1 %16400 }
 0x3ec   :  { %v21206_v18 = vadd.f32 %v12952_v47, %v21116_v32  ;;  %16561 = vmatpush1.msra.mxu1 %v16427_v41  ;;  %v16429_v4 = vsel %vm16424_vm9, %v16399_v27, %v16401_v39 }
 0x3ed   :  { %v13021_v30 = vpop.f32.mrf.mxu0  ;;  %v21208_v59 = vpop.permute.xlu0 %16388 }
 0x3ee   :  { %v21211_v26 = vadd.f32 %v13021_v30, %v21121_v7  ;;  %17947 = vmatmul.mubr.msk.f32.vlgmr.msra.gmra.mxu0 %vm136_vm1, %v21208_v59  ;;  %17948 = vmatmul.mubr.msk.f32.vlgmr.msra.gmra.mxu1 %vm136_vm1, %v21208_v59 }
 0x3ef   :  { %v13023_v1 = vpop.f32.mrf.mxu0  ;;  %v16405_v56 = vpop.permute.xlu1 %16404  ;;  %16665 = vmatprep.mubr.f32.mxu0 %v21554_v62  ;;  %16736 = vmatprep.mubr.f32.mxu1 %v21554_v62 }
 0x3f0   :  { %v21220_v32 = vadd.f32 %v13023_v1, %v21130_v0 }
 0x3f1   :  { %v13092_v38 = vpop.f32.mrf.mxu1  ;;  %v16403_v24 = vpop.permute.xlu0 %16402 }
 0x3f2   :  { %v21223_v7 = vadd.f32 %v13092_v38, %v21133_v60  ;;  %v16430_v61 = vsel %vm16424_vm9, %v16401_v39, %v16403_v24  ;;  %v16431_v60 = vsel %vm16424_vm9, %v16403_v24, %v16405_v56 }
 0x3f3   :  { %v13094_v25 = vpop.f32.mrf.mxu1  ;;  %16631 = vmatprep.subr.mxu0 %v16430_v61  ;;  %v16409_v63 = vpop.permute.xlu1 %16408 }
 0x3f4   :  { %v21228_v46 = vadd.f32 %v13094_v25, %v21138_v13  ;;  %16632 = vmatpush1.msra.mxu0 %v16429_v4 }
 0x3f5   :  { %17949 = vmatmul.mubr.msk.f32.vlgmr.msra.gmra.mxu0 %vm136_vm1, %v21208_v59  ;;  %v16407_v0 = vpop.permute.xlu0 %16406 }
 0x3f6   :  { %v16432_v31 = vsel %vm16424_vm9, %v16405_v56, %v16407_v0  ;;  %16807 = vmatprep.mubr.f32.mxu0 %v21554_v62  ;;  %v16433_v14 = vsel %vm16424_vm9, %v16407_v0, %v16409_v63 }
 0x3f7   :  { %16702 = vmatprep.subr.mxu1 %v16432_v31  ;;  %v16413_v19 = vpop.permute.xlu1 %16412 }
 0x3f8   :  { %16703 = vmatpush1.msra.mxu1 %v16431_v60 }
 0x3f9   :  { %17950 = vmatmul.mubr.msk.f32.vlgmr.msra.gmra.mxu1 %vm136_vm1, %v21208_v59  ;;  %v16411_v44 = vpop.permute.xlu0 %16410 }
 0x3fa   :  { %v13250_v13 = vpop.f32.mrf.mxu0  ;;  %v13321_v17 = vpop.f32.mrf.mxu1  ;;  %v16434_v45 = vsel %vm16424_vm9, %v16409_v63, %v16411_v44  ;;  %16878 = vmatprep.mubr.f32.mxu1 %v21554_v62 }
 0x3fb   :  { %v21241_v36 = vadd.f32 %v13250_v13, %v21151_v58  ;;  %v21244_v51 = vadd.f32 %v13321_v17, %v21154_v22  ;;  %16773 = vmatprep.subr.mxu0 %v16434_v45  ;;  %v16417_v9 = vpop.permute.xlu1 %16416  ;;  %v16435_v22 = vsel %vm16424_vm9, %v16411_v44, %v16413_v19 }
 0x3fc   :  { %v13252_v49 = vpop.f32.mrf.mxu0  ;;  %v13323_v29 = vpop.f32.mrf.mxu1  ;;  %16774 = vmatpush1.msra.mxu0 %v16433_v14 }
 0x3fd   :  { %v21247_v11 = vadd.f32 %v13252_v49, %v21157_v21  ;;  %v21250_v3 = vadd.f32 %v13323_v29, %v21160_v12  ;;  %17951 = vmatmul.mubr.msk.f32.vlgmr.msra.gmra.mxu0 %vm136_vm1, %v21208_v59  ;;  %v16415_v55 = vpop.permute.xlu0 %16414 }
 0x3fe   :  { %v16436_v58 = vsel %vm16424_vm9, %v16413_v19, %v16415_v55  ;;  %16949 = vmatprep.mubr.f32.mxu0 %v21554_v62  ;;  %v16437_v16 = vsel %vm16424_vm9, %v16415_v55, %v16417_v9 }
 0x3ff   :  { %16844 = vmatprep.subr.mxu1 %v16436_v58  ;;  %v16421_v15 = vpop.permute.xlu1 %16420 }
 0x400   :  { %16845 = vmatpush1.msra.mxu1 %v16435_v22 }
 0x401   :  { %v13392_v28 = vpop.f32.mrf.mxu0  ;;  %17952 = vmatmul.mubr.msk.f32.vlgmr.msra.gmra.mxu1 %vm136_vm1, %v21208_v59  ;;  %v16419_v21 = vpop.permute.xlu0 %16418 }
 0x402   :  { %v21260_v12 = vadd.f32 %v13392_v28, %v21170_v33  ;;  %v16438_v43 = vsel %vm16424_vm9, %v16417_v9, %v16419_v21  ;;  %17020 = vmatprep.mubr.f32.mxu1 %v21554_v62  ;;  %v16439_v34 = vsel %vm16424_vm9, %v16419_v21, %v16421_v15 }
 0x403   :  { %v13394_v57 = vpop.f32.mrf.mxu0  ;;  %16915 = vmatprep.subr.mxu0 %v16438_v43  ;;  %v17048_v8 = vpop.permute.xlu1 %17047 }
 0x404   :  { %v21266_v2 = vadd.f32 %v13394_v57, %v21176_v10  ;;  %16916 = vmatpush1.msra.mxu0 %v16437_v16 }
 0x405   :  { %v13463_v20 = vpop.f32.mrf.mxu1  ;;  %17953 = vmatmul.mubr.msk.f32.vlgmr.msra.gmra.mxu0 %vm136_vm1, %v21208_v59  ;;  %v16423_v54 = vpop.permute.xlu0 %16422 }
 0x406   :  { %v21271_v33 = vadd.f32 %v13463_v20, %v21181_v23  ;;  %v16440_v42 = vsel %vm16424_vm9, %v16421_v15, %v16423_v54  ;;  %17178 = vmatprep.mubr.f32.mxu0 %v21554_v62 }
 0x407   :  { %v13465_v53 = vpop.f32.mrf.mxu1  ;;  %16986 = vmatprep.subr.mxu1 %v16440_v42  ;;  %v17052_v37 = vpop.permute.xlu1 %17051 }
 0x408   :  { %v21277_v10 = vadd.f32 %v13465_v53, %v21187_v52  ;;  %16987 = vmatpush1.msra.mxu1 %v16439_v34 }
 0x409   :  { %v13534_v48 = vpop.f32.mrf.mxu0  ;;  %17954 = vmatmul.mubr.msk.f32.vlgmr.msra.gmra.mxu1 %vm136_vm1, %v21208_v59  ;;  %v17050_v23 = vpop.permute.xlu0 %17049 }
 0x40a   :  { %v21282_v35 = vadd.f32 %v13534_v48, %v21192_v50  ;;  %v17081_v27 = vsel %vm17079_vm10, %v17048_v8, %v17050_v23  ;;  %17249 = vmatprep.mubr.f32.mxu1 %v21554_v62  ;;  %v17082_v1 = vsel %vm17079_vm10, %v17050_v23, %v17052_v37 }
 0x40b   :  { %v13536_v40 = vpop.f32.mrf.mxu0  ;;  %17144 = vmatprep.subr.mxu0 %v17081_v27  ;;  %v17046_v41 = vpop.permute.xlu1 %17045 }
 0x40c   :  { %v21287_v47 = vadd.f32 %v13536_v40, %v21197_v6  ;;  %v17080_v52 = vsel %vm17079_vm10, %v17046_v41, %v17048_v8 }
 0x40d   :  { %v13605_v39 = vpop.f32.mrf.mxu1  ;;  %v17054_v30 = vpop.permute.xlu0 %17053  ;;  %17145 = vmatpush1.msra.mxu0 %v17080_v52 }
 0x40e   :  { %v21291_v59 = vadd.f32 %v13605_v39, %v21201_v5  ;;  %v17083_v50 = vsel %vm17079_vm10, %v17052_v37, %v17054_v30 }
 0x40f   :  { %v13607_v56 = vpop.f32.mrf.mxu1  ;;  %17215 = vmatprep.subr.mxu1 %v17083_v50  ;;  %v17056_v38 = vpop.permute.xlu1 %17055 }
 0x410   :  { %v21296_v24 = vadd.f32 %v13607_v56, %v21206_v18  ;;  %17216 = vmatpush1.msra.mxu1 %v17082_v1  ;;  %v17084_v60 = vsel %vm17079_vm10, %v17054_v30, %v17056_v38 }
 0x411   :  { %v13676_v6 = vpop.f32.mrf.mxu0  ;;  %v21298_v61 = vpop.permute.xlu0 %17043 }
 0x412   :  { %v21301_v4 = vadd.f32 %v13676_v6, %v21211_v26  ;;  %17955 = vmatmul.mubr.msk.f32.vlgmr.msra.gmra.mxu0 %vm136_vm1, %v21298_v61  ;;  %17956 = vmatmul.mubr.msk.f32.vlgmr.msra.gmra.mxu1 %vm136_vm1, %v21298_v61 }
 0x413   :  { %v13678_v5 = vpop.f32.mrf.mxu0  ;;  %v17060_v25 = vpop.permute.xlu1 %17059  ;;  %17320 = vmatprep.mubr.f32.mxu0 %v21554_v62  ;;  %17391 = vmatprep.mubr.f32.mxu1 %v21554_v62 }
 0x414   :  { %v21310_v18 = vadd.f32 %v13678_v5, %v21220_v32 }
 0x415   :  { %v13747_v63 = vpop.f32.mrf.mxu1  ;;  %v17058_v0 = vpop.permute.xlu0 %17057 }
 0x416   :  { %v21313_v26 = vadd.f32 %v13747_v63, %v21223_v7  ;;  %v17085_v31 = vsel %vm17079_vm10, %v17056_v38, %v17058_v0  ;;  %v17086_v7 = vsel %vm17079_vm10, %v17058_v0, %v17060_v25 }
 0x417   :  { %v13749_v19 = vpop.f32.mrf.mxu1  ;;  %17286 = vmatprep.subr.mxu0 %v17085_v31  ;;  %v17064_v44 = vpop.permute.xlu1 %17063 }
 0x418   :  { %v21318_v13 = vadd.f32 %v13749_v19, %v21228_v46  ;;  %17287 = vmatpush1.msra.mxu0 %v17084_v60 }
 0x419   :  { %17957 = vmatmul.mubr.msk.f32.vlgmr.msra.gmra.mxu0 %vm136_vm1, %v21298_v61  ;;  %v17062_v32 = vpop.permute.xlu0 %17061 }
 0x41a   :  { %v17087_v17 = vsel %vm17079_vm10, %v17060_v25, %v17062_v32  ;;  %17462 = vmatprep.mubr.f32.mxu0 %v21554_v62  ;;  %v17088_v29 = vsel %vm17079_vm10, %v17062_v32, %v17064_v44 }
 0x41b   :  { %17357 = vmatprep.subr.mxu1 %v17087_v17  ;;  %v17068_v45 = vpop.permute.xlu1 %17067 }
 0x41c   :  { %17358 = vmatpush1.msra.mxu1 %v17086_v7 }
 0x41d   :  { %17958 = vmatmul.mubr.msk.f32.vlgmr.msra.gmra.mxu1 %vm136_vm1, %v21298_v61  ;;  %v17066_v14 = vpop.permute.xlu0 %17065 }
 0x41e   :  { %v13905_v46 = vpop.f32.mrf.mxu0  ;;  %v13976_v9 = vpop.f32.mrf.mxu1  ;;  %v17089_v49 = vsel %vm17079_vm10, %v17064_v44, %v17066_v14  ;;  %17533 = vmatprep.mubr.f32.mxu1 %v21554_v62 }
 0x41f   :  { %v21331_v55 = vadd.f32 %v13905_v46, %v21241_v36  ;;  %v21334_v58 = vadd.f32 %v13976_v9, %v21244_v51  ;;  %17428 = vmatprep.subr.mxu0 %v17089_v49  ;;  %v17072_v16 = vpop.permute.xlu1 %17071  ;;  %v17090_v51 = vsel %vm17079_vm10, %v17066_v14, %v17068_v45 }
 0x420   :  { %v13907_v22 = vpop.f32.mrf.mxu0  ;;  %v13978_v15 = vpop.f32.mrf.mxu1  ;;  %17429 = vmatpush1.msra.mxu0 %v17088_v29 }
 0x421   :  { %v21337_v28 = vadd.f32 %v13907_v22, %v21247_v11  ;;  %v21340_v21 = vadd.f32 %v13978_v15, %v21250_v3  ;;  %17959 = vmatmul.mubr.msk.f32.vlgmr.msra.gmra.mxu0 %vm136_vm1, %v21298_v61  ;;  %v17070_v43 = vpop.permute.xlu0 %17069 }
 0x422   :  { %v17091_v36 = vsel %vm17079_vm10, %v17068_v45, %v17070_v43  ;;  %17604 = vmatprep.mubr.f32.mxu0 %v21554_v62  ;;  %v17092_v20 = vsel %vm17079_vm10, %v17070_v43, %v17072_v16 }
 0x423   :  { %17499 = vmatprep.subr.mxu1 %v17091_v36  ;;  %v17076_v42 = vpop.permute.xlu1 %17075 }
 0x424   :  { %17500 = vmatpush1.msra.mxu1 %v17090_v51 }
 0x425   :  { %v14047_v57 = vpop.f32.mrf.mxu0  ;;  %17960 = vmatmul.mubr.msk.f32.vlgmr.msra.gmra.mxu1 %vm136_vm1, %v21298_v61  ;;  %v17074_v11 = vpop.permute.xlu0 %17073 }
 0x426   :  { %v21350_v3 = vadd.f32 %v14047_v57, %v21260_v12  ;;  %v17093_v8 = vsel %vm17079_vm10, %v17072_v16, %v17074_v11  ;;  %17675 = vmatprep.mubr.f32.mxu1 %v21554_v62  ;;  %v17094_v62 = vsel %vm17079_vm10, %v17074_v11, %v17076_v42 }
 0x427   :  { %v14049_v54 = vpop.f32.mrf.mxu0  ;;  %17570 = vmatprep.subr.mxu0 %v17093_v8 }
 0x428   :  { %v21356_v34 = vadd.f32 %v14049_v54, %v21266_v2  ;;  %17571 = vmatpush1.msra.mxu0 %v17092_v20 }
 0x429   :  { %v14118_v53 = vpop.f32.mrf.mxu1  ;;  %17961 = vmatmul.mubr.msk.f32.vlgmr.msra.gmra.mxu0 %vm136_vm1, %v21298_v61  ;;  %v17078_v37 = vpop.permute.xlu0 %17077 }
 0x42a   :  { %v21361_v12 = vadd.f32 %v14118_v53, %v21271_v33  ;;  %v17095_v48 = vsel %vm17079_vm10, %v17076_v42, %v17078_v37 }
 0x42b   :  { %v14120_v23 = vpop.f32.mrf.mxu1  ;;  %17641 = vmatprep.subr.mxu1 %v17095_v48 }
 0x42c   :  { %v21366_v27 = vadd.f32 %v14120_v23, %v21277_v10  ;;  %17642 = vmatpush1.msra.mxu1 %v17094_v62 }
 0x42d   :  { %v14189_v2 = vpop.f32.mrf.mxu0  ;;  %17962 = vmatmul.mubr.msk.f32.vlgmr.msra.gmra.mxu1 %vm136_vm1, %v21298_v61  ;;  %vm17729_vm1 = vcmask 654336  }
 0x42e   :  { %v21371_v40 = vadd.f32 %v14189_v2, %v21282_v35 }
 0x42f   :  { %v14191_v41 = vpop.f32.mrf.mxu0 }
 0x430   :  { %v21374_v33 = vadd.f32 %v14191_v41, %v21287_v47 }
 0x431   :  { %v14260_v52 = vpop.f32.mrf.mxu1 }
 0x432   :  { %v14417_v39 = vadd.f32 %v14260_v52, %v21291_v59 }
 0x433   :  { %v14262_v30 = vpop.f32.mrf.mxu1 }
 0x434   :  { %v14418_v50 = vadd.f32 %v14262_v30, %v21296_v24 }
 0x435   :  { %v14331_v10 = vpop.f32.mrf.mxu0 }
 0x436   :  { %v14419_v1 = vadd.f32 %v14331_v10, %v21301_v4 }
 0x437   :  { %v14333_v56 = vpop.f32.mrf.mxu0 }
 0x438   :  { %v14420_v38 = vadd.f32 %v14333_v56, %v21310_v18 }
 0x439   :  { %v14402_v6 = vpop.f32.mrf.mxu1 }
 0x43a   :  { %v14421_v35 = vadd.f32 %v14402_v6, %v21313_v26 }
 0x43b   :  { %v14404_v61 = vpop.f32.mrf.mxu1 }
 0x43c   :  { %v14422_v5 = vadd.f32 %v14404_v61, %v21318_v13 }
 0x442   :  { %v21382_v47 = vpop.f32.mrf.mxu0  ;;  %v21384_v25 = vpop.f32.mrf.mxu1 }
 0x444   :  { %v21386_v59 = vpop.f32.mrf.mxu0  ;;  %v21388_v63 = vpop.f32.mrf.mxu1 }
 0x449   :  { %v21390_v24 = vpop.f32.mrf.mxu0 }
 0x44b   :  { %v21394_v0 = vpop.f32.mrf.mxu0 }
 0x44d   :  { %v21392_v4 = vpop.f32.mrf.mxu1 }
 0x44f   :  { %v21396_v18 = vpop.f32.mrf.mxu1 }
 0x451   :  { %v21398_v26 = vpop.f32.mrf.mxu0 }
 0x453   :  { %v21402_v19 = vpop.f32.mrf.mxu0 }
 0x455   :  { %v14915_v31 = vpop.f32.mrf.mxu1 }
 0x456   :  { %v21400_v60 = vadd.f32 %v14915_v31, %v14417_v39 }
 0x457   :  { %v14917_v44 = vpop.f32.mrf.mxu1 }
 0x458   :  { %v21404_v13 = vadd.f32 %v14917_v44, %v14418_v50 }
 0x459   :  { %v14986_v32 = vpop.f32.mrf.mxu0 }
 0x45a   :  { %21704 = vst [vmem:[#allocation28_spill] sm:$0xff] %v21404_v13  ;;  %v21406_v17 = vadd.f32 %v14986_v32, %v14419_v1 }
 0x45b   :  { %v14988_v7 = vpop.f32.mrf.mxu0 }
 0x45c   :  { %21705 = vst [vmem:[#allocation11_spill] sm:$0xff] %v21406_v17  ;;  %v21408_v45 = vadd.f32 %v14988_v7, %v14420_v38 }
 0x45d   :  { %v15057_v14 = vpop.f32.mrf.mxu1 }
 0x45e   :  { %21706 = vst [vmem:[#allocation16_spill] sm:$0xff] %v21408_v45  ;;  %v21410_v46 = vadd.f32 %v15057_v14, %v14421_v35 }
 0x45f   :  { %v15059_v9 = vpop.f32.mrf.mxu1 }
 0x460   :  { %21707 = vst [vmem:[#allocation35_spill] sm:$0xff] %v21410_v46  ;;  %v21412_v49 = vadd.f32 %v15059_v9, %v14422_v5 }
 0x462   :  { %21708 = vst [vmem:[#allocation12_spill] sm:$0xff] %v21412_v49 }
 0x466   :  { %v15215_v29 = vpop.f32.mrf.mxu0  ;;  %v15286_v22 = vpop.f32.mrf.mxu1 }
 0x468   :  { %v15217_v15 = vpop.f32.mrf.mxu0  ;;  %v15288_v43 = vpop.f32.mrf.mxu1 }
 0x46d   :  { %v21414_v16 = vpop.f32.mrf.mxu0 }
 0x46f   :  { %v21418_v51 = vpop.f32.mrf.mxu0 }
 0x471   :  { %v21416_v36 = vpop.f32.mrf.mxu1 }
 0x473   :  { %v21420_v57 = vpop.f32.mrf.mxu1 }
 0x475   :  { %v21422_v11 = vpop.f32.mrf.mxu0 }
 0x477   :  { %v21426_v20 = vpop.f32.mrf.mxu0 }
 0x479   :  { %v21424_v8 = vpop.f32.mrf.mxu1 }
 0x47b   :  { %v21428_v54 = vpop.f32.mrf.mxu1 }
 0x47c   :  { %21709 = vst [vmem:[#allocation13_spill] sm:$0xff] %v21428_v54 }
 0x47d   :  { %v21430_v42 = vpop.f32.mrf.mxu0 }
 0x47e   :  { %21710 = vst [vmem:[#allocation36_spill] sm:$0xff] %v21430_v42 }
 0x47f   :  { %v21434_v37 = vpop.f32.mrf.mxu0 }
 0x480   :  { %21712 = vst [vmem:[#allocation15_spill] sm:$0xff] %v21434_v37 }
 0x481   :  { %v21432_v53 = vpop.f32.mrf.mxu1 }
 0x482   :  { %21711 = vst [vmem:[#allocation14_spill] sm:$0xff] %v21432_v53 }
 0x483   :  { %v21436_v48 = vpop.f32.mrf.mxu1 }
 0x484   :  { %21713 = vst [vmem:[#allocation22_spill] sm:$0xff] %v21436_v48 }
 0x48a   :  { %v15870_v62 = vpop.f32.mrf.mxu0  ;;  %v15941_v23 = vpop.f32.mrf.mxu1 }
 0x48c   :  { %v15872_v2 = vpop.f32.mrf.mxu0  ;;  %v15943_v41 = vpop.f32.mrf.mxu1 }
 0x491   :  { %v16012_v52 = vpop.f32.mrf.mxu0 }
 0x493   :  { %v21440_v30 = vpop.f32.mrf.mxu0 }
 0x495   :  { %v21438_v39 = vpop.f32.mrf.mxu1 }
 0x497   :  { %v21442_v50 = vpop.f32.mrf.mxu1 }
 0x499   :  { %v21444_v10 = vpop.f32.mrf.mxu0 }
 0x49b   :  { %v21448_v56 = vpop.f32.mrf.mxu0 }
 0x49d   :  { %v21446_v1 = vpop.f32.mrf.mxu1 }
 0x49e   :  { %21714 = vst [vmem:[#allocation43_spill] sm:$0xff] %v21446_v1 }
 0x49f   :  { %v21450_v38 = vpop.f32.mrf.mxu1 }
 0x4a0   :  { %21715 = vst [vmem:[#allocation17_spill] sm:$0xff] %v21450_v38  ;;  %v15063_v38 = vadd.f32 %v21386_v59, %v21337_v28  ;;  %v15066_v28 = vadd.f32 %v21390_v24, %v21350_v3  ;;  %v15068_v3 = vadd.f32 %v21392_v4, %v21361_v12 }
 0x4a1   :  { %v21452_v6 = vpop.f32.mrf.mxu0 }
 0x4a2   :  { %21716 = vst [vmem:[#allocation18_spill] sm:$0xff] %v21452_v6 }
 0x4a3   :  { %v21456_v61 = vpop.f32.mrf.mxu0 }
 0x4a4   :  { %21718 = vst [vmem:[#allocation19_spill] sm:$0xff] %v21456_v61  ;;  %v15064_v61 = vadd.f32 %v21384_v25, %v21334_v58 }
 0x4a5   :  { %v21454_v35 = vpop.f32.mrf.mxu1 }
 0x4a6   :  { %21717 = vst [vmem:[#allocation44_spill] sm:$0xff] %v21454_v35  ;;  %v15719_v17 = vadd.f32 %v15286_v22, %v15064_v61 }
 0x4a7   :  { %v21458_v5 = vpop.f32.mrf.mxu1 }
 0x4a8   :  { %21719 = vst [vmem:[#allocation29_spill] sm:$0xff] %v21458_v5  ;;  %v15062_v5 = vadd.f32 %v21382_v47, %v21331_v55  ;;  %v16374_v54 = vadd.f32 %v15941_v23, %v15719_v17  ;;  %v15067_v17 = vadd.f32 %v21394_v0, %v21356_v34  ;;  %v15069_v34 = vadd.f32 %v21396_v18, %v21366_v27 }
 0x4a9   :  { %v15723_v0 = vadd.f32 %v21416_v36, %v15068_v3  ;;  %v15071_v27 = vadd.f32 %v21402_v19, %v21374_v33  ;;  %v15727_v33 = vadd.f32 %v21424_v8, %v21400_v60  ;;  %v21729_v60 = vld [vmem:[#allocation11_spill] sm:$0xff]  ;;  %v21730_v8 = vld [vmem:[#allocation36_spill] sm:$0xff] }
 0x4aa   :  { %v15717_v42 = vadd.f32 %v15215_v29, %v15062_v5  ;;  %v15722_v24 = vadd.f32 %v21418_v51, %v15067_v17  ;;  %v15724_v4 = vadd.f32 %v21420_v57, %v15069_v34  ;;  %v21733_v17 = vld [vmem:[#allocation16_spill] sm:$0xff] }
 0x4ab   :  { %v16378_v51 = vadd.f32 %v21438_v39, %v15723_v0  ;;  %v21739_v0 = vld [vmem:[#allocation19_spill] sm:$0xff] }
 0x4ac   :  { %v16372_v1 = vadd.f32 %v15870_v62, %v15717_v42 }
 0x4ae   :  { %v16525_v31 = vpop.f32.mrf.mxu0  ;;  %v16596_v44 = vpop.f32.mrf.mxu1 }
 0x4b0   :  { %v16527_v32 = vpop.f32.mrf.mxu0  ;;  %v16598_v7 = vpop.f32.mrf.mxu1 }
 0x4b5   :  { %v16667_v14 = vpop.f32.mrf.mxu0 }
 0x4b7   :  { %v16669_v48 = vpop.f32.mrf.mxu0 }
 0x4b9   :  { %v21460_v9 = vpop.f32.mrf.mxu1 }
 0x4bb   :  { %v21462_v49 = vpop.f32.mrf.mxu1 }
 0x4bd   :  { %v21464_v53 = vpop.f32.mrf.mxu0 }
 0x4bf   :  { %v21468_v6 = vpop.f32.mrf.mxu0 }
 0x4c0   :  { %21721 = vst [vmem:[#allocation20_spill] sm:$0xff] %v21468_v6  ;;  %v15718_v6 = vadd.f32 %v15217_v15, %v15063_v38  ;;  %v17033_v38 = vadd.f32 %v21460_v9, %v16378_v51  ;;  %v21741_v51 = vld [vmem:[#allocation12_spill] sm:$0xff] }
 0x4c1   :  { %v21466_v46 = vpop.f32.mrf.mxu1 }
 0x4c2   :  { %21720 = vst [vmem:[#allocation51_spill] sm:$0xff] %v21466_v46  ;;  %v15065_v46 = vadd.f32 %v21388_v63, %v21340_v21  ;;  %v16373_v58 = vadd.f32 %v15872_v2, %v15718_v6  ;;  %v15726_v6 = vadd.f32 %v21426_v20, %v15071_v27  ;;  %v21725_v20 = vld [vmem:[#allocation28_spill] sm:$0xff] }
 0x4c3   :  { %v21470_v35 = vpop.f32.mrf.mxu1 }
 0x4c4   :  { %21722 = vst [vmem:[#allocation52_spill] sm:$0xff] %v21470_v35  ;;  %v15720_v35 = vadd.f32 %v15288_v43, %v15065_v46  ;;  %v17028_v21 = vadd.f32 %v16527_v32, %v16373_v58  ;;  %v15721_v46 = vadd.f32 %v21414_v16, %v15066_v28  ;;  %v16377_v16 = vadd.f32 %v21440_v30, %v15722_v24 }
 0x4c5   :  { %v21476_v37 = vpop.f32.mrf.mxu0  ;;  %v16379_v30 = vadd.f32 %v21442_v50, %v15724_v4  ;;  %v15729_v28 = vadd.f32 %v21730_v8, %v21729_v60 }
 0x4c6   :  { %21723 = vst [vmem:[#allocation21_spill] sm:$0xff] %v21476_v37  ;;  %v16375_v25 = vadd.f32 %v15943_v41, %v15720_v35  ;;  %v17027_v37 = vadd.f32 %v16525_v31, %v16372_v1  ;;  %v16376_v2 = vadd.f32 %v16012_v52, %v15721_v46  ;;  %v15070_v41 = vadd.f32 %v21398_v26, %v21371_v40  ;;  %v21734_v46 = vld [vmem:[#allocation15_spill] sm:$0xff] }
 0x4c7   :  { %v21484_v55 = vpop.f32.mrf.mxu0  ;;  %v17032_v52 = vadd.f32 %v16669_v48, %v16377_v16  ;;  %v17034_v48 = vadd.f32 %v21462_v49, %v16379_v30 }
 0x4c8   :  { %v17030_v63 = vadd.f32 %v16598_v7, %v16375_v25  ;;  %v15725_v18 = vadd.f32 %v21422_v11, %v15070_v41  ;;  %v16381_v11 = vadd.f32 %v21448_v56, %v15726_v6  ;;  %v21727_v7 = vld [vmem:[#allocation43_spill] sm:$0xff]  ;;  %v21744_v6 = vld [vmem:[#allocation29_spill] sm:$0xff] }
 0x4c9   :  { %v21478_v45 = vpop.f32.mrf.mxu1  ;;  %v16382_v49 = vadd.f32 %v21727_v7, %v15727_v33 }
 0x4ca   :  { %21724 = vst [vmem:[#allocation23_spill] sm:$0xff] %v21478_v45  ;;  %v17029_v45 = vadd.f32 %v16596_v44, %v16374_v54  ;;  %v16380_v57 = vadd.f32 %v21444_v10, %v15725_v18  ;;  %v21726_v44 = vld [vmem:[#allocation13_spill] sm:$0xff]  ;;  %v21743_v18 = vld [vmem:[#allocation44_spill] sm:$0xff] }
 0x4cb   :  { %v21486_v47 = vpop.f32.mrf.mxu1  ;;  %v15728_v32 = vadd.f32 %v21726_v44, %v21725_v20 }
 0x4cc   :  { %v17035_v50 = vadd.f32 %v21464_v53, %v16380_v57 }
 0x4d1   :  { %v21745_v57 = vld [vmem:[#allocation23_spill] sm:$0xff] }
 0x4d2   :  { %v17180_v59 = vpop.f32.mrf.mxu0  ;;  %v17251_v13 = vpop.f32.mrf.mxu1 }
 0x4d3   :  { %v17682_v29 = vadd.f32 %v17180_v59, %v17027_v37  ;;  %v17684_v22 = vadd.f32 %v17251_v13, %v17029_v45  ;;  %v17031_v37 = vadd.f32 %v16667_v14, %v16376_v2  ;;  %v21728_v14 = vld [vmem:[#allocation20_spill] sm:$0xff]  ;;  %v21731_v59 = vld [vmem:[#allocation17_spill] sm:$0xff]  ;;  %v21737_v2 = vld [vmem:[#allocation35_spill] sm:$0xff] }
 0x4d4   :  { %v17182_v15 = vpop.f32.mrf.mxu0  ;;  %v17253_v43 = vpop.f32.mrf.mxu1  ;;  %v17036_v9 = vadd.f32 %v21728_v14, %v16381_v11  ;;  %v16383_v53 = vadd.f32 %v21731_v59, %v15728_v32 }
 0x4d5   :  { %v17698_v42 = vmax.f32 %v17682_v29, 0.0  ;;  %v17700_v62 = vmax.f32 %v17684_v22, 0.0  ;;  %v17683_v23 = vadd.f32 %v17182_v15, %v17028_v21  ;;  %v17685_v54 = vadd.f32 %v17253_v43, %v17030_v63  ;;  %v21732_v21 = vld [vmem:[#allocation51_spill] sm:$0xff] }
 0x4d6   :  { %v17037_v63 = vadd.f32 %v21732_v21, %v16382_v49  ;;  %v15730_v15 = vadd.f32 %v21734_v46, %v21733_v17 }
 0x4d7   :  { %17714 = vst [vmem:[#allocation7] sm:$0xff] %v17698_v42  ;;  %17716 = vst [vmem:[#allocation7 + $0x10] sm:$0xff] %v17700_v62  ;;  %v17699_v13 = vmax.f32 %v17683_v23, 0.0  ;;  %v17701_v45 = vmax.f32 %v17685_v54, 0.0  ;;  %v21735_v42 = vld [vmem:[#allocation18_spill] sm:$0xff]  ;;  %v21736_v23 = vld [vmem:[#allocation52_spill] sm:$0xff] }
 0x4d8   :  { %v16384_v62 = vadd.f32 %v21735_v42, %v15729_v28  ;;  %v17038_v54 = vadd.f32 %v21736_v23, %v16383_v53  ;;  %v16385_v16 = vadd.f32 %v21739_v0, %v15730_v15 }
 0x4d9   :  { %17715 = vst [vmem:[#allocation7 + $0x8] sm:$0xff] %v17699_v13  ;;  %17717 = vst [vmem:[#allocation7 + $0x18] sm:$0xff] %v17701_v45  ;;  %v17322_v12 = vpop.f32.mrf.mxu0  ;;  %v21738_v13 = vld [vmem:[#allocation14_spill] sm:$0xff] }
 0x4da   :  { %v17686_v1 = vadd.f32 %v17322_v12, %v17031_v37  ;;  %v15731_v45 = vadd.f32 %v21738_v13, %v21737_v2  ;;  %v21740_v37 = vld [vmem:[#allocation21_spill] sm:$0xff]  ;;  %v17040_v30 = vadd.f32 %v21484_v55, %v16385_v16 }
 0x4db   :  { %v17324_v36 = vpop.f32.mrf.mxu0  ;;  %v17039_v41 = vadd.f32 %v21740_v37, %v16384_v62 }
 0x4dc   :  { %v17702_v40 = vmax.f32 %v17686_v1, 0.0  ;;  %v17687_v26 = vadd.f32 %v17324_v36, %v17032_v52  ;;  %v21742_v52 = vld [vmem:[#allocation22_spill] sm:$0xff]  ;;  %v16386_v36 = vadd.f32 %v21743_v18, %v15731_v45 }
 0x4dd   :  { %v17393_v35 = vpop.f32.mrf.mxu1  ;;  %v15732_v1 = vadd.f32 %v21742_v52, %v21741_v51 }
 0x4de   :  { %17718 = vst [vmem:[#allocation7 + $0x20] sm:$0xff] %v17702_v40  ;;  %v17703_v39 = vmax.f32 %v17687_v26, 0.0  ;;  %v17688_v61 = vadd.f32 %v17393_v35, %v17033_v38 }
 0x4df   :  { %v17395_v19 = vpop.f32.mrf.mxu1  ;;  %v16387_v35 = vadd.f32 %v21744_v6, %v15732_v1 }
 0x4e0   :  { %17719 = vst [vmem:[#allocation7 + $0x28] sm:$0xff] %v17703_v39  ;;  %v17704_v5 = vmax.f32 %v17688_v61, 0.0  ;;  %v17689_v31 = vadd.f32 %v17395_v19, %v17034_v48  ;;  %v17041_v48 = vadd.f32 %v21745_v57, %v16386_v36 }
 0x4e1   :  { %v17464_v10 = vpop.f32.mrf.mxu0  ;;  %v17042_v19 = vadd.f32 %v21486_v47, %v16387_v35 }
 0x4e2   :  { %17720 = vst [vmem:[#allocation7 + $0x30] sm:$0xff] %v17704_v5  ;;  %v17705_v58 = vmax.f32 %v17689_v31, 0.0  ;;  %v17690_v25 = vadd.f32 %v17464_v10, %v17035_v50 }
 0x4e3   :  { %v17466_v56 = vpop.f32.mrf.mxu0 }
 0x4e4   :  { %17721 = vst [vmem:[#allocation7 + $0x38] sm:$0xff] %v17705_v58  ;;  %v17706_v29 = vmax.f32 %v17690_v25, 0.0  ;;  %v17691_v22 = vadd.f32 %v17466_v56, %v17036_v9 }
 0x4e5   :  { %v17535_v43 = vpop.f32.mrf.mxu1 }
 0x4e6   :  { %17722 = vst [vmem:[#allocation7 + $0x40] sm:$0xff] %v17706_v29  ;;  %v17707_v3 = vmax.f32 %v17691_v22, 0.0  ;;  %v17692_v24 = vadd.f32 %v17535_v43, %v17037_v63 }
 0x4e7   :  { %v17537_v34 = vpop.f32.mrf.mxu1 }
 0x4e8   :  { %17723 = vst [vmem:[#allocation7 + $0x48] sm:$0xff] %v17707_v3  ;;  %v17708_v12 = vmax.f32 %v17692_v24, 0.0  ;;  %v17693_v4 = vadd.f32 %v17537_v34, %v17038_v54 }
 0x4e9   :  { %v17606_v27 = vpop.f32.mrf.mxu0 }
 0x4ea   :  { %17724 = vst [vmem:[#allocation7 + $0x50] sm:$0xff] %v17708_v12  ;;  %v17709_v38 = vmax.f32 %v17693_v4, 0.0  ;;  %v17694_v40 = vadd.f32 %v17606_v27, %v17039_v41 }
 0x4eb   :  { %v17608_v26 = vpop.f32.mrf.mxu0 }
 0x4ec   :  { %17725 = vst [vmem:[#allocation7 + $0x58] sm:$0xff] %v17709_v38  ;;  %v17710_v39 = vmax.f32 %v17694_v40, 0.0  ;;  %v17695_v61 = vadd.f32 %v17608_v26, %v17040_v30 }
 0x4ed   :  { %v17677_v33 = vpop.f32.mrf.mxu1 }
 0x4ee   :  { %17726 = vst [vmem:[#allocation7 + $0x60] sm:$0xff] %v17710_v39  ;;  %v17711_v11 = vmax.f32 %v17695_v61, 0.0  ;;  %v17696_v50 = vadd.f32 %v17677_v33, %v17041_v48 }
 0x4ef   :  { %v17679_v5 = vpop.f32.mrf.mxu1 }
 0x4f0   :  { %17727 = vst [vmem:[#allocation7 + $0x68] sm:$0xff] %v17711_v11  ;;  %v17712_v55 = vmax.f32 %v17696_v50, 0.0  ;;  %v17697_v31 = vadd.f32 %v17679_v5, %v17042_v19 }
 0x4f2   :  { %17728 = vst [vmem:[#allocation7 + $0x70] sm:$0xff] %v17712_v55  ;;  %v17713_v20 = vmax.f32 %v17697_v31, 0.0 }
 0x4f4   :  { %17730 = vst.msk [vmem:[#allocation7 + $0x78] sm:$0xff] %vm17729_vm1, %v17713_v20 }
 0x4f5   :  { %18097 = shalt.err (!%p18094_p0)
}
 0x4f6   :  { %17740 = dma.vmem_to_hbm [thread:$0]  %s17738_s26, 2048, %s21544_s2, [#allocation4]  }
 0x4f7   :  { %18110 = dma.done.wait [#allocation4], 2048  }
 0x4f8   :  { %18111 = vsyncadd [#allocation4], 4294965248 }
 0x4f9   :  { %17744 = vsyncpa [#allocation3], 1 }
 0x4fa   :  { %17745 = vsyncpa [#allocation6], 1 }
 0x4fb   :  { %17746 = vsyncpa [#allocation4], 1 }

</bundles_post_ra>
